<compile_context>
chip_gen: v5e
topology: v5e:2x2
jax: 0.10.0
libtpu: 0.0.40
codegen_flags: <defaults>
</compile_context>

<pallas_src>
import jax
import jax.numpy as jnp
from jax.experimental import pallas as pl
from jax.experimental.pallas import tpu as pltpu

SEQ = 64                    # 8x8 board squares
DIM = 12                    # piece-plane features per square
OUT_DIM = 14                # + row embedding + col embedding
IN_LANES = SEQ * DIM        # 768  = 6 * 128  (lane-dense)
OUT_LANES = SEQ * OUT_DIM   # 896  = 7 * 128  (lane-dense)
DEFAULT_TB = 512            # ~9 MiB double-buffered VMEM -> under every generation's default


def _pos_encode_kernel(x_ref, p_ref, pos_ref, o_ref):
    # x_ref: (TB, 768)   p_ref: (768, 896) bf16 0/1   pos_ref: (1, 896) f32   o_ref: (TB, 896)
    p = p_ref[...]
    if x_ref.dtype == jnp.float32:
        # Exact f32 pass-through via a 3-way bf16 split (hi + mid + lo == x exactly).
        x = x_ref[...]
        hi = x.astype(jnp.bfloat16)
        r = x - hi.astype(jnp.float32)
        mid = r.astype(jnp.bfloat16)
        lo = (r - mid.astype(jnp.float32)).astype(jnp.bfloat16)
        acc = jnp.dot(hi, p, preferred_element_type=jnp.float32)
        acc = acc + jnp.dot(mid, p, preferred_element_type=jnp.float32)
        acc = acc + jnp.dot(lo, p, preferred_element_type=jnp.float32)
    else:
        # bf16-or-narrower inputs: a single bf16 pass is already exact for a 0/1 matrix.
        acc = jnp.dot(x_ref[...].astype(jnp.bfloat16), p,
                      preferred_element_type=jnp.float32)
    # pos_ref is zero on every lane the matmul filled and holds the embeddings on the
    # lanes where the matmul produced exact zeros, so one add completes the concat.
    o_ref[...] = (acc + pos_ref[...]).astype(o_ref.dtype)


def _build_scatter_matrix():
    # P[r, c] = 1  iff  c == (r // 12) * 14 + (r % 12); exactly one 1.0 per column used.
    src = jnp.arange(IN_LANES)
    dst = (src // DIM) * OUT_DIM + (src % DIM)
    return jax.nn.one_hot(dst, OUT_LANES, dtype=jnp.bfloat16)        # (768, 896)


def _build_pos_template(row_emb, col_emb):
    rows = jnp.tile(jnp.arange(8), 8)       # square i -> i % 8
    cols = jnp.repeat(jnp.arange(8), 8)     # square i -> i // 8
    pos14 = jnp.concatenate(
        [jnp.zeros((SEQ, DIM), jnp.float32),
         row_emb[rows].astype(jnp.float32),
         col_emb[cols].astype(jnp.float32)], axis=-1)                # (64, 14)
    return pos14.reshape(1, OUT_LANES)                               # (1, 896)


def _select_tb(B):
    if B >= 2 * DEFAULT_TB:
        return DEFAULT_TB
    half = -(-B // 2)            # ceil(B / 2)
    half = -(-half // 8) * 8     # round up to a sublane multiple
    if half < B:
        return half              # >= 2 grid steps -> both v7x TensorCores get work
    return B                     # tiny batch: single step, block == full batch dim


def chess_positional_encoder(x, row_emb, col_emb, tb=None):
    """x: (B, 64, 12); row_emb/col_emb: (8, 1) f32 -> (B, 64, 14) in x.dtype."""
    B = x.shape[0]
    assert x.shape[1:] == (SEQ, DIM), x.shape
    if tb is None:
        tb = _select_tb(B)
    grid = (pl.cdiv(B, tb),)     # B % tb != 0 handled by Pallas edge-block masking

    x_flat = x.reshape(B, IN_LANES)          # free contiguous reinterpretation
    scatter = _build_scatter_matrix()
    pos = _build_pos_template(row_emb, col_emb)

    out_flat = pl.pallas_call(
        _pos_encode_kernel,
        out_shape=jax.ShapeDtypeStruct((B, OUT_LANES), x.dtype),
        grid=grid,
        in_specs=[
            pl.BlockSpec((tb, IN_LANES), lambda b: (b, 0)),
            pl.BlockSpec((IN_LANES, OUT_LANES), lambda b: (0, 0)),   # VMEM-resident
            pl.BlockSpec((1, OUT_LANES), lambda b: (0, 0)),          # VMEM-resident
        ],
        out_specs=pl.BlockSpec((tb, OUT_LANES), lambda b: (b, 0)),
        compiler_params=pltpu.CompilerParams(dimension_semantics=("parallel",)),
    )(x_flat, scatter, pos)
    return out_flat.reshape(B, SEQ, OUT_DIM)


def reference(x, row_emb, col_emb):
    # Pure-JAX mirror of the PyTorch forward, for correctness checking.
    B = x.shape[0]
    rows = jnp.tile(jnp.arange(8), 8)                       # i % 8
    cols = jnp.repeat(jnp.arange(8), 8)                     # i // 8
    pos = jnp.concatenate([row_emb[rows], col_emb[cols]], axis=-1)   # (64, 2)
    pos = jnp.broadcast_to(pos[None], (B, SEQ, 2))
    return jnp.concatenate([x, pos.astype(x.dtype)], axis=-1)


if __name__ == "__main__":
    key = jax.random.PRNGKey(0)
    kx, kr, kc = jax.random.split(key, 3)

    B = 2
    x = jax.random.normal(kx, (B, SEQ, DIM), dtype=jnp.float32)
    # Deterministic synthetic parameters (Embedding(8, 1).weight equivalents).
    row_emb = jax.random.normal(kr, (8, 1), dtype=jnp.float32)
    col_emb = jax.random.normal(kc, (8, 1), dtype=jnp.float32)

    out = chess_positional_encoder(x, row_emb, col_emb)
    out = jax.block_until_ready(out)

    ref = reference(x, row_emb, col_emb)
    assert out.shape == (B, SEQ, OUT_DIM), out.shape
    assert jnp.allclose(out, ref, atol=1e-6, rtol=1e-6), "mismatch vs reference"

    print("KERNEL_OK")
</pallas_src>

<mosaic_0001>
module attributes {stable_mosaic.version = 11 : i64} {
  func.func @_pos_encode_kernel(%arg0: i32, %arg1: memref<2x768xf32, #tpu.memory_space<vmem>>, %arg2: memref<768x896xbf16, #tpu.memory_space<vmem>>, %arg3: memref<1x896xf32, #tpu.memory_space<vmem>>, %arg4: memref<2x896xf32, #tpu.memory_space<vmem>>) attributes {dimension_semantics = [#tpu.dimension_semantics<parallel>], iteration_bounds = array<i64: 1>, scalar_prefetch = 0 : i64, scratch_operands = 0 : i64, tpu.core_type = #tpu.core_type<tc>, window_params = [{transform_indices = @transform_0, window_bounds = array<i64: 2, 768>}, {pipeline_mode = #tpu.pipeline_mode<synchronous>, transform_indices = @transform_1, window_bounds = array<i64: 768, 896>}, {pipeline_mode = #tpu.pipeline_mode<synchronous>, transform_indices = @transform_2, window_bounds = array<i64: 1, 896>}, {transform_indices = @transform_3, window_bounds = array<i64: 2, 896>}]} {
    %c0 = arith.constant 0 : index
    %c0_0 = arith.constant 0 : index
    %0 = vector.load %arg2[%c0, %c0_0] : memref<768x896xbf16, #tpu.memory_space<vmem>>, vector<768x896xbf16>
    %c0_1 = arith.constant 0 : index
    %c0_2 = arith.constant 0 : index
    %1 = vector.load %arg1[%c0_1, %c0_2] : memref<2x768xf32, #tpu.memory_space<vmem>>, vector<2x768xf32>
    %2 = arith.truncf %1 : vector<2x768xf32> to vector<2x768xbf16>
    %3 = arith.extf %2 : vector<2x768xbf16> to vector<2x768xf32>
    %4 = arith.subf %1, %3 : vector<2x768xf32>
    %5 = arith.truncf %4 : vector<2x768xf32> to vector<2x768xbf16>
    %6 = arith.extf %5 : vector<2x768xbf16> to vector<2x768xf32>
    %7 = arith.subf %4, %6 : vector<2x768xf32>
    %8 = arith.truncf %7 : vector<2x768xf32> to vector<2x768xbf16>
    %cst = arith.constant dense<0.000000e+00> : vector<2x896xf32>
    %9 = tpu.matmul %2, %0, %cst {dimension_numbers = #tpu.dot_dimension_numbers<[1], [0], [0], [1], [0, 0, 1, 1], [], []>} : vector<2x768xbf16>, vector<768x896xbf16>, vector<2x896xf32> -> vector<2x896xf32>
    %cst_3 = arith.constant dense<0.000000e+00> : vector<2x896xf32>
    %10 = tpu.matmul %5, %0, %cst_3 {dimension_numbers = #tpu.dot_dimension_numbers<[1], [0], [0], [1], [0, 0, 1, 1], [], []>} : vector<2x768xbf16>, vector<768x896xbf16>, vector<2x896xf32> -> vector<2x896xf32>
    %11 = arith.addf %9, %10 : vector<2x896xf32>
    %cst_4 = arith.constant dense<0.000000e+00> : vector<2x896xf32>
    %12 = tpu.matmul %8, %0, %cst_4 {dimension_numbers = #tpu.dot_dimension_numbers<[1], [0], [0], [1], [0, 0, 1, 1], [], []>} : vector<2x768xbf16>, vector<768x896xbf16>, vector<2x896xf32> -> vector<2x896xf32>
    %13 = arith.addf %11, %12 : vector<2x896xf32>
    %c0_5 = arith.constant 0 : index
    %c0_6 = arith.constant 0 : index
    %14 = vector.load %arg3[%c0_5, %c0_6] : memref<1x896xf32, #tpu.memory_space<vmem>>, vector<1x896xf32>
    %15 = vector.broadcast %14 : vector<1x896xf32> to vector<2x896xf32>
    %16 = arith.addf %13, %15 : vector<2x896xf32>
    %c0_7 = arith.constant 0 : index
    %c0_8 = arith.constant 0 : index
    %17 = vector.load %arg4[%c0_7, %c0_8] : memref<2x896xf32, #tpu.memory_space<vmem>>, vector<2x896xf32>
    tpu.vector_store %arg4[%c0_7, %c0_8], %16 {strides = array<i32>} : memref<2x896xf32, #tpu.memory_space<vmem>>, vector<2x896xf32>,
    return
  }
  func.func @transform_0(%arg0: i32) -> (i32, i32) {
    %c0_i32 = arith.constant 0 : i32
    %c0_i32_0 = arith.constant 0 : i32
    return %arg0, %c0_i32 : i32, i32
  }
  func.func @transform_1(%arg0: i32) -> (i32, i32) {
    %c0_i32 = arith.constant 0 : i32
    %c0_i32_0 = arith.constant 0 : i32
    %c0_i32_1 = arith.constant 0 : i32
    return %c0_i32, %c0_i32_0 : i32, i32
  }
  func.func @transform_2(%arg0: i32) -> (i32, i32) {
    %c0_i32 = arith.constant 0 : i32
    %c0_i32_0 = arith.constant 0 : i32
    %c0_i32_1 = arith.constant 0 : i32
    return %c0_i32, %c0_i32_0 : i32, i32
  }
  func.func @transform_3(%arg0: i32) -> (i32, i32) {
    %c0_i32 = arith.constant 0 : i32
    %c0_i32_0 = arith.constant 0 : i32
    return %arg0, %c0_i32 : i32, i32
  }
}

</mosaic_0001>

<bundles_post_ra>
// kernel: tpu_custom_call.1
= control target key start
LH: loop header
LB: loop body
LE: loop exit
PB: predicated region body
PF: predicated region fallthrough
CT: control target
= control target key end

     0   :  { %8 = vsyncpa [#allocation3], 0  ;;  %s7822_s0 = inlined_call_operand.hbm [shape: f32[2,768], index: 0, kind: input, shape index: {}]   ;;  %s7823_s1 = inlined_call_operand.hbm [shape: bf16[768,896], index: 1, kind: input, shape index: {}]   ;;  %s7824_s2 = inlined_call_operand.hbm [shape: f32[1,896], index: 2, kind: input, shape index: {}]   ;;  %s7825_s3 = inlined_call_operand.hbm [shape: f32[2,896], index: 3, kind: output, shape index: {}]  }
   0x1   :  { %9 = vsyncpa [#allocation6], 0  ;;  %s26_s14 = sshll.u32 %s7823_s1, 4  ;;  %s27_s14 = int_to_ptr.hbm [resolvable:$true] %s26_s14 }
   0x2   :  { %10 = vsyncpa [#allocation4], 0  ;;  %s5823_s15 = smov [#allocation5]   ;;  %s16_s19 = sshll.u32 %s7822_s0, 4  ;;  %s17_s19 = int_to_ptr.hbm [resolvable:$true] %s16_s19 }
   0x3   :  { %s28_s16 = sshll.u32 %s5823_s15, 4  ;;  %s5824_s20 = smov 448   ;;  %s29_s16 = int_to_ptr.vmem [resolvable:$true] %s28_s16 }
   0x4   :  { %s5825_s21 = smov 28   ;;  %s5826_s22 = smov [#allocation2]  }
   0x5   :  { %34 = dma.hbm_to_vmem [thread:$0]  %s27_s14, 43008, %s29_s16, [#allocation6], %s5824_s20, %s5824_s20, %s5825_s21  }
   0x6   :  { %s18_s23 = sshll.u32 %s5826_s22, 4  ;;  %s40_s26 = sshll.u32 %s7824_s2, 4  ;;  %s19_s23 = int_to_ptr.vmem [resolvable:$true] %s18_s23  ;;  %s41_s26 = int_to_ptr.hbm [resolvable:$true] %s40_s26 }
   0x7   :  { %21 = dma.hbm_to_vmem [thread:$0]  %s17_s19, 192, %s19_s23, [#allocation3]  }
   0x8   :  { %s5827_s1 = smov [#allocation7]  }
   0x9   :  { %s42_s27 = sshll.u32 %s5827_s1, 4  ;;  %s43_s27 = int_to_ptr.vmem [resolvable:$true] %s42_s27 }
   0xa   :  { %45 = dma.hbm_to_vmem [thread:$0]  %s41_s26, 112, %s43_s27, [#allocation6]  }
   0xb   :  { %5817 = dma.done.wait [#allocation3], 192  }
   0xc   :  { %5818 = vsyncadd [#allocation3], 4294967104 }
   0xd   :  { %5819 = dma.done.wait [#allocation6], 43120  }
   0xe   :  { %5820 = vsyncadd [#allocation6], 4294924176  ;;  %v4233_v0 = vld [vmem:[#allocation5 + $0x188] sm:$0xf]  ;;  %v5431_v1 = vld [vmem:[#allocation5 + $0x1a0] sm:$0xf0] }
   0xf   :  { %v4457_v2 = vld [vmem:[#allocation5 + $0x348] sm:$0xf]  ;;  %v5858_v3 = vor.u32 %v5431_v1, %v4233_v0  ;;  %v5487_v4 = vld [vmem:[#allocation5 + $0x360] sm:$0xf0]  ;;  %v4205_v11 = vld [vmem:[#allocation5 + $0x150] sm:$0xf] }
  0x10   :  { %v4681_v5 = vld [vmem:[#allocation5 + $0x508] sm:$0xf]  ;;  %v5543_v6 = vld [vmem:[#allocation5 + $0x520] sm:$0xf0]  ;;  %v5860_v7 = vor.u32 %v5487_v4, %v4457_v2  ;;  %v5424_v13 = vld [vmem:[#allocation5 + $0x168] sm:$0xf0] }
  0x11   :  { %v5862_v8 = vor.u32 %v5543_v6, %v4681_v5  ;;  %v4905_v9 = vld [vmem:[#allocation5 + $0x6c8] sm:$0xf]  ;;  %v5599_v10 = vld [vmem:[#allocation5 + $0x6e0] sm:$0xf0]  ;;  %2307 = vmatpush.bf16.msra.mxu0 %v5858_v3  ;;  %v4429_v14 = vld [vmem:[#allocation5 + $0x310] sm:$0xf]  ;;  %v5869_v16 = vor.u32 %v5424_v13, %v4205_v11 }
  0x12   :  { %v5865_v12 = vor.u32 %v5599_v10, %v4905_v9  ;;  %v5480_v15 = vld [vmem:[#allocation5 + $0x328] sm:$0xf0]  ;;  %2320 = vmatpush.bf16.msra.mxu1 %v5860_v7  ;;  %v4653_v18 = vld [vmem:[#allocation5 + $0x4d0] sm:$0xf]  ;;  %v4177_v23 = vld [vmem:[#allocation5 + $0x118] sm:$0xf] }
  0x13   :  { %2333 = vmatpush.bf16.msra.mxu2 %v5862_v8  ;;  %v5871_v17 = vor.u32 %v5480_v15, %v4429_v14  ;;  %v5536_v19 = vld [vmem:[#allocation5 + $0x4e8] sm:$0xf0]  ;;  %v4877_v20 = vld [vmem:[#allocation5 + $0x690] sm:$0xf]  ;;  %v5417_v24 = vld [vmem:[#allocation5 + $0x130] sm:$0xf0] }
  0x14   :  { %2346 = vmatpush.bf16.msra.mxu3 %v5865_v12  ;;  %v5874_v21 = vor.u32 %v5536_v19, %v4653_v18  ;;  %v5592_v22 = vld [vmem:[#allocation5 + $0x6a8] sm:$0xf0]  ;;  %v4401_v26 = vld [vmem:[#allocation5 + $0x2d8] sm:$0xf]  ;;  %v5473_v27 = vld [vmem:[#allocation5 + $0x2f0] sm:$0xf0]  ;;  %v5879_v29 = vor.u32 %v5417_v24, %v4177_v23 }
  0x15   :  { %8420 = vst [vmem:[#allocation12_spill] sm:$0xff] %v5871_v17  ;;  %v5876_v25 = vor.u32 %v5592_v22, %v4877_v20  ;;  %v4625_v28 = vld [vmem:[#allocation5 + $0x498] sm:$0xf]  ;;  %2308 = vmatpush.bf16.msra.mxu0 %v5869_v16  ;;  %v5529_v30 = vld [vmem:[#allocation5 + $0x4b0] sm:$0xf0]  ;;  %v5883_v33 = vor.u32 %v5473_v27, %v4401_v26  ;;  %vm480_vm0 = vcmask 1041408  }
  0x16   :  { %8421 = vst [vmem:[#allocation13_spill] sm:$0xff] %v5879_v29  ;;  %v4849_v31 = vld [vmem:[#allocation5 + $0x658] sm:$0xf]  ;;  %v5585_v32 = vld [vmem:[#allocation5 + $0x670] sm:$0xf0]  ;;  %2321 = vmatpush.bf16.msra.mxu1 %v5871_v17  ;;  %v5885_v34 = vor.u32 %v5529_v30, %v4625_v28  ;;  %vm482_vm1 = vcmask 1045508  }
  0x17   :  { %2334 = vmatpush.bf16.msra.mxu2 %v5874_v21  ;;  %8422 = vst [vmem:[#allocation14_spill] sm:$0xff] %v5883_v33  ;;  %v4149_v35 = vld [vmem:[#allocation5 + $0xe0] sm:$0xf]  ;;  %v5410_v36 = vld [vmem:[#allocation5 + $0xf8] sm:$0xf0]  ;;  %v5888_v38 = vor.u32 %v5585_v32, %v4849_v31  ;;  %vm484_vm2 = vcmask 1043456  }
  0x18   :  { %v4373_v37 = vld [vmem:[#allocation5 + $0x2a0] sm:$0xf]  ;;  %2347 = vmatpush.bf16.msra.mxu3 %v5876_v25  ;;  %v5466_v39 = vld [vmem:[#allocation5 + $0x2b8] sm:$0xf0]  ;;  %v5891_v44 = vor.u32 %v5410_v36, %v4149_v35  ;;  %v4121_v47 = vld [vmem:[#allocation5 + $0xa8] sm:$0xf] }
  0x19   :  { %v4597_v40 = vld [vmem:[#allocation5 + $0x460] sm:$0xf]  ;;  %v5522_v41 = vld [vmem:[#allocation5 + $0x478] sm:$0xf0]  ;;  %2309 = vmatpush.bf16.msra.mxu0 %v5879_v29  ;;  %v5895_v45 = vor.u32 %v5466_v39, %v4373_v37  ;;  %v5403_v48 = vld [vmem:[#allocation5 + $0xc0] sm:$0xf0] }
  0x1a   :  { %v4821_v42 = vld [vmem:[#allocation5 + $0x620] sm:$0xf]  ;;  %v5578_v43 = vld [vmem:[#allocation5 + $0x638] sm:$0xf0]  ;;  %8423 = vst [vmem:[#allocation15_spill] sm:$0xff] %v5891_v44  ;;  %2322 = vmatpush.bf16.msra.mxu1 %v5883_v33  ;;  %v5897_v46 = vor.u32 %v5522_v41, %v4597_v40  ;;  %v5903_v56 = vor.u32 %v5403_v48, %v4121_v47  ;;  %s5828_s0 = smov [#allocation8]  }
  0x1b   :  { %2335 = vmatpush.bf16.msra.mxu2 %v5885_v34  ;;  %8424 = vst [vmem:[#allocation16_spill] sm:$0xff] %v5895_v45  ;;  %v4345_v49 = vld [vmem:[#allocation5 + $0x268] sm:$0xf]  ;;  %v5900_v50 = vor.u32 %v5578_v43, %v4821_v42  ;;  %v5459_v51 = vld [vmem:[#allocation5 + $0x280] sm:$0xf0]  ;;  %s4022_s2 = sshll.u32 %s5828_s0, 4  ;;  %s4023_s2 = int_to_ptr.vmem [resolvable:$true] %s4022_s2 }
  0x1c   :  { %2348 = vmatpush.bf16.msra.mxu3 %v5888_v38  ;;  %v4569_v52 = vld [vmem:[#allocation5 + $0x428] sm:$0xf]  ;;  %v5515_v53 = vld [vmem:[#allocation5 + $0x440] sm:$0xf0]  ;;  %v5907_v57 = vor.u32 %v5459_v51, %v4345_v49  ;;  %v4093_v59 = vld [vmem:[#allocation5 + $0x70] sm:$0xf] }
  0x1d   :  { %v4793_v54 = vld [vmem:[#allocation5 + $0x5e8] sm:$0xf]  ;;  %v5571_v55 = vld [vmem:[#allocation5 + $0x600] sm:$0xf0]  ;;  %2310 = vmatpush.bf16.msra.mxu0 %v5891_v44  ;;  %v5909_v58 = vor.u32 %v5515_v53, %v4569_v52  ;;  %v5396_v60 = vld [vmem:[#allocation5 + $0x88] sm:$0xf0] }
  0x1e   :  { %2323 = vmatpush.bf16.msra.mxu1 %v5895_v45  ;;  %v4317_v61 = vld [vmem:[#allocation5 + $0x230] sm:$0xf]  ;;  %v5912_v62 = vor.u32 %v5571_v55, %v4793_v54  ;;  %v5452_v63 = vld [vmem:[#allocation5 + $0x248] sm:$0xf0]  ;;  %v5915_v5 = vor.u32 %v5396_v60, %v4093_v59  ;;  %v4065_v10 = vld [vmem:[#allocation5 + $0x38] sm:$0xf] }
  0x1f   :  { %2336 = vmatpush.bf16.msra.mxu2 %v5897_v46  ;;  %8425 = vst [vmem:[#allocation17_spill] sm:$0xff] %v5909_v58  ;;  %v4541_v0 = vld [vmem:[#allocation5 + $0x3f0] sm:$0xf]  ;;  %v5508_v1 = vld [vmem:[#allocation5 + $0x408] sm:$0xf0]  ;;  %v5919_v6 = vor.u32 %v5452_v63, %v4317_v61  ;;  %s4024_s30 = sshll.u32 %s7825_s3, 4  ;;  %s4025_s30 = int_to_ptr.hbm [resolvable:$true] %s4024_s30 }
  0x20   :  { %2349 = vmatpush.bf16.msra.mxu3 %v5900_v50  ;;  %8426 = vst [vmem:[#allocation18_spill] sm:$0xff] %v5912_v62  ;;  %v4765_v2 = vld [vmem:[#allocation5 + $0x5b0] sm:$0xf]  ;;  %v5564_v4 = vld [vmem:[#allocation5 + $0x5c8] sm:$0xf0]  ;;  %v5921_v9 = vor.u32 %v5508_v1, %v4541_v0 }
  0x21   :  { %2311 = vmatpush.bf16.msra.mxu0 %v5903_v56  ;;  %8427 = vst [vmem:[#allocation19_spill] sm:$0xff] %v5915_v5  ;;  %v5389_v11 = vld [vmem:[#allocation5 + $0x50] sm:$0xf0]  ;;  %v4289_v13 = vld [vmem:[#allocation5 + $0x1f8] sm:$0xf]  ;;  %v5924_v14 = vor.u32 %v5564_v4, %v4765_v2 }
  0x22   :  { %2324 = vmatpush.bf16.msra.mxu1 %v5907_v57  ;;  %8428 = vst [vmem:[#allocation20_spill] sm:$0xff] %v5919_v6  ;;  %v5445_v15 = vld [vmem:[#allocation5 + $0x210] sm:$0xf0]  ;;  %v4513_v18 = vld [vmem:[#allocation5 + $0x3b8] sm:$0xf]  ;;  %v5927_v23 = vor.u32 %v5389_v11, %v4065_v10 }
  0x23   :  { %2337 = vmatpush.bf16.msra.mxu2 %v5909_v58  ;;  %8429 = vst [vmem:[#allocation21_spill] sm:$0xff] %v5921_v9  ;;  %v5501_v19 = vld [vmem:[#allocation5 + $0x3d0] sm:$0xf0]  ;;  %v4737_v20 = vld [vmem:[#allocation5 + $0x578] sm:$0xf]  ;;  %v5931_v27 = vor.u32 %v5445_v15, %v4289_v13 }
  0x24   :  { %2350 = vmatpush.bf16.msra.mxu3 %v5912_v62  ;;  %8430 = vst [vmem:[#allocation22_spill] sm:$0xff] %v5924_v14  ;;  %v5557_v22 = vld [vmem:[#allocation5 + $0x590] sm:$0xf0]  ;;  %v4037_v24 = vld [vmem:[#allocation5] sm:$0xf]  ;;  %v5933_v28 = vor.u32 %v5501_v19, %v4513_v18 }
  0x25   :  { %2312 = vmatpush.bf16.msra.mxu0 %v5915_v5  ;;  %8431 = vst [vmem:[#allocation23_spill] sm:$0xff] %v5927_v23  ;;  %v5382_v26 = vld [vmem:[#allocation5 + $0x18] sm:$0xf0]  ;;  %v4261_v30 = vld [vmem:[#allocation5 + $0x1c0] sm:$0xf]  ;;  %v5936_v35 = vor.u32 %v5557_v22, %v4737_v20 }
  0x26   :  { %2325 = vmatpush.bf16.msra.mxu1 %v5919_v6  ;;  %8432 = vst [vmem:[#allocation24_spill] sm:$0xff] %v5931_v27  ;;  %v5438_v31 = vld [vmem:[#allocation5 + $0x1d8] sm:$0xf0]  ;;  %v4485_v32 = vld [vmem:[#allocation5 + $0x380] sm:$0xf]  ;;  %v5939_v43 = vor.u32 %v5382_v26, %v4037_v24 }
  0x27   :  { %2338 = vmatpush.bf16.msra.mxu2 %v5921_v9  ;;  %8433 = vst [vmem:[#allocation25_spill] sm:$0xff] %v5933_v28  ;;  %v5494_v36 = vld [vmem:[#allocation5 + $0x398] sm:$0xf0]  ;;  %v5129_v37 = vld [vmem:[#allocation5 + $0x888] sm:$0xf]  ;;  %v5943_v51 = vor.u32 %v5438_v31, %v4261_v30  ;;  %v5971_v31 = vld [vmem:[#allocation2] sm:$0xff] }
  0x28   :  { %2351 = vmatpush.bf16.msra.mxu3 %v5924_v14  ;;  %8434 = vst [vmem:[#allocation26_spill] sm:$0xff] %v5936_v35  ;;  %v5655_v39 = vld [vmem:[#allocation5 + $0x8a0] sm:$0xf0]  ;;  %v5353_v40 = vld [vmem:[#allocation5 + $0xa48] sm:$0xf]  ;;  %v5945_v52 = vor.u32 %v5494_v36, %v4485_v32 }
  0x29   :  { %v5711_v41 = vld [vmem:[#allocation5 + $0xa60] sm:$0xf0]  ;;  %v5428_v42 = vld [vmem:[#allocation5 + $0x18c] sm:$0xf]  ;;  %2313 = vmatpush.bf16.msra.mxu0 %v5927_v23  ;;  %8435 = vst [vmem:[#allocation27_spill] sm:$0xff] %v5939_v43  ;;  %v5948_v55 = vor.u32 %v5655_v39, %v5129_v37 }
  0x2a   :  { %v4235_v47 = vld [vmem:[#allocation5 + $0x1a4] sm:$0xf0]  ;;  %v4709_v48 = vld [vmem:[#allocation5 + $0x540] sm:$0xf]  ;;  %v5550_v49 = vld [vmem:[#allocation5 + $0x558] sm:$0xf0]  ;;  %2326 = vmatpush.bf16.msra.mxu1 %v5931_v27  ;;  %v5950_v59 = vor.u32 %v5711_v41, %v5353_v40 }
  0x2b   :  { %2339 = vmatpush.bf16.msra.mxu2 %v5933_v28  ;;  %8436 = vst [vmem:[#allocation28_spill] sm:$0xff] %v5943_v51  ;;  %v5484_v53 = vld [vmem:[#allocation5 + $0x34c] sm:$0xf]  ;;  %v4459_v54 = vld [vmem:[#allocation5 + $0x364] sm:$0xf0]  ;;  %v5952_v61 = vor.u32 %v5428_v42, %v4235_v47  ;;  %v5954_v63 = vor.u32 %v5550_v49, %v4709_v48 }
  0x2c   :  { %8437 = vst [vmem:[#allocation29_spill] sm:$0xff] %v5945_v52  ;;  %2352 = vmatpush.bf16.msra.mxu3 %v5936_v35  ;;  %v5101_v60 = vld [vmem:[#allocation5 + $0x850] sm:$0xf]  ;;  %v5648_v0 = vld [vmem:[#allocation5 + $0x868] sm:$0xf0]  ;;  %v5957_v4 = vor.u32 %v5484_v53, %v4459_v54 }
  0x2d   :  { %8438 = vst [vmem:[#allocation30_spill] sm:$0xff] %v5948_v55  ;;  %v5325_v1 = vld [vmem:[#allocation5 + $0xa10] sm:$0xf]  ;;  %v5704_v2 = vld [vmem:[#allocation5 + $0xa28] sm:$0xf0]  ;;  %2314 = vmatpush.bf16.msra.mxu0 %v5939_v43  ;;  %v5963_v18 = vor.u32 %v5648_v0, %v5101_v60 }
  0x2e   :  { %8439 = vst [vmem:[#allocation31_spill] sm:$0xff] %v5950_v59  ;;  %v5421_v10 = vld [vmem:[#allocation5 + $0x154] sm:$0xf]  ;;  %v4207_v11 = vld [vmem:[#allocation5 + $0x16c] sm:$0xf0]  ;;  %2327 = vmatpush.bf16.msra.mxu1 %v5943_v51  ;;  %v5965_v19 = vor.u32 %v5704_v2, %v5325_v1 }
  0x2f   :  { %8440 = vst [vmem:[#allocation32_spill] sm:$0xff] %v5952_v61  ;;  %2340 = vmatpush.bf16.msra.mxu2 %v5945_v52  ;;  %v5477_v13 = vld [vmem:[#allocation5 + $0x314] sm:$0xf]  ;;  %v4431_v15 = vld [vmem:[#allocation5 + $0x32c] sm:$0xf0]  ;;  %v5969_v24 = vor.u32 %v5421_v10, %v4207_v11 }
  0x30   :  { %8441 = vst [vmem:[#allocation33_spill] sm:$0xff] %v5954_v63  ;;  %v5073_v20 = vld [vmem:[#allocation5 + $0x818] sm:$0xf]  ;;  %v5641_v22 = vld [vmem:[#allocation5 + $0x830] sm:$0xf0]  ;;  %2353 = vmatpush.bf16.msra.mxu3 %v5954_v63  ;;  %v5974_v32 = vor.u32 %v5477_v13, %v4431_v15 }
  0x31   :  { %8442 = vst [vmem:[#allocation34_spill] sm:$0xff] %v5957_v4  ;;  %2359 = vmatpush.bf16.msrb.mxu0 %v5948_v55  ;;  %v5297_v26 = vld [vmem:[#allocation5 + $0x9d8] sm:$0xf]  ;;  %v5697_v30 = vld [vmem:[#allocation5 + $0x9f0] sm:$0xf0]  ;;  %v5979_v41 = vor.u32 %v5641_v22, %v5073_v20 }
  0x32   :  { %2372 = vmatpush.bf16.msrb.mxu1 %v5950_v59  ;;  %8443 = vst [vmem:[#allocation35_spill] sm:$0xff] %v5963_v18  ;;  %v5414_v36 = vld [vmem:[#allocation5 + $0x11c] sm:$0xf]  ;;  %v4179_v37 = vld [vmem:[#allocation5 + $0x134] sm:$0xf0]  ;;  %v5981_v42 = vor.u32 %v5697_v30, %v5297_v26 }
  0x33   :  { %8444 = vst [vmem:[#allocation36_spill] sm:$0xff] %v5965_v19  ;;  %2385 = vmatpush.bf16.msrb.mxu2 %v5952_v61  ;;  %v5470_v39 = vld [vmem:[#allocation5 + $0x2dc] sm:$0xf]  ;;  %v4403_v40 = vld [vmem:[#allocation5 + $0x2f4] sm:$0xf0]  ;;  %v5984_v49 = vor.u32 %v5414_v36, %v4179_v37 }
  0x34   :  { %8445 = vst [vmem:[#allocation37_spill] sm:$0xff] %v5969_v24  ;;  %2398 = vmatpush.bf16.msrb.mxu3 %v5957_v4  ;;  %v5045_v47 = vld [vmem:[#allocation5 + $0x7e0] sm:$0xf]  ;;  %v5634_v48 = vld [vmem:[#allocation5 + $0x7f8] sm:$0xf0]  ;;  %v5987_v0 = vor.u32 %v5470_v39, %v4403_v40 }
  0x35   :  { %8446 = vst [vmem:[#allocation38_spill] sm:$0xff] %v5974_v32  ;;  %2360 = vmatpush.bf16.msrb.mxu0 %v5963_v18  ;;  %v5269_v53 = vld [vmem:[#allocation5 + $0x9a0] sm:$0xf]  ;;  %v5690_v54 = vld [vmem:[#allocation5 + $0x9b8] sm:$0xf0]  ;;  %v5991_v20 = vor.u32 %v5634_v48, %v5045_v47 }
  0x36   :  { %446 = vst [vmem:[#allocation1] ss:$4 sm:$0xff] %v5971_v31  ;;  %2373 = vmatpush.bf16.msrb.mxu1 %v5965_v19  ;;  %v5407_v60 = vld [vmem:[#allocation5 + $0xe4] sm:$0xf]  ;;  %v4151_v1 = vld [vmem:[#allocation5 + $0xfc] sm:$0xf0]  ;;  %v5993_v22 = vor.u32 %v5690_v54, %v5269_v53 }
  0x37   :  { %8447 = vst [vmem:[#allocation39_spill] sm:$0xff] %v5979_v41  ;;  %2386 = vmatpush.bf16.msrb.mxu2 %v5969_v24  ;;  %v5463_v2 = vld [vmem:[#allocation5 + $0x2a4] sm:$0xf]  ;;  %v4375_v10 = vld [vmem:[#allocation5 + $0x2bc] sm:$0xf0]  ;;  %v5996_v37 = vor.u32 %v5407_v60, %v4151_v1 }
  0x38   :  { %8448 = vst [vmem:[#allocation40_spill] sm:$0xff] %v5981_v42  ;;  %2399 = vmatpush.bf16.msrb.mxu3 %v5974_v32  ;;  %v5017_v11 = vld [vmem:[#allocation5 + $0x7a8] sm:$0xf]  ;;  %v5627_v13 = vld [vmem:[#allocation5 + $0x7c0] sm:$0xf0]  ;;  %v5999_v32 = vor.u32 %v5463_v2, %v4375_v10 }
  0x39   :  { %8449 = vst [vmem:[#allocation41_spill] sm:$0xff] %v5984_v49  ;;  %v5241_v15 = vld [vmem:[#allocation5 + $0x968] sm:$0xf]  ;;  %2361 = vmatpush.bf16.msrb.mxu0 %v5979_v41  ;;  %v5683_v26 = vld [vmem:[#allocation5 + $0x980] sm:$0xf0]  ;;  %v6003_v47 = vor.u32 %v5627_v13, %v5017_v11 }
  0x3a   :  { %8450 = vst [vmem:[#allocation42_spill] sm:$0xff] %v5987_v0  ;;  %2374 = vmatpush.bf16.msrb.mxu1 %v5981_v42  ;;  %v5400_v30 = vld [vmem:[#allocation5 + $0xac] sm:$0xf]  ;;  %v4123_v36 = vld [vmem:[#allocation5 + $0xc4] sm:$0xf0]  ;;  %v6005_v48 = vor.u32 %v5683_v26, %v5241_v15 }
  0x3b   :  { %8451 = vst [vmem:[#allocation43_spill] sm:$0xff] %v5991_v20  ;;  %2387 = vmatpush.bf16.msrb.mxu2 %v5984_v49  ;;  %v5456_v53 = vld [vmem:[#allocation5 + $0x26c] sm:$0xf]  ;;  %v4347_v54 = vld [vmem:[#allocation5 + $0x284] sm:$0xf0]  ;;  %v6014_v10 = vor.u32 %v5400_v30, %v4123_v36 }
  0x3c   :  { %8452 = vst [vmem:[#allocation44_spill] sm:$0xff] %v5993_v22  ;;  %2400 = vmatpush.bf16.msrb.mxu3 %v5987_v0  ;;  %v4989_v2 = vld [vmem:[#allocation5 + $0x770] sm:$0xf]  ;;  %v5676_v15 = vld [vmem:[#allocation5 + $0x948] sm:$0xf0]  ;;  %v6019_v26 = vor.u32 %v5456_v53, %v4347_v54 }
  0x3d   :  { %8453 = vst [vmem:[#allocation45_spill] sm:$0xff] %v5996_v37  ;;  %v449_v39 = vld.sshfl [vmem:[#allocation1] sm:$0xff pattern:$0x73625140]  ;;  %2362 = vmatpush.bf16.msrb.mxu0 %v5991_v20  ;;  %v4961_v53 = vld [vmem:[#allocation5 + $0x738] sm:$0xf] }
  0x3e   :  { %v450_v40 = vld.sshfl [vmem:[#allocation1 + $0x8] sm:$0xff pattern:$0x73625140]  ;;  %8454 = vst [vmem:[#allocation46_spill] sm:$0xff] %v5999_v32  ;;  %2375 = vmatpush.bf16.msrb.mxu1 %v5993_v22  ;;  %v5213_v13 = vld [vmem:[#allocation5 + $0x930] sm:$0xf] }
  0x3f   :  { %v451_v24 = vld.sshfl [vmem:[#allocation1 + $0x10] sm:$0xff pattern:$0x73625140]  ;;  %v452_v4 = vld.sshfl [vmem:[#allocation1 + $0x18] sm:$0xff pattern:$0x73625140]  ;;  %v6001_v61 = vpack.c.bf16 %v450_v40, %v449_v39  ;;  %2388 = vmatpush.bf16.msrb.mxu2 %v5996_v37 }
  0x40   :  { %8455 = vst [vmem:[#allocation47_spill] sm:$0xff] %v6003_v47  ;;  %v6007_v63 = vpack.c.bf16 %v452_v4, %v451_v24  ;;  %v5620_v24 = vld [vmem:[#allocation5 + $0x788] sm:$0xf0]  ;;  %2401 = vmatpush.bf16.msrb.mxu3 %v5999_v32  ;;  %v5393_v40 = vld [vmem:[#allocation5 + $0x74] sm:$0xf] }
  0x41   :  { %8456 = vst [vmem:[#allocation48_spill] sm:$0xff] %v6005_v48  ;;  %v464_v60 = vunpack.c.l.bf16 %v6001_v61  ;;  %v465_v1 = vunpack.c.h.bf16 %v6001_v61  ;;  %v4095_v0 = vld [vmem:[#allocation5 + $0x8c] sm:$0xf0]  ;;  %v5449_v37 = vld [vmem:[#allocation5 + $0x234] sm:$0xf]  ;;  %2363 = vmatpush.bf16.msrb.mxu0 %v6003_v47  ;;  %v6024_v35 = vor.u32 %v5620_v24, %v4989_v2 }
  0x42   :  { %8457 = vst [vmem:[#allocation49_spill] sm:$0xff] %v6007_v63  ;;  %v466_v11 = vunpack.c.l.bf16 %v6007_v63  ;;  %v467_v4 = vunpack.c.h.bf16 %v6007_v63  ;;  %v4319_v30 = vld [vmem:[#allocation5 + $0x24c] sm:$0xf0]  ;;  %2376 = vmatpush.bf16.msrb.mxu1 %v6005_v48  ;;  %v6026_v63 = vor.u32 %v5676_v15, %v5213_v13  ;;  %v5669_v32 = vld [vmem:[#allocation5 + $0x910] sm:$0xf0] }
  0x43   :  { %8458 = vst [vmem:[#allocation50_spill] sm:$0xff] %v6014_v10  ;;  %v476_v39 = vrot.slane %v465_v1, 6  ;;  %2389 = vmatpush.bf16.msrb.mxu2 %v6014_v10  ;;  %v6030_v1 = vor.u32 %v5393_v40, %v4095_v0  ;;  %v6034_v14 = vor.u32 %v5449_v37, %v4319_v30  ;;  %v4067_v2 = vld [vmem:[#allocation5 + $0x54] sm:$0xf0]  ;;  %v6036_v24 = vld [vmem:[#allocation2 + $0x8] sm:$0xf] }
  0x44   :  { %8459 = vst [vmem:[#allocation51_spill] sm:$0xff] %v6019_v26  ;;  %v477_v49 = vrot.slane %v466_v11, 4  ;;  %v478_v52 = vrot.slane %v467_v4, 2  ;;  %v5613_v11 = vld [vmem:[#allocation5 + $0x750] sm:$0xf0]  ;;  %2402 = vmatpush.bf16.msrb.mxu3 %v6019_v26 }
  0x45   :  { %v481_v36 = vsel %vm480_vm0, %v464_v60, %v476_v39  ;;  %8460 = vst [vmem:[#allocation52_spill] sm:$0xff] %v6024_v35  ;;  %v5185_v4 = vld [vmem:[#allocation5 + $0x8f8] sm:$0xf]  ;;  %v5386_v60 = vld [vmem:[#allocation5 + $0x3c] sm:$0xf]  ;;  %2364 = vmatpush.bf16.msrb.mxu0 %v6024_v35 }
  0x46   :  { %8461 = vst [vmem:[#allocation53_spill] sm:$0xff] %v6026_v63  ;;  %v483_v54 = vsel %vm482_vm1, %v477_v49, %v478_v52  ;;  %v5442_v15 = vld [vmem:[#allocation5 + $0x1fc] sm:$0xf]  ;;  %v4291_v52 = vld [vmem:[#allocation5 + $0x214] sm:$0xf0]  ;;  %2377 = vmatpush.bf16.msrb.mxu1 %v6026_v63  ;;  %v6044_v49 = vor.u32 %v5613_v11, %v4961_v53  ;;  %v6046_v0 = vor.u32 %v5669_v32, %v5185_v4 }
  0x47   :  { %8462 = vst [vmem:[#allocation54_spill] sm:$0xff] %v6030_v1  ;;  %v485_v28 = vsel %vm484_vm2, %v481_v36, %v483_v54  ;;  %v4933_v37 = vld [vmem:[#allocation5 + $0x700] sm:$0xf]  ;;  %v5606_v39 = vld [vmem:[#allocation5 + $0x718] sm:$0xf0]  ;;  %2390 = vmatpush.bf16.msrb.mxu2 %v6030_v1  ;;  %v6053_v30 = vor.u32 %v5442_v15, %v4291_v52 }
  0x48   :  { %8463 = vst [vmem:[#allocation55_spill] sm:$0xff] %v6034_v14  ;;  %v6039_v13 = vsub.f32 %v5971_v31, %v485_v28  ;;  %v6050_v28 = vor.u32 %v5386_v60, %v4067_v2  ;;  %v5157_v31 = vld [vmem:[#allocation5 + $0x8c0] sm:$0xf]  ;;  %v5662_v40 = vld [vmem:[#allocation5 + $0x8d8] sm:$0xf0]  ;;  %2403 = vmatpush.bf16.msrb.mxu3 %v6034_v14  ;;  %v6057_v32 = vor.u32 %v5606_v39, %v4933_v37 }
  0x49   :  { %448 = vst [vmem:[#allocation1 + $0x20] ss:$4 sm:$0xff] %v6036_v24  ;;  %v5379_v36 = vld [vmem:[#allocation5 + $0x4] sm:$0xf]  ;;  %v4039_v54 = vld [vmem:[#allocation5 + $0x1c] sm:$0xf0]  ;;  %2365 = vmatpush.bf16.msrb.mxu0 %v6044_v49  ;;  %v6059_v4 = vor.u32 %v5662_v40, %v5157_v31 }
  0x4a   :  { %8464 = vst [vmem:[#allocation56_spill] sm:$0xff] %v6044_v49  ;;  %v5435_v53 = vld [vmem:[#allocation5 + $0x1c4] sm:$0xf]  ;;  %v4263_v11 = vld [vmem:[#allocation5 + $0x1dc] sm:$0xf0]  ;;  %2378 = vmatpush.bf16.msrb.mxu1 %v6046_v0  ;;  %v6062_v1 = vor.u32 %v5379_v36, %v4039_v54 }
  0x4b   :  { %8465 = vst [vmem:[#allocation57_spill] sm:$0xff] %v6046_v0  ;;  %v5540_v60 = vld [vmem:[#allocation5 + $0x50c] sm:$0xf]  ;;  %v4683_v2 = vld [vmem:[#allocation5 + $0x524] sm:$0xf0]  ;;  %2391 = vmatpush.bf16.msrb.mxu2 %v6050_v28  ;;  %v6065_v26 = vor.u32 %v5435_v53, %v4263_v11 }
  0x4c   :  { %493 = vst [vmem:[#allocation1] ss:$4 sm:$0xff] %v6039_v13  ;;  %v5596_v15 = vld [vmem:[#allocation5 + $0x6cc] sm:$0xf]  ;;  %v4907_v52 = vld [vmem:[#allocation5 + $0x6e4] sm:$0xf0]  ;;  %2404 = vmatpush.bf16.msrb.mxu3 %v6053_v30  ;;  %v6072_v53 = vor.u32 %v5540_v60, %v4683_v2 }
  0x4d   :  { %8466 = vst [vmem:[#allocation58_spill] sm:$0xff] %v6050_v28  ;;  %v5652_v14 = vld [vmem:[#allocation5 + $0x88c] sm:$0xf]  ;;  %v5131_v0 = vld [vmem:[#allocation5 + $0x8a4] sm:$0xf0]  ;;  %2366 = vmatpush.bf16.msrb.mxu0 %v6057_v32  ;;  %v6074_v11 = vor.u32 %v5596_v15, %v4907_v52 }
  0x4e   :  { %8467 = vst [vmem:[#allocation59_spill] sm:$0xff] %v6053_v30  ;;  %v5708_v37 = vld [vmem:[#allocation5 + $0xa4c] sm:$0xf]  ;;  %v5355_v39 = vld [vmem:[#allocation5 + $0xa64] sm:$0xf0]  ;;  %2379 = vmatpush.bf16.msrb.mxu1 %v6059_v4 }
  0x4f   :  { %8468 = vst [vmem:[#allocation60_spill] sm:$0xff] %v6057_v32  ;;  %2392 = vmatpush.bf16.msrb.mxu2 %v6062_v1  ;;  %v5533_v52 = vld [vmem:[#allocation5 + $0x4d4] sm:$0xf]  ;;  %v5552_v20 = vld [vmem:[#allocation5 + $0x568] sm:$0xf0] }
  0x50   :  { %8469 = vst [vmem:[#allocation61_spill] sm:$0xff] %v6059_v4  ;;  %v453_v10 = vld.sshfl [vmem:[#allocation1 + $0x20] sm:$0xff pattern:$0x73625140]  ;;  %2405 = vmatpush.bf16.msrb.mxu3 %v6065_v26  ;;  %v5645_v62 = vld [vmem:[#allocation5 + $0x854] sm:$0xf] }
  0x51   :  { %8470 = vst [vmem:[#allocation62_spill] sm:$0xff] %v6062_v1  ;;  %v454_v49 = vld.sshfl [vmem:[#allocation1 + $0x28] sm:$0xff pattern:$0x73625140] }
  0x52   :  { %8471 = vst [vmem:[#allocation63_spill] sm:$0xff] %v6065_v26  ;;  %v6067_v31 = vpack.c.bf16 %v454_v49, %v453_v10  ;;  %v6077_v10 = vor.u32 %v5652_v14, %v5131_v0  ;;  %v6080_v49 = vor.u32 %v5708_v37, %v5355_v39  ;;  %v4655_v0 = vld [vmem:[#allocation5 + $0x4ec] sm:$0xf0] }
  0x53   :  { %v496_v40 = vld.sshfl [vmem:[#allocation1] sm:$0xff pattern:$0x73625140]  ;;  %v497_v63 = vld.sshfl [vmem:[#allocation1 + $0x8] sm:$0xff pattern:$0x73625140] }
  0x54   :  { %8472 = vst [vmem:[#allocation64_spill] sm:$0xff] %v6067_v31  ;;  %v508_v36 = vpack.c.bf16 %v497_v63, %v496_v40  ;;  %v498_v54 = vld.sshfl [vmem:[#allocation1 + $0x10] sm:$0xff pattern:$0x73625140]  ;;  %v469_v30 = vunpack.c.h.bf16 %v6067_v31  ;;  %v468_v4 = vunpack.c.l.bf16 %v6067_v31 }
  0x55   :  { %v499_v28 = vld.sshfl [vmem:[#allocation1 + $0x18] sm:$0xff pattern:$0x73625140]  ;;  %8473 = vst [vmem:[#allocation65_spill] sm:$0xff] %v6072_v53 }
  0x56   :  { %8474 = vst [vmem:[#allocation66_spill] sm:$0xff] %v6074_v11  ;;  %v509_v35 = vpack.c.bf16 %v499_v28, %v498_v54  ;;  %v511_v63 = vunpack.c.l.bf16 %v508_v36  ;;  %v512_v40 = vunpack.c.h.bf16 %v508_v36  ;;  %v561_v32 = vunpack.c.l.b16 %v508_v36  ;;  %v5589_v28 = vld [vmem:[#allocation5 + $0x694] sm:$0xf] }
  0x57   :  { %8475 = vst [vmem:[#allocation67_spill] sm:$0xff] %v6077_v10  ;;  %v562_v9 = vunpack.c.h.b16 %v508_v36  ;;  %v479_v37 = vrot.slane %v469_v30, 6  ;;  %v4879_v36 = vld [vmem:[#allocation5 + $0x6ac] sm:$0xf0] }
  0x58   :  { %8476 = vst [vmem:[#allocation68_spill] sm:$0xff] %v6080_v49  ;;  %v513_v1 = vunpack.c.l.bf16 %v509_v35  ;;  %v514_v60 = vunpack.c.h.bf16 %v509_v35  ;;  %v563_v2 = vunpack.c.l.b16 %v509_v35  ;;  %v564_v15 = vunpack.c.h.b16 %v509_v35  ;;  %v5103_v35 = vld [vmem:[#allocation5 + $0x86c] sm:$0xf0] }
  0x59   :  { %v523_v48 = vrot.slane %v512_v40, 6  ;;  %v6083_v47 = vpack.c.b16 %v561_v32, %v561_v32  ;;  %v6085_v14 = vpack.c.b16 %v562_v9, %v562_v9  ;;  %v486_v9 = vsel %vm480_vm0, %v468_v4, %v479_v37  ;;  %v5701_v32 = vld [vmem:[#allocation5 + $0xa14] sm:$0xf]  ;;  %v5327_v40 = vld [vmem:[#allocation5 + $0xa2c] sm:$0xf0] }
  0x5a   :  { %v524_v39 = vrot.slane %v513_v1, 4  ;;  %v525_v54 = vrot.slane %v514_v60, 2  ;;  %v6087_v26 = vpack.c.b16 %v563_v2, %v563_v2  ;;  %v6089_v31 = vpack.c.b16 %v564_v15, %v564_v15  ;;  %v5526_v60 = vld [vmem:[#allocation5 + $0x49c] sm:$0xf]  ;;  %v4627_v2 = vld [vmem:[#allocation5 + $0x4b4] sm:$0xf0] }
  0x5b   :  { %v527_v58 = vsel %vm480_vm0, %v511_v63, %v523_v48  ;;  %2315 = vmatmul.bf16.vlgmr.msra.gmra.mxu0 %v6083_v47  ;;  %2328 = vmatmul.bf16.vlgmr.msra.gmra.mxu1 %v6085_v14  ;;  %v6099_v30 = vsub.f32 %v6036_v24, %v486_v9  ;;  %v6104_v63 = vor.u32 %v5533_v52, %v4655_v0  ;;  %v5582_v15 = vld [vmem:[#allocation5 + $0x65c] sm:$0xf]  ;;  %v5075_v0 = vld [vmem:[#allocation5 + $0x834] sm:$0xf0] }
  0x5c   :  { %v528_v1 = vsel %vm482_vm1, %v524_v39, %v525_v54  ;;  %2341 = vmatmul.bf16.vlgmr.msra.gmra.mxu2 %v6087_v26  ;;  %2354 = vmatmul.bf16.vlgmr.msra.gmra.mxu3 %v6089_v31  ;;  %v6106_v4 = vor.u32 %v5589_v28, %v4879_v36  ;;  %v6111_v24 = vor.u32 %v5645_v62, %v5103_v35  ;;  %v4851_v39 = vld [vmem:[#allocation5 + $0x674] sm:$0xf0]  ;;  %v5638_v52 = vld [vmem:[#allocation5 + $0x81c] sm:$0xf]  ;;  %v5519_v62 = vld [vmem:[#allocation5 + $0x464] sm:$0xf] }
  0x5d   :  { %v529_v48 = vsel %vm484_vm2, %v527_v58, %v528_v1  ;;  %2411 = vmatpush.bf16.msra.mxu0 %v6072_v53  ;;  %2424 = vmatpush.bf16.msra.mxu1 %v6074_v11  ;;  %8477 = vst [vmem:[#allocation69_spill] sm:$0xff] %v6104_v63  ;;  %v6114_v58 = vor.u32 %v5701_v32, %v5327_v40  ;;  %v5694_v28 = vld [vmem:[#allocation5 + $0x9dc] sm:$0xf]  ;;  %v5299_v54 = vld [vmem:[#allocation5 + $0x9f4] sm:$0xf0] }
  0x5e   :  { %8478 = vst [vmem:[#allocation70_spill] sm:$0xff] %v6106_v4  ;;  %v533_v37 = vsub.f32 %v6039_v13, %v529_v48  ;;  %2437 = vmatpush.bf16.msra.mxu2 %v6077_v10  ;;  %2450 = vmatpush.bf16.msra.mxu3 %v6080_v49  ;;  %v6118_v13 = vor.u32 %v5526_v60, %v4627_v2  ;;  %v4599_v35 = vld [vmem:[#allocation5 + $0x47c] sm:$0xf0]  ;;  %v5575_v40 = vld [vmem:[#allocation5 + $0x624] sm:$0xf] }
  0x5f   :  { %8479 = vst [vmem:[#allocation71_spill] sm:$0xff] %v6111_v24  ;;  %v6120_v36 = vor.u32 %v5582_v15, %v4851_v39  ;;  %v6124_v9 = vor.u32 %v5638_v52, %v5075_v0  ;;  %v6126_v32 = vor.u32 %v5694_v28, %v5299_v54  ;;  %v4823_v1 = vld [vmem:[#allocation5 + $0x63c] sm:$0xf0]  ;;  %v5631_v48 = vld [vmem:[#allocation5 + $0x7e4] sm:$0xf] }
  0x60   :  { %495 = vst [vmem:[#allocation1 + $0x20] ss:$4 sm:$0xff] %v6099_v30  ;;  %v5687_v49 = vld [vmem:[#allocation5 + $0x9a4] sm:$0xf]  ;;  %v5271_v10 = vld [vmem:[#allocation5 + $0x9bc] sm:$0xf0]  ;;  %v6132_v52 = vor.u32 %v5575_v40, %v4823_v1 }
  0x61   :  { %8480 = vst [vmem:[#allocation72_spill] sm:$0xff] %v6114_v58  ;;  %2412 = vmatpush.bf16.msra.mxu0 %v6104_v63  ;;  %2425 = vmatpush.bf16.msra.mxu1 %v6106_v4  ;;  %v5512_v60 = vld [vmem:[#allocation5 + $0x42c] sm:$0xf]  ;;  %v4571_v2 = vld [vmem:[#allocation5 + $0x444] sm:$0xf0]  ;;  %v6138_v54 = vor.u32 %v5687_v49, %v5271_v10 }
  0x62   :  { %537 = vst [vmem:[#allocation1] ss:$4 sm:$0xff] %v533_v37  ;;  %2438 = vmatpush.bf16.msra.mxu2 %v6111_v24  ;;  %2451 = vmatpush.bf16.msra.mxu3 %v6114_v58  ;;  %v5047_v37 = vld [vmem:[#allocation5 + $0x7fc] sm:$0xf0]  ;;  %v5568_v15 = vld [vmem:[#allocation5 + $0x5ec] sm:$0xf]  ;;  %v6130_v58 = vor.u32 %v5519_v62, %v4599_v35 }
  0x63   :  { %8481 = vst [vmem:[#allocation73_spill] sm:$0xff] %v6118_v13  ;;  %v6136_v28 = vor.u32 %v5631_v48, %v5047_v37  ;;  %v4795_v24 = vld [vmem:[#allocation5 + $0x604] sm:$0xf0]  ;;  %v5624_v63 = vld [vmem:[#allocation5 + $0x7ac] sm:$0xf] }
  0x64   :  { %8482 = vst [vmem:[#allocation74_spill] sm:$0xff] %v6120_v36  ;;  %v5019_v11 = vld [vmem:[#allocation5 + $0x7c4] sm:$0xf0]  ;;  %v5680_v53 = vld [vmem:[#allocation5 + $0x96c] sm:$0xf]  ;;  %v6144_v40 = vor.u32 %v5568_v15, %v4795_v24 }
  0x65   :  { %8483 = vst [vmem:[#allocation75_spill] sm:$0xff] %v6124_v9  ;;  %2413 = vmatpush.bf16.msra.mxu0 %v6118_v13  ;;  %2426 = vmatpush.bf16.msra.mxu1 %v6120_v36  ;;  %v5243_v13 = vld [vmem:[#allocation5 + $0x984] sm:$0xf0]  ;;  %v6146_v1 = vor.u32 %v5624_v63, %v5019_v11  ;;  %v5505_v10 = vld [vmem:[#allocation5 + $0x3f4] sm:$0xf] }
  0x66   :  { %8484 = vst [vmem:[#allocation76_spill] sm:$0xff] %v6126_v32  ;;  %2439 = vmatpush.bf16.msra.mxu2 %v6124_v9  ;;  %2452 = vmatpush.bf16.msra.mxu3 %v6126_v32  ;;  %v4543_v49 = vld [vmem:[#allocation5 + $0x40c] sm:$0xf0]  ;;  %v5561_v48 = vld [vmem:[#allocation5 + $0x5b4] sm:$0xf] }
  0x67   :  { %v500_v39 = vld.sshfl [vmem:[#allocation1 + $0x20] sm:$0xff pattern:$0x73625140]  ;;  %v501_v4 = vld.sshfl [vmem:[#allocation1 + $0x28] sm:$0xff pattern:$0x73625140] }
  0x68   :  { %8485 = vst [vmem:[#allocation77_spill] sm:$0xff] %v6130_v58  ;;  %v510_v0 = vpack.c.bf16 %v501_v4, %v500_v39  ;;  %v6142_v4 = vor.u32 %v5512_v60, %v4571_v2  ;;  %v4767_v60 = vld [vmem:[#allocation5 + $0x5cc] sm:$0xf0]  ;;  %v5617_v2 = vld [vmem:[#allocation5 + $0x774] sm:$0xf] }
  0x69   :  { %8486 = vst [vmem:[#allocation78_spill] sm:$0xff] %v6132_v52  ;;  %2414 = vmatpush.bf16.msra.mxu0 %v6130_v58  ;;  %2427 = vmatpush.bf16.msra.mxu1 %v6132_v52  ;;  %v4991_v24 = vld [vmem:[#allocation5 + $0x78c] sm:$0xf0]  ;;  %v5673_v15 = vld [vmem:[#allocation5 + $0x934] sm:$0xf] }
  0x6a   :  { %8487 = vst [vmem:[#allocation79_spill] sm:$0xff] %v6136_v28  ;;  %v515_v22 = vunpack.c.l.bf16 %v510_v0  ;;  %v516_v36 = vunpack.c.h.bf16 %v510_v0  ;;  %v565_v62 = vunpack.c.l.b16 %v510_v0  ;;  %v566_v35 = vunpack.c.h.b16 %v510_v0  ;;  %2440 = vmatpush.bf16.msra.mxu2 %v6136_v28  ;;  %2453 = vmatpush.bf16.msra.mxu3 %v6138_v54  ;;  %v5215_v11 = vld [vmem:[#allocation5 + $0x94c] sm:$0xf0]  ;;  %v4963_v28 = vld [vmem:[#allocation5 + $0x754] sm:$0xf0] }
  0x6b   :  { %8488 = vst [vmem:[#allocation80_spill] sm:$0xff] %v6138_v54  ;;  %v6154_v0 = vor.u32 %v5680_v53, %v5243_v13  ;;  %v6164_v53 = vor.u32 %v5561_v48, %v4767_v60  ;;  %v5498_v13 = vld [vmem:[#allocation5 + $0x3bc] sm:$0xf]  ;;  %v5491_v60 = vld [vmem:[#allocation5 + $0x384] sm:$0xf] }
  0x6c   :  { %8489 = vst [vmem:[#allocation81_spill] sm:$0xff] %v6142_v4  ;;  %v526_v37 = vrot.slane %v516_v36, 6  ;;  %v6148_v39 = vpack.c.b16 %v565_v62, %v565_v62  ;;  %v6150_v32 = vpack.c.b16 %v566_v35, %v566_v35  ;;  %v6162_v62 = vor.u32 %v5505_v10, %v4543_v49  ;;  %v4515_v35 = vld [vmem:[#allocation5 + $0x3d4] sm:$0xf0]  ;;  %v5554_v54 = vld [vmem:[#allocation5 + $0x57c] sm:$0xf]  ;;  %2393 = vmatmul.bf16.vlgmr.msrb.gmra.mxu2 %v6083_v47 }
  0x6d   :  { %8490 = vst [vmem:[#allocation82_spill] sm:$0xff] %v6144_v40  ;;  %2415 = vmatpush.bf16.msra.mxu0 %v6142_v4  ;;  %2428 = vmatpush.bf16.msra.mxu1 %v6144_v40  ;;  %v5666_v9 = vld [vmem:[#allocation5 + $0x8fc] sm:$0xf]  ;;  %v5187_v10 = vld [vmem:[#allocation5 + $0x914] sm:$0xf0]  ;;  %v6176_v49 = vor.u32 %v5498_v13, %v4515_v35 }
  0x6e   :  { %8491 = vst [vmem:[#allocation83_spill] sm:$0xff] %v6146_v1  ;;  %v530_v63 = vsel %vm480_vm0, %v515_v22, %v526_v37  ;;  %2367 = vmatmul.bf16.vlgmr.msrb.gmra.mxu0 %v6148_v39  ;;  %2380 = vmatmul.bf16.vlgmr.msrb.gmra.mxu1 %v6150_v32  ;;  %v6168_v22 = vor.u32 %v5617_v2, %v4991_v24  ;;  %v4487_v2 = vld [vmem:[#allocation5 + $0x39c] sm:$0xf0]  ;;  %v5547_v24 = vld [vmem:[#allocation5 + $0x544] sm:$0xf] }
  0x6f   :  { %8492 = vst [vmem:[#allocation84_spill] sm:$0xff] %v6154_v0  ;;  %v534_v36 = vsub.f32 %v6099_v30, %v530_v63  ;;  %2441 = vmatpush.bf16.msra.mxu2 %v6146_v1  ;;  %2454 = vmatpush.bf16.msra.mxu3 %v6154_v0  ;;  %v6170_v37 = vor.u32 %v5673_v15, %v5215_v11  ;;  %v4739_v30 = vld [vmem:[#allocation5 + $0x594] sm:$0xf0]  ;;  %v5610_v63 = vld [vmem:[#allocation5 + $0x73c] sm:$0xf] }
  0x70   :  { %8493 = vst [vmem:[#allocation85_spill] sm:$0xff] %v6162_v62  ;;  %2406 = vmatmul.bf16.vlgmr.msrb.gmra.mxu3 %v6085_v14  ;;  %v6178_v48 = vor.u32 %v5554_v54, %v4739_v30  ;;  %v6182_v15 = vor.u32 %v5610_v63, %v4963_v28  ;;  %v6184_v11 = vor.u32 %v5666_v9, %v5187_v10  ;;  %v5603_v0 = vld [vmem:[#allocation5 + $0x704] sm:$0xf]  ;;  %v4935_v1 = vld [vmem:[#allocation5 + $0x71c] sm:$0xf0] }
  0x71   :  { %8494 = vst [vmem:[#allocation86_spill] sm:$0xff] %v6164_v53  ;;  %2416 = vmatpush.bf16.msra.mxu0 %v6162_v62  ;;  %2429 = vmatpush.bf16.msra.mxu1 %v6164_v53  ;;  %v4241_v62 = vld [vmem:[#allocation5 + $0x190] sm:$0xf]  ;;  %v5432_v53 = vld [vmem:[#allocation5 + $0x1a8] sm:$0xf0]  ;;  %v6194_v63 = vor.u32 %v5603_v0, %v4935_v1 }
  0x72   :  { %8495 = vst [vmem:[#allocation87_spill] sm:$0xff] %v6168_v22  ;;  %v4465_v13 = vld [vmem:[#allocation5 + $0x350] sm:$0xf]  ;;  %v5488_v35 = vld [vmem:[#allocation5 + $0x368] sm:$0xf0]  ;;  %v6196_v10 = vor.u32 %v5432_v53, %v4241_v62 }
  0x73   :  { %8496 = vst [vmem:[#allocation88_spill] sm:$0xff] %v6170_v37  ;;  %2442 = vmatpush.bf16.msra.mxu2 %v6168_v22  ;;  %2455 = vmatpush.bf16.msra.mxu3 %v6170_v37  ;;  %v4689_v54 = vld [vmem:[#allocation5 + $0x510] sm:$0xf]  ;;  %v5544_v30 = vld [vmem:[#allocation5 + $0x528] sm:$0xf0]  ;;  %v6188_v22 = vor.u32 %v5491_v60, %v4487_v2  ;;  %v6198_v52 = vor.u32 %v5488_v35, %v4465_v13 }
  0x74   :  { %539 = vst [vmem:[#allocation1 + $0x20] ss:$4 sm:$0xff] %v534_v36  ;;  %v4711_v36 = vld [vmem:[#allocation5 + $0x55c] sm:$0xf0]  ;;  %v5659_v28 = vld [vmem:[#allocation5 + $0x8c4] sm:$0xf] }
  0x75   :  { %8497 = vst [vmem:[#allocation89_spill] sm:$0xff] %v6176_v49  ;;  %2417 = vmatpush.bf16.msra.mxu0 %v6176_v49  ;;  %2430 = vmatpush.bf16.msra.mxu1 %v6178_v48  ;;  %v6190_v37 = vor.u32 %v5547_v24, %v4711_v36  ;;  %v5159_v9 = vld [vmem:[#allocation5 + $0x8dc] sm:$0xf0]  ;;  %v4913_v40 = vld [vmem:[#allocation5 + $0x6d0] sm:$0xf]  ;;  %v6200_v49 = vor.u32 %v5544_v30, %v4689_v54 }
  0x76   :  { %8498 = vst [vmem:[#allocation90_spill] sm:$0xff] %v6178_v48  ;;  %v5600_v4 = vld [vmem:[#allocation5 + $0x6e8] sm:$0xf0]  ;;  %v4213_v60 = vld [vmem:[#allocation5 + $0x158] sm:$0xf]  ;;  %v6202_v36 = vor.u32 %v5659_v28, %v5159_v9 }
  0x77   :  { %8499 = vst [vmem:[#allocation91_spill] sm:$0xff] %v6182_v15  ;;  %2443 = vmatpush.bf16.msra.mxu2 %v6182_v15  ;;  %2456 = vmatpush.bf16.msra.mxu3 %v6184_v11  ;;  %v5425_v2 = vld [vmem:[#allocation5 + $0x170] sm:$0xf0]  ;;  %v4437_v24 = vld [vmem:[#allocation5 + $0x318] sm:$0xf]  ;;  %v6206_v1 = vor.u32 %v5600_v4, %v4913_v40 }
  0x78   :  { %8500 = vst [vmem:[#allocation92_spill] sm:$0xff] %v6184_v11  ;;  %v5481_v48 = vld [vmem:[#allocation5 + $0x330] sm:$0xf0]  ;;  %v4661_v58 = vld [vmem:[#allocation5 + $0x4d8] sm:$0xf]  ;;  %v6210_v0 = vor.u32 %v5425_v2, %v4213_v60 }
  0x79   :  { %8501 = vst [vmem:[#allocation93_spill] sm:$0xff] %v6188_v22  ;;  %v5537_v15 = vld [vmem:[#allocation5 + $0x4f0] sm:$0xf0]  ;;  %2418 = vmatpush.bf16.msra.mxu0 %v6188_v22  ;;  %2431 = vmatpush.bf16.msra.mxu1 %v6190_v37  ;;  %v4885_v62 = vld [vmem:[#allocation5 + $0x698] sm:$0xf]  ;;  %v6214_v13 = vor.u32 %v5481_v48, %v4437_v24 }
  0x7a   :  { %8502 = vst [vmem:[#allocation94_spill] sm:$0xff] %v6190_v37  ;;  %v5593_v53 = vld [vmem:[#allocation5 + $0x6b0] sm:$0xf0]  ;;  %v6216_v35 = vor.u32 %v5537_v15, %v4661_v58  ;;  %v4185_v54 = vld [vmem:[#allocation5 + $0x120] sm:$0xf] }
  0x7b   :  { %8503 = vst [vmem:[#allocation95_spill] sm:$0xff] %v6194_v63  ;;  %2444 = vmatpush.bf16.msra.mxu2 %v6194_v63  ;;  %v5418_v30 = vld [vmem:[#allocation5 + $0x138] sm:$0xf0]  ;;  %v4409_v4 = vld [vmem:[#allocation5 + $0x2e0] sm:$0xf]  ;;  %2457 = vmatpush.bf16.msra.mxu3 %v6202_v36  ;;  %v6221_v60 = vor.u32 %v5593_v53, %v4885_v62 }
  0x7c   :  { %8504 = vst [vmem:[#allocation96_spill] sm:$0xff] %v6196_v10  ;;  %v5474_v40 = vld [vmem:[#allocation5 + $0x2f8] sm:$0xf0]  ;;  %v4633_v28 = vld [vmem:[#allocation5 + $0x4a0] sm:$0xf]  ;;  %v6225_v58 = vor.u32 %v5418_v30, %v4185_v54 }
  0x7d   :  { %8505 = vst [vmem:[#allocation97_spill] sm:$0xff] %v6198_v52  ;;  %2463 = vmatpush.bf16.msrb.mxu0 %v6196_v10  ;;  %2476 = vmatpush.bf16.msrb.mxu1 %v6198_v52  ;;  %v5530_v9 = vld [vmem:[#allocation5 + $0x4b8] sm:$0xf0]  ;;  %v4857_v48 = vld [vmem:[#allocation5 + $0x660] sm:$0xf]  ;;  %v6229_v2 = vor.u32 %v5474_v40, %v4409_v4 }
  0x7e   :  { %8506 = vst [vmem:[#allocation98_spill] sm:$0xff] %v6200_v49  ;;  %2419 = vmatmul.bf16.vlgmr.msra.gmra.mxu0 %v6087_v26  ;;  %2432 = vmatmul.bf16.vlgmr.msra.gmra.mxu1 %v6089_v31  ;;  %v5586_v15 = vld [vmem:[#allocation5 + $0x678] sm:$0xf0]  ;;  %v6231_v24 = vor.u32 %v5530_v9, %v4633_v28  ;;  %v4381_v62 = vld [vmem:[#allocation5 + $0x2a8] sm:$0xf] }
  0x7f   :  { %8507 = vst [vmem:[#allocation99_spill] sm:$0xff] %v6202_v36  ;;  %2489 = vmatpush.bf16.msrb.mxu2 %v6200_v49  ;;  %2502 = vmatpush.bf16.msrb.mxu3 %v6206_v1  ;;  %v4157_v49 = vld [vmem:[#allocation5 + $0xe8] sm:$0xf]  ;;  %v5467_v53 = vld [vmem:[#allocation5 + $0x2c0] sm:$0xf0]  ;;  %v6236_v54 = vor.u32 %v5586_v15, %v4857_v48 }
  0x80   :  { %8508 = vst [vmem:[#allocation100_spill] sm:$0xff] %v6206_v1  ;;  %v5411_v1 = vld [vmem:[#allocation5 + $0x100] sm:$0xf0]  ;;  %v4605_v36 = vld [vmem:[#allocation5 + $0x468] sm:$0xf]  ;;  %2445 = vmatmul.bf16.vlgmr.msra.gmra.mxu2 %v6148_v39  ;;  %2458 = vmatmul.bf16.vlgmr.msra.gmra.mxu3 %v6150_v32  ;;  %v6243_v28 = vor.u32 %v5467_v53, %v4381_v62 }
  0x81   :  { %8509 = vst [vmem:[#allocation101_spill] sm:$0xff] %v6210_v0  ;;  %2464 = vmatpush.bf16.msrb.mxu0 %v6210_v0  ;;  %2477 = vmatpush.bf16.msrb.mxu1 %v6214_v13  ;;  %v5523_v63 = vld [vmem:[#allocation5 + $0x480] sm:$0xf0]  ;;  %v6239_v30 = vor.u32 %v5411_v1, %v4157_v49  ;;  %v4829_v4 = vld [vmem:[#allocation5 + $0x628] sm:$0xf] }
  0x82   :  { %8510 = vst [vmem:[#allocation102_spill] sm:$0xff] %v6214_v13  ;;  %v5579_v40 = vld [vmem:[#allocation5 + $0x640] sm:$0xf0]  ;;  %v6245_v9 = vor.u32 %v5523_v63, %v4605_v36  ;;  %v5404_v11 = vld [vmem:[#allocation5 + $0xc8] sm:$0xf0] }
  0x83   :  { %8511 = vst [vmem:[#allocation103_spill] sm:$0xff] %v6216_v35  ;;  %2490 = vmatpush.bf16.msrb.mxu2 %v6216_v35  ;;  %2503 = vmatpush.bf16.msrb.mxu3 %v6221_v60  ;;  %v4129_v35 = vld [vmem:[#allocation5 + $0xb0] sm:$0xf]  ;;  %v5516_v15 = vld [vmem:[#allocation5 + $0x448] sm:$0xf0]  ;;  %v6248_v49 = vor.u32 %v5579_v40, %v4829_v4 }
  0x84   :  { %8512 = vst [vmem:[#allocation104_spill] sm:$0xff] %v6221_v60  ;;  %v4353_v13 = vld [vmem:[#allocation5 + $0x270] sm:$0xf]  ;;  %v5460_v60 = vld [vmem:[#allocation5 + $0x288] sm:$0xf0]  ;;  %v6251_v1 = vor.u32 %v5404_v11, %v4129_v35 }
  0x85   :  { %8513 = vst [vmem:[#allocation105_spill] sm:$0xff] %v6225_v58  ;;  %2465 = vmatpush.bf16.msrb.mxu0 %v6225_v58  ;;  %2478 = vmatpush.bf16.msrb.mxu1 %v6229_v2  ;;  %v4577_v48 = vld [vmem:[#allocation5 + $0x430] sm:$0xf]  ;;  %v6255_v63 = vor.u32 %v5460_v60, %v4353_v13  ;;  %v4101_v62 = vld [vmem:[#allocation5 + $0x78] sm:$0xf] }
  0x86   :  { %8514 = vst [vmem:[#allocation106_spill] sm:$0xff] %v6229_v2  ;;  %v4801_v2 = vld [vmem:[#allocation5 + $0x5f0] sm:$0xf]  ;;  %v6257_v36 = vor.u32 %v5516_v15, %v4577_v48  ;;  %v5397_v53 = vld [vmem:[#allocation5 + $0x90] sm:$0xf0] }
  0x87   :  { %8515 = vst [vmem:[#allocation107_spill] sm:$0xff] %v6231_v24  ;;  %2491 = vmatpush.bf16.msrb.mxu2 %v6231_v24  ;;  %2504 = vmatpush.bf16.msrb.mxu3 %v6236_v54  ;;  %v5572_v24 = vld [vmem:[#allocation5 + $0x608] sm:$0xf0]  ;;  %v4325_v58 = vld [vmem:[#allocation5 + $0x238] sm:$0xf]  ;;  %v6263_v35 = vor.u32 %v5397_v53, %v4101_v62 }
  0x88   :  { %8516 = vst [vmem:[#allocation108_spill] sm:$0xff] %v6236_v54  ;;  %v5453_v54 = vld [vmem:[#allocation5 + $0x250] sm:$0xf0]  ;;  %v4549_v4 = vld [vmem:[#allocation5 + $0x3f8] sm:$0xf]  ;;  %v6260_v11 = vor.u32 %v5572_v24, %v4801_v2 }
  0x89   :  { %8517 = vst [vmem:[#allocation109_spill] sm:$0xff] %v6239_v30  ;;  %2466 = vmatpush.bf16.msrb.mxu0 %v6239_v30  ;;  %2479 = vmatpush.bf16.msrb.mxu1 %v6243_v28  ;;  %v5509_v40 = vld [vmem:[#allocation5 + $0x410] sm:$0xf0]  ;;  %v6267_v13 = vor.u32 %v5453_v54, %v4325_v58  ;;  %v4073_v48 = vld [vmem:[#allocation5 + $0x40] sm:$0xf] }
  0x8a   :  { %8518 = vst [vmem:[#allocation110_spill] sm:$0xff] %v6243_v28  ;;  %v4773_v28 = vld [vmem:[#allocation5 + $0x5b8] sm:$0xf]  ;;  %v6269_v60 = vor.u32 %v5509_v40, %v4549_v4  ;;  %v5390_v15 = vld [vmem:[#allocation5 + $0x58] sm:$0xf0] }
  0x8b   :  { %8519 = vst [vmem:[#allocation111_spill] sm:$0xff] %v6245_v9  ;;  %2492 = vmatpush.bf16.msrb.mxu2 %v6245_v9  ;;  %2505 = vmatpush.bf16.msrb.mxu3 %v6248_v49  ;;  %v5565_v9 = vld [vmem:[#allocation5 + $0x5d0] sm:$0xf0]  ;;  %v4297_v30 = vld [vmem:[#allocation5 + $0x200] sm:$0xf] }
  0x8c   :  { %8520 = vst [vmem:[#allocation112_spill] sm:$0xff] %v6248_v49  ;;  %v5446_v49 = vld [vmem:[#allocation5 + $0x218] sm:$0xf0]  ;;  %v4521_v2 = vld [vmem:[#allocation5 + $0x3c0] sm:$0xf]  ;;  %v6272_v62 = vor.u32 %v5565_v9, %v4773_v28 }
  0x8d   :  { %8521 = vst [vmem:[#allocation113_spill] sm:$0xff] %v6251_v1  ;;  %2467 = vmatpush.bf16.msrb.mxu0 %v6251_v1  ;;  %2480 = vmatpush.bf16.msrb.mxu1 %v6255_v63  ;;  %v5502_v24 = vld [vmem:[#allocation5 + $0x3d8] sm:$0xf0]  ;;  %v4745_v53 = vld [vmem:[#allocation5 + $0x580] sm:$0xf]  ;;  %v6279_v4 = vor.u32 %v5446_v49, %v4297_v30 }
  0x8e   :  { %8522 = vst [vmem:[#allocation114_spill] sm:$0xff] %v6255_v63  ;;  %v6275_v63 = vor.u32 %v5390_v15, %v4073_v48  ;;  %v4045_v58 = vld [vmem:[#allocation5 + $0x8] sm:$0xf]  ;;  %v5383_v54 = vld [vmem:[#allocation5 + $0x20] sm:$0xf0]  ;;  %v6281_v40 = vor.u32 %v5502_v24, %v4521_v2 }
  0x8f   :  { %8523 = vst [vmem:[#allocation115_spill] sm:$0xff] %v6257_v36  ;;  %2493 = vmatpush.bf16.msrb.mxu2 %v6257_v36  ;;  %2506 = vmatpush.bf16.msrb.mxu3 %v6260_v11  ;;  %v5558_v36 = vld [vmem:[#allocation5 + $0x598] sm:$0xf0]  ;;  %v4269_v1 = vld [vmem:[#allocation5 + $0x1c8] sm:$0xf] }
  0x90   :  { %8524 = vst [vmem:[#allocation116_spill] sm:$0xff] %v6260_v11  ;;  %v5439_v11 = vld [vmem:[#allocation5 + $0x1e0] sm:$0xf0]  ;;  %v4493_v28 = vld [vmem:[#allocation5 + $0x388] sm:$0xf]  ;;  %v6284_v48 = vor.u32 %v5558_v36, %v4745_v53 }
  0x91   :  { %8525 = vst [vmem:[#allocation117_spill] sm:$0xff] %v6263_v35  ;;  %2468 = vmatpush.bf16.msrb.mxu0 %v6263_v35  ;;  %2481 = vmatpush.bf16.msrb.mxu1 %v6267_v13  ;;  %v5495_v9 = vld [vmem:[#allocation5 + $0x3a0] sm:$0xf0]  ;;  %v5137_v0 = vld [vmem:[#allocation5 + $0x890] sm:$0xf]  ;;  %v6291_v24 = vor.u32 %v5439_v11, %v4269_v1 }
  0x92   :  { %8526 = vst [vmem:[#allocation118_spill] sm:$0xff] %v6267_v13  ;;  %v5656_v52 = vld [vmem:[#allocation5 + $0x8a8] sm:$0xf0]  ;;  %v5361_v15 = vld [vmem:[#allocation5 + $0xa50] sm:$0xf]  ;;  %v6293_v13 = vor.u32 %v5495_v9, %v4493_v28 }
  0x93   :  { %8527 = vst [vmem:[#allocation119_spill] sm:$0xff] %v6269_v60  ;;  %2494 = vmatpush.bf16.msrb.mxu2 %v6269_v60  ;;  %2507 = vmatpush.bf16.msrb.mxu3 %v6272_v62  ;;  %v5712_v35 = vld [vmem:[#allocation5 + $0xa68] sm:$0xf0]  ;;  %v5429_v37 = vld [vmem:[#allocation5 + $0x194] sm:$0xf]  ;;  %v6287_v60 = vor.u32 %v5383_v54, %v4045_v58 }
  0x94   :  { %8528 = vst [vmem:[#allocation120_spill] sm:$0xff] %v6272_v62  ;;  %v4243_v30 = vld [vmem:[#allocation5 + $0x1ac] sm:$0xf0]  ;;  %v4717_v49 = vld [vmem:[#allocation5 + $0x548] sm:$0xf]  ;;  %v6295_v62 = vor.u32 %v5656_v52, %v5137_v0  ;;  %v6297_v10 = vor.u32 %v5712_v35, %v5361_v15 }
  0x95   :  { %8529 = vst [vmem:[#allocation121_spill] sm:$0xff] %v6275_v63  ;;  %2469 = vmatpush.bf16.msrb.mxu0 %v6275_v63  ;;  %v5551_v2 = vld [vmem:[#allocation5 + $0x560] sm:$0xf0]  ;;  %2482 = vmatpush.bf16.msrb.mxu1 %v6279_v4  ;;  %v5485_v36 = vld [vmem:[#allocation5 + $0x354] sm:$0xf]  ;;  %v6300_v58 = vor.u32 %v5429_v37, %v4243_v30 }
  0x96   :  { %8530 = vst [vmem:[#allocation122_spill] sm:$0xff] %v6279_v4  ;;  %v4467_v53 = vld [vmem:[#allocation5 + $0x36c] sm:$0xf0]  ;;  %v5109_v63 = vld [vmem:[#allocation5 + $0x858] sm:$0xf]  ;;  %v6302_v54 = vor.u32 %v5551_v2, %v4717_v49 }
  0x97   :  { %8531 = vst [vmem:[#allocation123_spill] sm:$0xff] %v6281_v40  ;;  %2495 = vmatpush.bf16.msrb.mxu2 %v6281_v40  ;;  %2508 = vmatpush.bf16.msrb.mxu3 %v6284_v48  ;;  %v5649_v4 = vld [vmem:[#allocation5 + $0x870] sm:$0xf0]  ;;  %v5333_v22 = vld [vmem:[#allocation5 + $0xa18] sm:$0xf]  ;;  %v6305_v1 = vor.u32 %v5485_v36, %v4467_v53 }
  0x98   :  { %8532 = vst [vmem:[#allocation124_spill] sm:$0xff] %v6284_v48  ;;  %v5705_v40 = vld [vmem:[#allocation5 + $0xa30] sm:$0xf0]  ;;  %v5422_v11 = vld [vmem:[#allocation5 + $0x15c] sm:$0xf]  ;;  %v6311_v37 = vor.u32 %v5649_v4, %v5109_v63 }
  0x99   :  { %8533 = vst [vmem:[#allocation125_spill] sm:$0xff] %v6287_v60  ;;  %2470 = vmatpush.bf16.msrb.mxu0 %v6287_v60  ;;  %v4215_v28 = vld [vmem:[#allocation5 + $0x174] sm:$0xf0]  ;;  %2483 = vmatpush.bf16.msrb.mxu1 %v6291_v24  ;;  %v5478_v52 = vld [vmem:[#allocation5 + $0x31c] sm:$0xf]  ;;  %v6313_v35 = vor.u32 %v5705_v40, %v5333_v22 }
  0x9a   :  { %8534 = vst [vmem:[#allocation126_spill] sm:$0xff] %v6291_v24  ;;  %v4439_v0 = vld [vmem:[#allocation5 + $0x334] sm:$0xf0]  ;;  %v5081_v9 = vld [vmem:[#allocation5 + $0x820] sm:$0xf]  ;;  %v6317_v15 = vor.u32 %v5422_v11, %v4215_v28 }
  0x9b   :  { %8535 = vst [vmem:[#allocation127_spill] sm:$0xff] %v6293_v13  ;;  %2496 = vmatpush.bf16.msrb.mxu2 %v6293_v13  ;;  %2509 = vmatpush.bf16.msrb.mxu3 %v6302_v54  ;;  %v5642_v30 = vld [vmem:[#allocation5 + $0x838] sm:$0xf0]  ;;  %v5305_v49 = vld [vmem:[#allocation5 + $0x9e0] sm:$0xf]  ;;  %v6320_v36 = vor.u32 %v5478_v52, %v4439_v0 }
  0x9c   :  { %8536 = vst [vmem:[#allocation128_spill] sm:$0xff] %v6295_v62  ;;  %v5698_v2 = vld [vmem:[#allocation5 + $0x9f8] sm:$0xf0]  ;;  %v5415_v53 = vld [vmem:[#allocation5 + $0x124] sm:$0xf]  ;;  %2471 = vmatmul.bf16.vlgmr.msrb.gmra.mxu0 %v6083_v47  ;;  %2484 = vmatmul.bf16.vlgmr.msrb.gmra.mxu1 %v6085_v14  ;;  %v6327_v4 = vor.u32 %v5642_v30, %v5081_v9 }
  0x9d   :  { %8537 = vst [vmem:[#allocation129_spill] sm:$0xff] %v6297_v10  ;;  %2515 = vmatpush.bf16.msra.mxu0 %v6295_v62  ;;  %2528 = vmatpush.bf16.msra.mxu1 %v6297_v10  ;;  %v4187_v13 = vld [vmem:[#allocation5 + $0x13c] sm:$0xf0]  ;;  %v5471_v22 = vld [vmem:[#allocation5 + $0x2e4] sm:$0xf]  ;;  %v6329_v40 = vor.u32 %v5698_v2, %v5305_v49 }
  0x9e   :  { %8538 = vst [vmem:[#allocation130_spill] sm:$0xff] %v6300_v58  ;;  %v4411_v63 = vld [vmem:[#allocation5 + $0x2fc] sm:$0xf0]  ;;  %2497 = vmatmul.bf16.vlgmr.msrb.gmra.mxu2 %v6087_v26  ;;  %v5053_v11 = vld [vmem:[#allocation5 + $0x7e8] sm:$0xf]  ;;  %v6332_v28 = vor.u32 %v5415_v53, %v4187_v13  ;;  %2510 = vmatmul.bf16.vlgmr.msrb.gmra.mxu3 %v6089_v31 }
  0x9f   :  { %8539 = vst [vmem:[#allocation131_spill] sm:$0xff] %v6302_v54  ;;  %2541 = vmatpush.bf16.msra.mxu2 %v6300_v58  ;;  %2554 = vmatpush.bf16.msra.mxu3 %v6305_v1  ;;  %v5635_v52 = vld [vmem:[#allocation5 + $0x800] sm:$0xf0]  ;;  %v5277_v0 = vld [vmem:[#allocation5 + $0x9a8] sm:$0xf]  ;;  %v6336_v58 = vor.u32 %v5471_v22, %v4411_v63 }
  0xa0   :  { %8540 = vst [vmem:[#allocation132_spill] sm:$0xff] %v6305_v1  ;;  %v5691_v1 = vld [vmem:[#allocation5 + $0x9c0] sm:$0xf0]  ;;  %v5408_v54 = vld [vmem:[#allocation5 + $0xec] sm:$0xf]  ;;  %v6340_v49 = vor.u32 %v5635_v52, %v5053_v11 }
  0xa1   :  { %8541 = vst [vmem:[#allocation133_spill] sm:$0xff] %v6311_v37  ;;  %2516 = vmatpush.bf16.msra.mxu0 %v6311_v37  ;;  %2529 = vmatpush.bf16.msra.mxu1 %v6313_v35  ;;  %v4159_v48 = vld [vmem:[#allocation5 + $0x104] sm:$0xf0]  ;;  %v5464_v9 = vld [vmem:[#allocation5 + $0x2ac] sm:$0xf]  ;;  %v6342_v13 = vor.u32 %v5691_v1, %v5277_v0 }
  0xa2   :  { %8542 = vst [vmem:[#allocation134_spill] sm:$0xff] %v6313_v35  ;;  %v4383_v30 = vld [vmem:[#allocation5 + $0x2c4] sm:$0xf0]  ;;  %v5025_v2 = vld [vmem:[#allocation5 + $0x7b0] sm:$0xf]  ;;  %v6345_v53 = vor.u32 %v5408_v54, %v4159_v48 }
  0xa3   :  { %8543 = vst [vmem:[#allocation135_spill] sm:$0xff] %v6317_v15  ;;  %2542 = vmatpush.bf16.msra.mxu2 %v6317_v15  ;;  %2555 = vmatpush.bf16.msra.mxu3 %v6320_v36  ;;  %v5249_v22 = vld [vmem:[#allocation5 + $0x970] sm:$0xf]  ;;  %v5684_v63 = vld [vmem:[#allocation5 + $0x988] sm:$0xf0]  ;;  %v6348_v15 = vor.u32 %v5464_v9, %v4383_v30 }
  0xa4   :  { %8544 = vst [vmem:[#allocation136_spill] sm:$0xff] %v6320_v36  ;;  %v5628_v36 = vld [vmem:[#allocation5 + $0x7c8] sm:$0xf0]  ;;  %v5401_v35 = vld [vmem:[#allocation5 + $0xb4] sm:$0xf]  ;;  %v6354_v11 = vor.u32 %v5684_v63, %v5249_v22 }
  0xa5   :  { %8545 = vst [vmem:[#allocation137_spill] sm:$0xff] %v6327_v4  ;;  %2517 = vmatpush.bf16.msra.mxu0 %v6327_v4  ;;  %2530 = vmatpush.bf16.msra.mxu1 %v6329_v40  ;;  %v4131_v4 = vld [vmem:[#allocation5 + $0xcc] sm:$0xf0]  ;;  %v5457_v37 = vld [vmem:[#allocation5 + $0x274] sm:$0xf]  ;;  %v6352_v1 = vor.u32 %v5628_v36, %v5025_v2 }
  0xa6   :  { %8546 = vst [vmem:[#allocation138_spill] sm:$0xff] %v6329_v40  ;;  %v4355_v40 = vld [vmem:[#allocation5 + $0x28c] sm:$0xf0]  ;;  %v4997_v48 = vld [vmem:[#allocation5 + $0x778] sm:$0xf]  ;;  %v6357_v54 = vor.u32 %v5401_v35, %v4131_v4 }
  0xa7   :  { %8547 = vst [vmem:[#allocation139_spill] sm:$0xff] %v6332_v28  ;;  %2543 = vmatpush.bf16.msra.mxu2 %v6332_v28  ;;  %2556 = vmatpush.bf16.msra.mxu3 %v6336_v58  ;;  %v5621_v52 = vld [vmem:[#allocation5 + $0x790] sm:$0xf0]  ;;  %v5221_v0 = vld [vmem:[#allocation5 + $0x938] sm:$0xf]  ;;  %v6360_v30 = vor.u32 %v5457_v37, %v4355_v40 }
  0xa8   :  { %8548 = vst [vmem:[#allocation140_spill] sm:$0xff] %v6336_v58  ;;  %v5677_v9 = vld [vmem:[#allocation5 + $0x950] sm:$0xf0]  ;;  %v5394_v58 = vld [vmem:[#allocation5 + $0x7c] sm:$0xf]  ;;  %v6364_v36 = vor.u32 %v5621_v52, %v4997_v48 }
  0xa9   :  { %8549 = vst [vmem:[#allocation141_spill] sm:$0xff] %v6340_v49  ;;  %2518 = vmatpush.bf16.msra.mxu0 %v6340_v49  ;;  %2531 = vmatpush.bf16.msra.mxu1 %v6342_v13  ;;  %v4103_v28 = vld [vmem:[#allocation5 + $0x94] sm:$0xf0]  ;;  %v5450_v49 = vld [vmem:[#allocation5 + $0x23c] sm:$0xf]  ;;  %v6366_v2 = vor.u32 %v5677_v9, %v5221_v0 }
  0xaa   :  { %8550 = vst [vmem:[#allocation142_spill] sm:$0xff] %v6342_v13  ;;  %v4327_v13 = vld [vmem:[#allocation5 + $0x254] sm:$0xf0]  ;;  %v4969_v35 = vld [vmem:[#allocation5 + $0x740] sm:$0xf]  ;;  %v6369_v4 = vor.u32 %v5394_v58, %v4103_v28 }
  0xab   :  { %8551 = vst [vmem:[#allocation143_spill] sm:$0xff] %v6345_v53  ;;  %2544 = vmatpush.bf16.msra.mxu2 %v6345_v53  ;;  %2557 = vmatpush.bf16.msra.mxu3 %v6348_v15  ;;  %v5614_v22 = vld [vmem:[#allocation5 + $0x758] sm:$0xf0]  ;;  %v5193_v37 = vld [vmem:[#allocation5 + $0x900] sm:$0xf]  ;;  %v6372_v63 = vor.u32 %v5450_v49, %v4327_v13 }
  0xac   :  { %8552 = vst [vmem:[#allocation144_spill] sm:$0xff] %v6348_v15  ;;  %v5670_v40 = vld [vmem:[#allocation5 + $0x918] sm:$0xf0]  ;;  %v5387_v15 = vld [vmem:[#allocation5 + $0x44] sm:$0xf]  ;;  %v6376_v48 = vor.u32 %v5614_v22, %v4969_v35 }
  0xad   :  { %8553 = vst [vmem:[#allocation145_spill] sm:$0xff] %v6352_v1  ;;  %2519 = vmatpush.bf16.msra.mxu0 %v6352_v1  ;;  %2532 = vmatpush.bf16.msra.mxu1 %v6354_v11  ;;  %v4075_v53 = vld [vmem:[#allocation5 + $0x5c] sm:$0xf0]  ;;  %v5443_v1 = vld [vmem:[#allocation5 + $0x204] sm:$0xf]  ;;  %v6378_v52 = vor.u32 %v5670_v40, %v5193_v37 }
  0xae   :  { %8554 = vst [vmem:[#allocation146_spill] sm:$0xff] %v6354_v11  ;;  %v4299_v11 = vld [vmem:[#allocation5 + $0x21c] sm:$0xf0]  ;;  %v4941_v58 = vld [vmem:[#allocation5 + $0x708] sm:$0xf]  ;;  %v6381_v9 = vor.u32 %v5387_v15, %v4075_v53 }
  0xaf   :  { %8555 = vst [vmem:[#allocation147_spill] sm:$0xff] %v6357_v54  ;;  %2545 = vmatpush.bf16.msra.mxu2 %v6357_v54  ;;  %2558 = vmatpush.bf16.msra.mxu3 %v6360_v30  ;;  %v5607_v28 = vld [vmem:[#allocation5 + $0x720] sm:$0xf0]  ;;  %v5165_v0 = vld [vmem:[#allocation5 + $0x8c8] sm:$0xf]  ;;  %v6384_v54 = vor.u32 %v5443_v1, %v4299_v11 }
  0xb0   :  { %8556 = vst [vmem:[#allocation148_spill] sm:$0xff] %v6360_v30  ;;  %v5663_v49 = vld [vmem:[#allocation5 + $0x8e0] sm:$0xf0]  ;;  %v5380_v13 = vld [vmem:[#allocation5 + $0xc] sm:$0xf] }
  0xb1   :  { %8557 = vst [vmem:[#allocation149_spill] sm:$0xff] %v6364_v36  ;;  %2520 = vmatpush.bf16.msra.mxu0 %v6364_v36  ;;  %2533 = vmatpush.bf16.msra.mxu1 %v6366_v2  ;;  %v4047_v30 = vld [vmem:[#allocation5 + $0x24] sm:$0xf0]  ;;  %v5541_v36 = vld [vmem:[#allocation5 + $0x514] sm:$0xf]  ;;  %v6390_v15 = vor.u32 %v5663_v49, %v5165_v0 }
  0xb2   :  { %8558 = vst [vmem:[#allocation150_spill] sm:$0xff] %v6366_v2  ;;  %v4691_v2 = vld [vmem:[#allocation5 + $0x52c] sm:$0xf0]  ;;  %v5597_v35 = vld [vmem:[#allocation5 + $0x6d4] sm:$0xf]  ;;  %v6393_v1 = vor.u32 %v5380_v13, %v4047_v30 }
  0xb3   :  { %8559 = vst [vmem:[#allocation151_spill] sm:$0xff] %v6369_v4  ;;  %2546 = vmatpush.bf16.msra.mxu2 %v6369_v4  ;;  %2559 = vmatpush.bf16.msra.mxu3 %v6372_v63  ;;  %v4915_v22 = vld [vmem:[#allocation5 + $0x6ec] sm:$0xf0]  ;;  %v5653_v37 = vld [vmem:[#allocation5 + $0x894] sm:$0xf]  ;;  %v6388_v4 = vor.u32 %v5607_v28, %v4941_v58  ;;  %v6395_v11 = vor.u32 %v5541_v36, %v4691_v2 }
  0xb4   :  { %8560 = vst [vmem:[#allocation152_spill] sm:$0xff] %v6372_v63  ;;  %v5139_v40 = vld [vmem:[#allocation5 + $0x8ac] sm:$0xf0]  ;;  %v5436_v53 = vld [vmem:[#allocation5 + $0x1cc] sm:$0xf]  ;;  %v6398_v62 = vor.u32 %v5597_v35, %v4915_v22 }
  0xb5   :  { %8561 = vst [vmem:[#allocation153_spill] sm:$0xff] %v6376_v48  ;;  %2521 = vmatpush.bf16.msra.mxu0 %v6376_v48  ;;  %2534 = vmatpush.bf16.msra.mxu1 %v6378_v52  ;;  %v4271_v10 = vld [vmem:[#allocation5 + $0x1e4] sm:$0xf0]  ;;  %v5709_v63 = vld [vmem:[#allocation5 + $0xa54] sm:$0xf]  ;;  %v6400_v48 = vor.u32 %v5653_v37, %v5139_v40 }
  0xb6   :  { %8562 = vst [vmem:[#allocation154_spill] sm:$0xff] %v6378_v52  ;;  %v5363_v24 = vld [vmem:[#allocation5 + $0xa6c] sm:$0xf0]  ;;  %v5534_v58 = vld [vmem:[#allocation5 + $0x4dc] sm:$0xf]  ;;  %v6402_v49 = vor.u32 %v5436_v53, %v4271_v10 }
  0xb7   :  { %8563 = vst [vmem:[#allocation155_spill] sm:$0xff] %v6381_v9  ;;  %2547 = vmatpush.bf16.msra.mxu2 %v6381_v9  ;;  %2560 = vmatpush.bf16.msra.mxu3 %v6384_v54  ;;  %v4663_v28 = vld [vmem:[#allocation5 + $0x4f4] sm:$0xf0]  ;;  %v5590_v0 = vld [vmem:[#allocation5 + $0x69c] sm:$0xf]  ;;  %v6406_v30 = vor.u32 %v5709_v63, %v5363_v24 }
  0xb8   :  { %8564 = vst [vmem:[#allocation156_spill] sm:$0xff] %v6384_v54  ;;  %v4887_v52 = vld [vmem:[#allocation5 + $0x6b4] sm:$0xf0]  ;;  %v5646_v60 = vld [vmem:[#allocation5 + $0x85c] sm:$0xf]  ;;  %v6410_v36 = vor.u32 %v5534_v58, %v4663_v28 }
  0xb9   :  { %8565 = vst [vmem:[#allocation157_spill] sm:$0xff] %v6388_v4  ;;  %v5111_v9 = vld [vmem:[#allocation5 + $0x874] sm:$0xf0]  ;;  %2522 = vmatpush.bf16.msra.mxu0 %v6388_v4  ;;  %2535 = vmatpush.bf16.msra.mxu1 %v6390_v15  ;;  %v5702_v2 = vld [vmem:[#allocation5 + $0xa1c] sm:$0xf]  ;;  %v6414_v10 = vor.u32 %v5590_v0, %v4887_v52 }
  0xba   :  { %8566 = vst [vmem:[#allocation158_spill] sm:$0xff] %v6390_v15  ;;  %v5335_v13 = vld [vmem:[#allocation5 + $0xa34] sm:$0xf0]  ;;  %v6416_v35 = vor.u32 %v5646_v60, %v5111_v9  ;;  %v5527_v22 = vld [vmem:[#allocation5 + $0x4a4] sm:$0xf] }
  0xbb   :  { %8567 = vst [vmem:[#allocation159_spill] sm:$0xff] %v6393_v1  ;;  %2548 = vmatpush.bf16.msra.mxu2 %v6393_v1  ;;  %v4635_v37 = vld [vmem:[#allocation5 + $0x4bc] sm:$0xf0]  ;;  %v5583_v24 = vld [vmem:[#allocation5 + $0x664] sm:$0xf]  ;;  %2561 = vmatpush.bf16.msra.mxu3 %v6402_v49  ;;  %v6421_v58 = vor.u32 %v5702_v2, %v5335_v13 }
  0xbc   :  { %8568 = vst [vmem:[#allocation160_spill] sm:$0xff] %v6395_v11  ;;  %2523 = vmatmul.bf16.vlgmr.msra.gmra.mxu0 %v6148_v39  ;;  %v4859_v63 = vld [vmem:[#allocation5 + $0x67c] sm:$0xf0]  ;;  %v5639_v40 = vld [vmem:[#allocation5 + $0x824] sm:$0xf]  ;;  %2536 = vmatmul.bf16.vlgmr.msra.gmra.mxu1 %v6150_v32  ;;  %v6425_v60 = vor.u32 %v5527_v22, %v4635_v37 }
  0xbd   :  { %8569 = vst [vmem:[#allocation161_spill] sm:$0xff] %v6398_v62  ;;  %2567 = vmatpush.bf16.msrb.mxu0 %v6395_v11  ;;  %2580 = vmatpush.bf16.msrb.mxu1 %v6398_v62  ;;  %v5083_v53 = vld [vmem:[#allocation5 + $0x83c] sm:$0xf0]  ;;  %v5695_v52 = vld [vmem:[#allocation5 + $0x9e4] sm:$0xf]  ;;  %v6430_v28 = vor.u32 %v5583_v24, %v4859_v63 }
  0xbe   :  { %8570 = vst [vmem:[#allocation162_spill] sm:$0xff] %v6400_v48  ;;  %v5307_v9 = vld [vmem:[#allocation5 + $0x9fc] sm:$0xf0]  ;;  %2549 = vmatmul.bf16.vlgmr.msra.gmra.mxu2 %v6083_v47  ;;  %v6432_v0 = vor.u32 %v5639_v40, %v5083_v53  ;;  %v5520_v2 = vld [vmem:[#allocation5 + $0x46c] sm:$0xf]  ;;  %2562 = vmatmul.bf16.vlgmr.msra.gmra.mxu3 %v6085_v14 }
  0xbf   :  { %8571 = vst [vmem:[#allocation163_spill] sm:$0xff] %v6402_v49  ;;  %2593 = vmatpush.bf16.msrb.mxu2 %v6400_v48  ;;  %2606 = vmatpush.bf16.msrb.mxu3 %v6406_v30  ;;  %v4607_v13 = vld [vmem:[#allocation5 + $0x484] sm:$0xf0]  ;;  %v5632_v49 = vld [vmem:[#allocation5 + $0x7ec] sm:$0xf]  ;;  %v6436_v22 = vor.u32 %v5695_v52, %v5307_v9 }
  0xc0   :  { %8572 = vst [vmem:[#allocation164_spill] sm:$0xff] %v6406_v30  ;;  %v5576_v30 = vld [vmem:[#allocation5 + $0x62c] sm:$0xf]  ;;  %v4831_v48 = vld [vmem:[#allocation5 + $0x644] sm:$0xf0]  ;;  %v6439_v37 = vor.u32 %v5520_v2, %v4607_v13 }
  0xc1   :  { %8573 = vst [vmem:[#allocation165_spill] sm:$0xff] %v6410_v36  ;;  %2568 = vmatpush.bf16.msrb.mxu0 %v6410_v36  ;;  %2581 = vmatpush.bf16.msrb.mxu1 %v6414_v10  ;;  %v5055_v1 = vld [vmem:[#allocation5 + $0x804] sm:$0xf0]  ;;  %v5688_v24 = vld [vmem:[#allocation5 + $0x9ac] sm:$0xf]  ;;  %v6443_v40 = vor.u32 %v5576_v30, %v4831_v48 }
  0xc2   :  { %8574 = vst [vmem:[#allocation166_spill] sm:$0xff] %v6414_v10  ;;  %v5279_v63 = vld [vmem:[#allocation5 + $0x9c4] sm:$0xf0]  ;;  %v6445_v53 = vor.u32 %v5632_v49, %v5055_v1  ;;  %v4579_v54 = vld [vmem:[#allocation5 + $0x44c] sm:$0xf0] }
  0xc3   :  { %8575 = vst [vmem:[#allocation167_spill] sm:$0xff] %v6416_v35  ;;  %2594 = vmatpush.bf16.msrb.mxu2 %v6416_v35  ;;  %2607 = vmatpush.bf16.msrb.mxu3 %v6421_v58  ;;  %v5513_v35 = vld [vmem:[#allocation5 + $0x434] sm:$0xf]  ;;  %v5027_v9 = vld [vmem:[#allocation5 + $0x7cc] sm:$0xf0]  ;;  %v6448_v2 = vor.u32 %v5688_v24, %v5279_v63 }
  0xc4   :  { %8576 = vst [vmem:[#allocation168_spill] sm:$0xff] %v6421_v58  ;;  %v5569_v10 = vld [vmem:[#allocation5 + $0x5f4] sm:$0xf]  ;;  %v4803_v58 = vld [vmem:[#allocation5 + $0x60c] sm:$0xf0]  ;;  %v6451_v13 = vor.u32 %v5513_v35, %v4579_v54 }
  0xc5   :  { %8577 = vst [vmem:[#allocation169_spill] sm:$0xff] %v6425_v60  ;;  %2569 = vmatpush.bf16.msrb.mxu0 %v6425_v60  ;;  %2582 = vmatpush.bf16.msrb.mxu1 %v6430_v28  ;;  %v5625_v52 = vld [vmem:[#allocation5 + $0x7b4] sm:$0xf]  ;;  %v6455_v48 = vor.u32 %v5569_v10, %v4803_v58  ;;  %v5506_v49 = vld [vmem:[#allocation5 + $0x3fc] sm:$0xf] }
  0xc6   :  { %8578 = vst [vmem:[#allocation170_spill] sm:$0xff] %v6430_v28  ;;  %v5681_v28 = vld [vmem:[#allocation5 + $0x974] sm:$0xf]  ;;  %v6457_v1 = vor.u32 %v5625_v52, %v5027_v9  ;;  %v4551_v30 = vld [vmem:[#allocation5 + $0x414] sm:$0xf0] }
  0xc7   :  { %8579 = vst [vmem:[#allocation171_spill] sm:$0xff] %v6432_v0  ;;  %2595 = vmatpush.bf16.msrb.mxu2 %v6432_v0  ;;  %2608 = vmatpush.bf16.msrb.mxu3 %v6436_v22  ;;  %v5251_v0 = vld [vmem:[#allocation5 + $0x98c] sm:$0xf0]  ;;  %v5562_v60 = vld [vmem:[#allocation5 + $0x5bc] sm:$0xf]  ;;  %v6463_v35 = vor.u32 %v5506_v49, %v4551_v30 }
  0xc8   :  { %8580 = vst [vmem:[#allocation172_spill] sm:$0xff] %v6436_v22  ;;  %v4775_v22 = vld [vmem:[#allocation5 + $0x5d4] sm:$0xf0]  ;;  %v5618_v24 = vld [vmem:[#allocation5 + $0x77c] sm:$0xf]  ;;  %v6460_v54 = vor.u32 %v5681_v28, %v5251_v0 }
  0xc9   :  { %8581 = vst [vmem:[#allocation173_spill] sm:$0xff] %v6439_v37  ;;  %2570 = vmatpush.bf16.msrb.mxu0 %v6439_v37  ;;  %2583 = vmatpush.bf16.msrb.mxu1 %v6443_v40  ;;  %v4999_v63 = vld [vmem:[#allocation5 + $0x794] sm:$0xf0]  ;;  %v6467_v10 = vor.u32 %v5562_v60, %v4775_v22  ;;  %v5499_v52 = vld [vmem:[#allocation5 + $0x3c4] sm:$0xf] }
  0xca   :  { %8582 = vst [vmem:[#allocation174_spill] sm:$0xff] %v6443_v40  ;;  %v5674_v40 = vld [vmem:[#allocation5 + $0x93c] sm:$0xf]  ;;  %v6469_v58 = vor.u32 %v5618_v24, %v4999_v63  ;;  %v4523_v9 = vld [vmem:[#allocation5 + $0x3dc] sm:$0xf0] }
  0xcb   :  { %8583 = vst [vmem:[#allocation175_spill] sm:$0xff] %v6445_v53  ;;  %2596 = vmatpush.bf16.msrb.mxu2 %v6445_v53  ;;  %2609 = vmatpush.bf16.msrb.mxu3 %v6448_v2  ;;  %v5223_v53 = vld [vmem:[#allocation5 + $0x954] sm:$0xf0]  ;;  %v5555_v37 = vld [vmem:[#allocation5 + $0x584] sm:$0xf] }
  0xcc   :  { %8584 = vst [vmem:[#allocation176_spill] sm:$0xff] %v6448_v2  ;;  %v4747_v2 = vld [vmem:[#allocation5 + $0x59c] sm:$0xf0]  ;;  %v5611_v28 = vld [vmem:[#allocation5 + $0x744] sm:$0xf]  ;;  %v6472_v49 = vor.u32 %v5674_v40, %v5223_v53 }
  0xcd   :  { %8585 = vst [vmem:[#allocation177_spill] sm:$0xff] %v6451_v13  ;;  %2571 = vmatpush.bf16.msrb.mxu0 %v6451_v13  ;;  %2584 = vmatpush.bf16.msrb.mxu1 %v6455_v48  ;;  %v4971_v0 = vld [vmem:[#allocation5 + $0x75c] sm:$0xf0]  ;;  %v5667_v30 = vld [vmem:[#allocation5 + $0x904] sm:$0xf]  ;;  %v6479_v24 = vor.u32 %v5555_v37, %v4747_v2 }
  0xce   :  { %8586 = vst [vmem:[#allocation178_spill] sm:$0xff] %v6455_v48  ;;  %v6475_v48 = vor.u32 %v5499_v52, %v4523_v9  ;;  %v5492_v60 = vld [vmem:[#allocation5 + $0x38c] sm:$0xf]  ;;  %v4495_v22 = vld [vmem:[#allocation5 + $0x3a4] sm:$0xf0]  ;;  %v6481_v63 = vor.u32 %v5611_v28, %v4971_v0 }
  0xcf   :  { %8587 = vst [vmem:[#allocation179_spill] sm:$0xff] %v6457_v1  ;;  %2597 = vmatpush.bf16.msrb.mxu2 %v6457_v1  ;;  %2610 = vmatpush.bf16.msrb.mxu3 %v6460_v54  ;;  %v5195_v1 = vld [vmem:[#allocation5 + $0x91c] sm:$0xf0]  ;;  %v5548_v13 = vld [vmem:[#allocation5 + $0x54c] sm:$0xf] }
  0xd0   :  { %8588 = vst [vmem:[#allocation180_spill] sm:$0xff] %v6460_v54  ;;  %v4719_v54 = vld [vmem:[#allocation5 + $0x564] sm:$0xf0]  ;;  %v5604_v40 = vld [vmem:[#allocation5 + $0x70c] sm:$0xf]  ;;  %v6484_v52 = vor.u32 %v5667_v30, %v5195_v1 }
  0xd1   :  { %8589 = vst [vmem:[#allocation181_spill] sm:$0xff] %v6463_v35  ;;  %2572 = vmatpush.bf16.msrb.mxu0 %v6463_v35  ;;  %2585 = vmatpush.bf16.msrb.mxu1 %v6467_v10  ;;  %v4943_v53 = vld [vmem:[#allocation5 + $0x724] sm:$0xf0]  ;;  %v4249_v36 = vld [vmem:[#allocation5 + $0x198] sm:$0xf]  ;;  %v6491_v0 = vor.u32 %v5548_v13, %v4719_v54 }
  0xd2   :  { %8590 = vst [vmem:[#allocation182_spill] sm:$0xff] %v6467_v10  ;;  %v5433_v62 = vld [vmem:[#allocation5 + $0x1b0] sm:$0xf0]  ;;  %v4473_v9 = vld [vmem:[#allocation5 + $0x358] sm:$0xf]  ;;  %v6493_v10 = vor.u32 %v5604_v40, %v4943_v53 }
  0xd3   :  { %8591 = vst [vmem:[#allocation183_spill] sm:$0xff] %v6469_v58  ;;  %2598 = vmatpush.bf16.msrb.mxu2 %v6469_v58  ;;  %2611 = vmatpush.bf16.msrb.mxu3 %v6472_v49  ;;  %v5489_v35 = vld [vmem:[#allocation5 + $0x370] sm:$0xf0]  ;;  %v4697_v15 = vld [vmem:[#allocation5 + $0x518] sm:$0xf]  ;;  %v6487_v58 = vor.u32 %v5492_v60, %v4495_v22 }
  0xd4   :  { %8592 = vst [vmem:[#allocation184_spill] sm:$0xff] %v6472_v49  ;;  %v5545_v37 = vld [vmem:[#allocation5 + $0x530] sm:$0xf0]  ;;  %v5660_v2 = vld [vmem:[#allocation5 + $0x8cc] sm:$0xf]  ;;  %v6495_v49 = vor.u32 %v5433_v62, %v4249_v36  ;;  %v6497_v11 = vor.u32 %v5489_v35, %v4473_v9 }
  0xd5   :  { %8593 = vst [vmem:[#allocation185_spill] sm:$0xff] %v6475_v48  ;;  %2573 = vmatpush.bf16.msrb.mxu0 %v6475_v48  ;;  %v5167_v28 = vld [vmem:[#allocation5 + $0x8e4] sm:$0xf0]  ;;  %2586 = vmatpush.bf16.msrb.mxu1 %v6479_v24  ;;  %v4921_v1 = vld [vmem:[#allocation5 + $0x6d8] sm:$0xf]  ;;  %v6500_v60 = vor.u32 %v5545_v37, %v4697_v15 }
  0xd6   :  { %8594 = vst [vmem:[#allocation186_spill] sm:$0xff] %v6479_v24  ;;  %v5601_v30 = vld [vmem:[#allocation5 + $0x6f0] sm:$0xf0]  ;;  %v4221_v48 = vld [vmem:[#allocation5 + $0x160] sm:$0xf]  ;;  %v6502_v22 = vor.u32 %v5660_v2, %v5167_v28 }
  0xd7   :  { %8595 = vst [vmem:[#allocation187_spill] sm:$0xff] %v6481_v63  ;;  %2599 = vmatpush.bf16.msrb.mxu2 %v6481_v63  ;;  %2612 = vmatpush.bf16.msrb.mxu3 %v6484_v52  ;;  %v5426_v24 = vld [vmem:[#allocation5 + $0x178] sm:$0xf0]  ;;  %v4445_v4 = vld [vmem:[#allocation5 + $0x320] sm:$0xf]  ;;  %v6505_v13 = vor.u32 %v5601_v30, %v4921_v1 }
  0xd8   :  { %8596 = vst [vmem:[#allocation188_spill] sm:$0xff] %v6484_v52  ;;  %v5482_v63 = vld [vmem:[#allocation5 + $0x338] sm:$0xf0]  ;;  %v4669_v54 = vld [vmem:[#allocation5 + $0x4e0] sm:$0xf]  ;;  %v6511_v15 = vor.u32 %v5426_v24, %v4221_v48 }
  0xd9   :  { %8597 = vst [vmem:[#allocation189_spill] sm:$0xff] %v6487_v58  ;;  %2574 = vmatpush.bf16.msrb.mxu0 %v6487_v58  ;;  %v5538_v40 = vld [vmem:[#allocation5 + $0x4f8] sm:$0xf0]  ;;  %2587 = vmatpush.bf16.msrb.mxu1 %v6491_v0  ;;  %v4893_v62 = vld [vmem:[#allocation5 + $0x6a0] sm:$0xf]  ;;  %v6513_v35 = vor.u32 %v5482_v63, %v4445_v4 }
  0xda   :  { %8598 = vst [vmem:[#allocation190_spill] sm:$0xff] %v6491_v0  ;;  %v5594_v36 = vld [vmem:[#allocation5 + $0x6b8] sm:$0xf0]  ;;  %v4193_v53 = vld [vmem:[#allocation5 + $0x128] sm:$0xf]  ;;  %v6517_v9 = vor.u32 %v5538_v40, %v4669_v54  ;;  %v2316_v40 = vpop.f32.mrf.mxu0 }
  0xdb   :  { %8599 = vst [vmem:[#allocation191_spill] sm:$0xff] %v6493_v10  ;;  %2600 = vmatpush.bf16.msrb.mxu2 %v6493_v10  ;;  %2613 = vmatpush.bf16.msrb.mxu3 %v6502_v22  ;;  %v5419_v37 = vld [vmem:[#allocation5 + $0x140] sm:$0xf0]  ;;  %v4417_v2 = vld [vmem:[#allocation5 + $0x2e8] sm:$0xf]  ;;  %v6520_v1 = vor.u32 %v5594_v36, %v4893_v62  ;;  %v2329_v62 = vpop.f32.mrf.mxu1 }
  0xdc   :  { %8600 = vst [vmem:[#allocation192_spill] sm:$0xff] %v6495_v49  ;;  %v5475_v28 = vld [vmem:[#allocation5 + $0x300] sm:$0xf0]  ;;  %v4641_v30 = vld [vmem:[#allocation5 + $0x4a8] sm:$0xf]  ;;  %2575 = vmatmul.bf16.vlgmr.msrb.gmra.mxu0 %v6087_v26  ;;  %2588 = vmatmul.bf16.vlgmr.msrb.gmra.mxu1 %v6089_v31  ;;  %v6527_v24 = vor.u32 %v5419_v37, %v4193_v53  ;;  %v2330_v52 = vadd.f32 %v2329_v62, %v2316_v40 }
  0xdd   :  { %8601 = vst [vmem:[#allocation193_spill] sm:$0xff] %v6497_v11  ;;  %2619 = vmatpush.bf16.msra.mxu0 %v6495_v49  ;;  %2632 = vmatpush.bf16.msra.mxu1 %v6497_v11  ;;  %v5531_v10 = vld [vmem:[#allocation5 + $0x4c0] sm:$0xf0]  ;;  %v4865_v4 = vld [vmem:[#allocation5 + $0x668] sm:$0xf]  ;;  %v6529_v63 = vor.u32 %v5475_v28, %v4417_v2 }
  0xde   :  { %8602 = vst [vmem:[#allocation194_spill] sm:$0xff] %v6500_v60  ;;  %v5587_v48 = vld [vmem:[#allocation5 + $0x680] sm:$0xf0]  ;;  %2601 = vmatmul.bf16.vlgmr.msrb.gmra.mxu2 %v6148_v39  ;;  %v4165_v54 = vld [vmem:[#allocation5 + $0xf0] sm:$0xf]  ;;  %v6532_v36 = vor.u32 %v5531_v10, %v4641_v30  ;;  %2614 = vmatmul.bf16.vlgmr.msrb.gmra.mxu3 %v6150_v32 }
  0xdf   :  { %8603 = vst [vmem:[#allocation195_spill] sm:$0xff] %v6502_v22  ;;  %2645 = vmatpush.bf16.msra.mxu2 %v6500_v60  ;;  %2658 = vmatpush.bf16.msra.mxu3 %v6505_v13  ;;  %v4389_v60 = vld [vmem:[#allocation5 + $0x2b0] sm:$0xf]  ;;  %v5468_v22 = vld [vmem:[#allocation5 + $0x2c8] sm:$0xf0] }
  0xe0   :  { %8604 = vst [vmem:[#allocation196_spill] sm:$0xff] %v6505_v13  ;;  %v5412_v13 = vld [vmem:[#allocation5 + $0x108] sm:$0xf0]  ;;  %v4613_v53 = vld [vmem:[#allocation5 + $0x470] sm:$0xf]  ;;  %v6542_v30 = vor.u32 %v5468_v22, %v4389_v60  ;;  %v2355_v60 = vpop.f32.mrf.mxu3 }
  0xe1   :  { %8605 = vst [vmem:[#allocation197_spill] sm:$0xff] %v6511_v15  ;;  %2620 = vmatpush.bf16.msra.mxu0 %v6511_v15  ;;  %2633 = vmatpush.bf16.msra.mxu1 %v6513_v35  ;;  %v5524_v37 = vld [vmem:[#allocation5 + $0x488] sm:$0xf0]  ;;  %v4837_v2 = vld [vmem:[#allocation5 + $0x630] sm:$0xf]  ;;  %v6540_v10 = vor.u32 %v5412_v13, %v4165_v54  ;;  %v2342_v13 = vpop.f32.mrf.mxu2 }
  0xe2   :  { %8606 = vst [vmem:[#allocation198_spill] sm:$0xff] %v6513_v35  ;;  %v6536_v35 = vor.u32 %v5587_v48, %v4865_v4  ;;  %v5580_v28 = vld [vmem:[#allocation5 + $0x648] sm:$0xf0]  ;;  %v6545_v40 = vor.u32 %v5524_v37, %v4613_v53  ;;  %v5405_v62 = vld [vmem:[#allocation5 + $0xd0] sm:$0xf0]  ;;  %v2318_v37 = vpop.f32.mrf.mxu0 }
  0xe3   :  { %8607 = vst [vmem:[#allocation199_spill] sm:$0xff] %v6517_v9  ;;  %2646 = vmatpush.bf16.msra.mxu2 %v6517_v9  ;;  %2659 = vmatpush.bf16.msra.mxu3 %v6520_v1  ;;  %v4137_v9 = vld [vmem:[#allocation5 + $0xb8] sm:$0xf]  ;;  %v5461_v48 = vld [vmem:[#allocation5 + $0x290] sm:$0xf0] }
  0xe4   :  { %8608 = vst [vmem:[#allocation200_spill] sm:$0xff] %v6520_v1  ;;  %v4361_v4 = vld [vmem:[#allocation5 + $0x278] sm:$0xf]  ;;  %v6548_v1 = vor.u32 %v5580_v28, %v4837_v2  ;;  %v6552_v22 = vor.u32 %v5405_v62, %v4137_v9  ;;  %v4109_v53 = vld [vmem:[#allocation5 + $0x80] sm:$0xf] }
  0xe5   :  { %8609 = vst [vmem:[#allocation201_spill] sm:$0xff] %v6527_v24  ;;  %2621 = vmatpush.bf16.msra.mxu0 %v6527_v24  ;;  %2634 = vmatpush.bf16.msra.mxu1 %v6529_v63  ;;  %v4585_v15 = vld [vmem:[#allocation5 + $0x438] sm:$0xf]  ;;  %v5517_v24 = vld [vmem:[#allocation5 + $0x450] sm:$0xf0]  ;;  %v6554_v54 = vor.u32 %v5461_v48, %v4361_v4 }
  0xe6   :  { %8610 = vst [vmem:[#allocation202_spill] sm:$0xff] %v6529_v63  ;;  %v4809_v11 = vld [vmem:[#allocation5 + $0x5f8] sm:$0xf]  ;;  %v5573_v63 = vld [vmem:[#allocation5 + $0x610] sm:$0xf0]  ;;  %v6557_v2 = vor.u32 %v5517_v24, %v4585_v15 }
  0xe7   :  { %8611 = vst [vmem:[#allocation203_spill] sm:$0xff] %v6532_v36  ;;  %2647 = vmatpush.bf16.msra.mxu2 %v6532_v36  ;;  %2660 = vmatpush.bf16.msra.mxu3 %v6536_v35  ;;  %v2331_v36 = vpop.f32.mrf.mxu1  ;;  %v5398_v28 = vld [vmem:[#allocation5 + $0x98] sm:$0xf0]  ;;  %v4333_v0 = vld [vmem:[#allocation5 + $0x240] sm:$0xf] }
  0xe8   :  { %8612 = vst [vmem:[#allocation204_spill] sm:$0xff] %v6536_v35  ;;  %v2343_v35 = vadd.f32 %v2342_v13, %v2330_v52  ;;  %v5454_v49 = vld [vmem:[#allocation5 + $0x258] sm:$0xf0]  ;;  %v4781_v4 = vld [vmem:[#allocation5 + $0x5c0] sm:$0xf]  ;;  %v6564_v52 = vor.u32 %v5398_v28, %v4109_v53 }
  0xe9   :  { %8613 = vst [vmem:[#allocation205_spill] sm:$0xff] %v6540_v10  ;;  %2622 = vmatpush.bf16.msra.mxu0 %v6540_v10  ;;  %2635 = vmatpush.bf16.msra.mxu1 %v6542_v30  ;;  %v6560_v10 = vor.u32 %v5573_v63, %v4809_v11  ;;  %v5510_v9 = vld [vmem:[#allocation5 + $0x418] sm:$0xf0]  ;;  %v6566_v15 = vor.u32 %v5454_v49, %v4333_v0  ;;  %v4081_v24 = vld [vmem:[#allocation5 + $0x48] sm:$0xf] }
  0xea   :  { %8614 = vst [vmem:[#allocation206_spill] sm:$0xff] %v6542_v30  ;;  %v4557_v30 = vld [vmem:[#allocation5 + $0x400] sm:$0xf]  ;;  %v2356_v62 = vadd.f32 %v2355_v60, %v2343_v35  ;;  %v5566_v48 = vld [vmem:[#allocation5 + $0x5d8] sm:$0xf0] }
  0xeb   :  { %8615 = vst [vmem:[#allocation207_spill] sm:$0xff] %v6545_v40  ;;  %2648 = vmatpush.bf16.msra.mxu2 %v6545_v40  ;;  %2661 = vmatpush.bf16.msra.mxu3 %v6548_v1  ;;  %v6569_v36 = vor.u32 %v5510_v9, %v4557_v30  ;;  %v5391_v11 = vld [vmem:[#allocation5 + $0x60] sm:$0xf0]  ;;  %v4305_v63 = vld [vmem:[#allocation5 + $0x208] sm:$0xf]  ;;  %v6572_v35 = vor.u32 %v5566_v48, %v4781_v4  ;;  %v2344_v9 = vpop.f32.mrf.mxu2 }
  0xec   :  { %8616 = vst [vmem:[#allocation208_spill] sm:$0xff] %v6548_v1  ;;  %v5447_v13 = vld [vmem:[#allocation5 + $0x220] sm:$0xf0]  ;;  %v4529_v60 = vld [vmem:[#allocation5 + $0x3c8] sm:$0xf]  ;;  %v6576_v49 = vor.u32 %v5391_v11, %v4081_v24 }
  0xed   :  { %8617 = vst [vmem:[#allocation209_spill] sm:$0xff] %v6552_v22  ;;  %2623 = vmatpush.bf16.msra.mxu0 %v6552_v22  ;;  %2636 = vmatpush.bf16.msra.mxu1 %v6554_v54  ;;  %v5503_v37 = vld [vmem:[#allocation5 + $0x3e0] sm:$0xf0]  ;;  %v4753_v1 = vld [vmem:[#allocation5 + $0x588] sm:$0xf]  ;;  %v6578_v0 = vor.u32 %v5447_v13, %v4305_v63  ;;  %v2368_v22 = vpop.f32.mrf.mxu0 }
  0xee   :  { %8618 = vst [vmem:[#allocation210_spill] sm:$0xff] %v6554_v54  ;;  %v5559_v40 = vld [vmem:[#allocation5 + $0x5a0] sm:$0xf0]  ;;  %v4053_v30 = vld [vmem:[#allocation5 + $0x10] sm:$0xf]  ;;  %v6581_v4 = vor.u32 %v5503_v37, %v4529_v60 }
  0xef   :  { %8619 = vst [vmem:[#allocation211_spill] sm:$0xff] %v6557_v2  ;;  %2649 = vmatpush.bf16.msra.mxu2 %v6557_v2  ;;  %2662 = vmatpush.bf16.msra.mxu3 %v6560_v10  ;;  %v5384_v53 = vld [vmem:[#allocation5 + $0x28] sm:$0xf0]  ;;  %v4277_v28 = vld [vmem:[#allocation5 + $0x1d0] sm:$0xf]  ;;  %v2357_v2 = vpop.f32.mrf.mxu3  ;;  %v6584_v24 = vor.u32 %v5559_v40, %v4753_v1 }
  0xf0   :  { %8620 = vst [vmem:[#allocation212_spill] sm:$0xff] %v6560_v10  ;;  %v5440_v48 = vld [vmem:[#allocation5 + $0x1e8] sm:$0xf0]  ;;  %v4501_v10 = vld [vmem:[#allocation5 + $0x390] sm:$0xf]  ;;  %v6588_v60 = vor.u32 %v5384_v53, %v4053_v30 }
  0xf1   :  { %8621 = vst [vmem:[#allocation213_spill] sm:$0xff] %v6564_v52  ;;  %2624 = vmatpush.bf16.msra.mxu0 %v6564_v52  ;;  %2637 = vmatpush.bf16.msra.mxu1 %v6566_v15  ;;  %v5496_v54 = vld [vmem:[#allocation5 + $0x3a8] sm:$0xf0]  ;;  %v2381_v52 = vpop.f32.mrf.mxu1  ;;  %v5145_v11 = vld [vmem:[#allocation5 + $0x898] sm:$0xf]  ;;  %v6590_v37 = vor.u32 %v5440_v48, %v4277_v28 }
  0xf2   :  { %8622 = vst [vmem:[#allocation214_spill] sm:$0xff] %v6566_v15  ;;  %v5657_v63 = vld [vmem:[#allocation5 + $0x8b0] sm:$0xf0]  ;;  %v5369_v13 = vld [vmem:[#allocation5 + $0xa58] sm:$0xf]  ;;  %v2369_v15 = vadd.f32 %v2368_v22, %v2356_v62  ;;  %v6595_v1 = vor.u32 %v5496_v54, %v4501_v10 }
  0xf3   :  { %8623 = vst [vmem:[#allocation215_spill] sm:$0xff] %v6569_v36  ;;  %2650 = vmatpush.bf16.msra.mxu2 %v6569_v36  ;;  %2663 = vmatpush.bf16.msra.mxu3 %v6572_v35  ;;  %v5713_v58 = vld [vmem:[#allocation5 + $0xa70] sm:$0xf0]  ;;  %v5430_v9 = vld [vmem:[#allocation5 + $0x19c] sm:$0xf]  ;;  %v6597_v40 = vor.u32 %v5657_v63, %v5145_v11 }
  0xf4   :  { %8624 = vst [vmem:[#allocation216_spill] sm:$0xff] %v6572_v35  ;;  %v4251_v2 = vld [vmem:[#allocation5 + $0x1b4] sm:$0xf0]  ;;  %v4725_v36 = vld [vmem:[#allocation5 + $0x550] sm:$0xf]  ;;  %v6592_v35 = vadd.f32 %v2381_v52, %v2369_v15 }
  0xf5   :  { %8625 = vst [vmem:[#allocation217_spill] sm:$0xff] %v6576_v49  ;;  %2625 = vmatpush.bf16.msra.mxu0 %v6576_v49  ;;  %2638 = vmatpush.bf16.msra.mxu1 %v6578_v0  ;;  %v5486_v22 = vld [vmem:[#allocation5 + $0x35c] sm:$0xf]  ;;  %v4475_v62 = vld [vmem:[#allocation5 + $0x374] sm:$0xf0]  ;;  %v6600_v49 = vor.u32 %v5713_v58, %v5369_v13  ;;  %v6602_v30 = vor.u32 %v5430_v9, %v4251_v2  ;;  %v2370_v2 = vpop.f32.mrf.mxu0 }
  0xf6   :  { %8626 = vst [vmem:[#allocation218_spill] sm:$0xff] %v6578_v0  ;;  %v5117_v53 = vld [vmem:[#allocation5 + $0x860] sm:$0xf]  ;;  %v5650_v28 = vld [vmem:[#allocation5 + $0x878] sm:$0xf0]  ;;  %v6604_v0 = vor.u32 %v5552_v20, %v4725_v36  ;;  %v6608_v10 = vor.u32 %v5486_v22, %v4475_v62 }
  0xf7   :  { %8627 = vst [vmem:[#allocation219_spill] sm:$0xff] %v6581_v4  ;;  %2651 = vmatpush.bf16.msra.mxu2 %v6581_v4  ;;  %2664 = vmatpush.bf16.msra.mxu3 %v6584_v24  ;;  %v5341_v48 = vld [vmem:[#allocation5 + $0xa20] sm:$0xf]  ;;  %v5706_v52 = vld [vmem:[#allocation5 + $0xa38] sm:$0xf0]  ;;  %v6612_v58 = vor.u32 %v5650_v28, %v5117_v53 }
  0xf8   :  { %8628 = vst [vmem:[#allocation220_spill] sm:$0xff] %v6584_v24  ;;  %v5423_v15 = vld [vmem:[#allocation5 + $0x164] sm:$0xf]  ;;  %v4223_v4 = vld [vmem:[#allocation5 + $0x17c] sm:$0xf0]  ;;  %v6616_v20 = vor.u32 %v5706_v52, %v5341_v48  ;;  %v2407_v24 = vpop.f32.mrf.mxu3 }
  0xf9   :  { %8629 = vst [vmem:[#allocation221_spill] sm:$0xff] %v6588_v60  ;;  %2626 = vmatpush.bf16.msra.mxu0 %v6588_v60  ;;  %2639 = vmatpush.bf16.msra.mxu1 %v6590_v37  ;;  %v5479_v54 = vld [vmem:[#allocation5 + $0x324] sm:$0xf]  ;;  %v4447_v11 = vld [vmem:[#allocation5 + $0x33c] sm:$0xf0]  ;;  %v6618_v36 = vor.u32 %v5423_v15, %v4223_v4  ;;  %v2383_v22 = vpop.f32.mrf.mxu1 }
  0xfa   :  { %8630 = vst [vmem:[#allocation222_spill] sm:$0xff] %v6590_v37  ;;  %v5089_v63 = vld [vmem:[#allocation5 + $0x828] sm:$0xf]  ;;  %v5643_v13 = vld [vmem:[#allocation5 + $0x840] sm:$0xf0]  ;;  %v6623_v48 = vor.u32 %v5479_v54, %v4447_v11 }
  0xfb   :  { %8631 = vst [vmem:[#allocation223_spill] sm:$0xff] %v6592_v35  ;;  %2652 = vmatpush.bf16.msra.mxu2 %v6595_v1  ;;  %v5313_v9 = vld [vmem:[#allocation5 + $0x9e8] sm:$0xf]  ;;  %2665 = vmatpush.bf16.msra.mxu3 %v6604_v0  ;;  %v5699_v62 = vld [vmem:[#allocation5 + $0xa00] sm:$0xf0]  ;;  %v6627_v52 = vor.u32 %v5643_v13, %v5089_v63 }
  0xfc   :  { %8632 = vst [vmem:[#allocation224_spill] sm:$0xff] %v6595_v1  ;;  %v5416_v53 = vld [vmem:[#allocation5 + $0x12c] sm:$0xf]  ;;  %v4195_v28 = vld [vmem:[#allocation5 + $0x144] sm:$0xf0]  ;;  %2627 = vmatmul.bf16.vlgmr.msra.gmra.mxu0 %v6083_v47  ;;  %v2394_v1 = vpop.f32.mrf.mxu2  ;;  %2640 = vmatmul.bf16.vlgmr.msra.gmra.mxu1 %v6085_v14  ;;  %v6632_v22 = vor.u32 %v5699_v62, %v5313_v9 }
  0xfd   :  { %8633 = vst [vmem:[#allocation225_spill] sm:$0xff] %v6597_v40  ;;  %2671 = vmatpush.bf16.msrb.mxu0 %v6597_v40  ;;  %2684 = vmatpush.bf16.msrb.mxu1 %v6600_v49  ;;  %v2408_v4 = vadd.f32 %v2407_v24, %v2394_v1  ;;  %v5472_v15 = vld [vmem:[#allocation5 + $0x2ec] sm:$0xf]  ;;  %v4419_v2 = vld [vmem:[#allocation5 + $0x304] sm:$0xf0] }
  0xfe   :  { %8634 = vst [vmem:[#allocation226_spill] sm:$0xff] %v6600_v49  ;;  %2653 = vmatmul.bf16.vlgmr.msra.gmra.mxu2 %v6087_v26  ;;  %v5061_v54 = vld [vmem:[#allocation5 + $0x7f0] sm:$0xf]  ;;  %v5636_v11 = vld [vmem:[#allocation5 + $0x808] sm:$0xf0]  ;;  %2666 = vmatmul.bf16.vlgmr.msra.gmra.mxu3 %v6089_v31  ;;  %v6638_v63 = vor.u32 %v5472_v15, %v4419_v2 }
  0xff   :  { %8635 = vst [vmem:[#allocation227_spill] sm:$0xff] %v6602_v30  ;;  %2697 = vmatpush.bf16.msrb.mxu2 %v6602_v30  ;;  %2710 = vmatpush.bf16.msrb.mxu3 %v6608_v10  ;;  %v5285_v30 = vld [vmem:[#allocation5 + $0x9b0] sm:$0xf]  ;;  %v5692_v24 = vld [vmem:[#allocation5 + $0x9c8] sm:$0xf0]  ;;  %v6641_v13 = vor.u32 %v5636_v11, %v5061_v54 }
 0x100   :  { %8636 = vst [vmem:[#allocation228_spill] sm:$0xff] %v6604_v0  ;;  %v5409_v1 = vld [vmem:[#allocation5 + $0xf4] sm:$0xf]  ;;  %v4167_v0 = vld [vmem:[#allocation5 + $0x10c] sm:$0xf0] }
 0x101   :  { %8637 = vst [vmem:[#allocation229_spill] sm:$0xff] %v6608_v10  ;;  %2672 = vmatpush.bf16.msrb.mxu0 %v6612_v58  ;;  %2685 = vmatpush.bf16.msrb.mxu1 %v6616_v20  ;;  %v6634_v10 = vor.u32 %v5416_v53, %v4195_v28  ;;  %v5465_v9 = vld [vmem:[#allocation5 + $0x2b4] sm:$0xf]  ;;  %v4391_v62 = vld [vmem:[#allocation5 + $0x2cc] sm:$0xf0]  ;;  %v6645_v53 = vor.u32 %v5692_v24, %v5285_v30  ;;  %v2433_v11 = vpop.f32.mrf.mxu1 }
 0x102   :  { %8638 = vst [vmem:[#allocation230_spill] sm:$0xff] %v6612_v58  ;;  %v6647_v28 = vor.u32 %v5409_v1, %v4167_v0  ;;  %v5257_v58 = vld [vmem:[#allocation5 + $0x978] sm:$0xf]  ;;  %v5685_v15 = vld [vmem:[#allocation5 + $0x990] sm:$0xf0]  ;;  %v6650_v37 = vor.u32 %v5465_v9, %v4391_v62 }
 0x103   :  { %8639 = vst [vmem:[#allocation231_spill] sm:$0xff] %v6616_v20  ;;  %2698 = vmatpush.bf16.msrb.mxu2 %v6618_v36  ;;  %2711 = vmatpush.bf16.msrb.mxu3 %v6623_v48  ;;  %v5629_v20 = vld [vmem:[#allocation5 + $0x7d0] sm:$0xf0]  ;;  %v5402_v2 = vld [vmem:[#allocation5 + $0xbc] sm:$0xf] }
 0x104   :  { %8640 = vst [vmem:[#allocation232_spill] sm:$0xff] %v6618_v36  ;;  %v5033_v36 = vld [vmem:[#allocation5 + $0x7b8] sm:$0xf]  ;;  %v2396_v54 = vpop.f32.mrf.mxu2  ;;  %v5458_v0 = vld [vmem:[#allocation5 + $0x27c] sm:$0xf] }
 0x105   :  { %8641 = vst [vmem:[#allocation233_spill] sm:$0xff] %v6623_v48  ;;  %2673 = vmatpush.bf16.msrb.mxu0 %v6627_v52  ;;  %2686 = vmatpush.bf16.msrb.mxu1 %v6632_v22  ;;  %v2420_v48 = vpop.f32.mrf.mxu0  ;;  %v4139_v49 = vld [vmem:[#allocation5 + $0xd4] sm:$0xf0]  ;;  %v6653_v30 = vor.u32 %v5629_v20, %v5033_v36  ;;  %v5622_v54 = vld [vmem:[#allocation5 + $0x798] sm:$0xf0] }
 0x106   :  { %8642 = vst [vmem:[#allocation234_spill] sm:$0xff] %v6627_v52  ;;  %v2421_v52 = vadd.f32 %v2420_v48, %v2408_v4  ;;  %v4363_v24 = vld [vmem:[#allocation5 + $0x294] sm:$0xf0]  ;;  %v6659_v48 = vor.u32 %v5402_v2, %v4139_v49  ;;  %v5005_v4 = vld [vmem:[#allocation5 + $0x780] sm:$0xf] }
 0x107   :  { %8643 = vst [vmem:[#allocation235_spill] sm:$0xff] %v6632_v22  ;;  %2699 = vmatpush.bf16.msrb.mxu2 %v6634_v10  ;;  %2712 = vmatpush.bf16.msrb.mxu3 %v6638_v63  ;;  %v2409_v22 = vpop.f32.mrf.mxu3  ;;  %v5229_v9 = vld [vmem:[#allocation5 + $0x940] sm:$0xf]  ;;  %v5678_v62 = vld [vmem:[#allocation5 + $0x958] sm:$0xf0]  ;;  %v6662_v20 = vor.u32 %v5458_v0, %v4363_v24  ;;  %v6665_v36 = vor.u32 %v5622_v54, %v5005_v4 }
 0x108   :  { %8644 = vst [vmem:[#allocation236_spill] sm:$0xff] %v6634_v10  ;;  %v2434_v1 = vadd.f32 %v2433_v11, %v2421_v52  ;;  %v6657_v10 = vor.u32 %v5685_v15, %v5257_v58  ;;  %v5395_v22 = vld [vmem:[#allocation5 + $0x84] sm:$0xf]  ;;  %v4335_v11 = vld [vmem:[#allocation5 + $0x25c] sm:$0xf0]  ;;  %v6669_v49 = vor.u32 %v5678_v62, %v5229_v9 }
 0x109   :  { %8645 = vst [vmem:[#allocation237_spill] sm:$0xff] %v6638_v63  ;;  %2674 = vmatpush.bf16.msrb.mxu0 %v6641_v13  ;;  %2687 = vmatpush.bf16.msrb.mxu1 %v6645_v53  ;;  %v4111_v63 = vld [vmem:[#allocation5 + $0x9c] sm:$0xf0]  ;;  %v5451_v52 = vld [vmem:[#allocation5 + $0x244] sm:$0xf] }
 0x10a   :  { %8646 = vst [vmem:[#allocation238_spill] sm:$0xff] %v6641_v13  ;;  %v6671_v58 = vor.u32 %v5395_v22, %v4111_v63  ;;  %v4977_v15 = vld [vmem:[#allocation5 + $0x748] sm:$0xf]  ;;  %v5615_v2 = vld [vmem:[#allocation5 + $0x760] sm:$0xf0]  ;;  %v6674_v4 = vor.u32 %v5451_v52, %v4335_v11 }
 0x10b   :  { %8647 = vst [vmem:[#allocation239_spill] sm:$0xff] %v6645_v53  ;;  %2700 = vmatpush.bf16.msrb.mxu2 %v6647_v28  ;;  %2713 = vmatpush.bf16.msrb.mxu3 %v6650_v37  ;;  %v5671_v0 = vld [vmem:[#allocation5 + $0x920] sm:$0xf0]  ;;  %v5388_v24 = vld [vmem:[#allocation5 + $0x4c] sm:$0xf]  ;;  %v6677_v9 = vor.u32 %v5615_v2, %v4977_v15 }
 0x10c   :  { %8648 = vst [vmem:[#allocation240_spill] sm:$0xff] %v6647_v28  ;;  %v5201_v28 = vld [vmem:[#allocation5 + $0x908] sm:$0xf]  ;;  %v5444_v54 = vld [vmem:[#allocation5 + $0x20c] sm:$0xf] }
 0x10d   :  { %8649 = vst [vmem:[#allocation241_spill] sm:$0xff] %v6650_v37  ;;  %2675 = vmatpush.bf16.msrb.mxu0 %v6653_v30  ;;  %2688 = vmatpush.bf16.msrb.mxu1 %v6657_v10  ;;  %v2422_v37 = vpop.f32.mrf.mxu0  ;;  %v4083_v53 = vld [vmem:[#allocation5 + $0x64] sm:$0xf0]  ;;  %v4949_v62 = vld [vmem:[#allocation5 + $0x710] sm:$0xf] }
 0x10e   :  { %8650 = vst [vmem:[#allocation242_spill] sm:$0xff] %v6653_v30  ;;  %v2435_v30 = vpop.f32.mrf.mxu1  ;;  %v4307_v63 = vld [vmem:[#allocation5 + $0x224] sm:$0xf0]  ;;  %v5608_v22 = vld [vmem:[#allocation5 + $0x728] sm:$0xf0]  ;;  %v6681_v37 = vor.u32 %v5671_v0, %v5201_v28 }
 0x10f   :  { %8651 = vst [vmem:[#allocation243_spill] sm:$0xff] %v6657_v10  ;;  %2701 = vmatpush.bf16.msrb.mxu2 %v6659_v48  ;;  %2714 = vmatpush.bf16.msrb.mxu3 %v6662_v20  ;;  %v2446_v10 = vpop.f32.mrf.mxu2  ;;  %v2459_v13 = vpop.f32.mrf.mxu3  ;;  %v6683_v30 = vor.u32 %v5388_v24, %v4083_v53  ;;  %v5173_v52 = vld [vmem:[#allocation5 + $0x8d0] sm:$0xf]  ;;  %v5664_v11 = vld [vmem:[#allocation5 + $0x8e8] sm:$0xf0]  ;;  %v6688_v2 = vor.u32 %v5444_v54, %v4307_v63 }
 0x110   :  { %8652 = vst [vmem:[#allocation244_spill] sm:$0xff] %v6659_v48  ;;  %v2447_v48 = vadd.f32 %v2446_v10, %v2434_v1  ;;  %v4055_v40 = vld [vmem:[#allocation5 + $0x2c] sm:$0xf0]  ;;  %v5542_v60 = vld [vmem:[#allocation5 + $0x51c] sm:$0xf]  ;;  %v6691_v28 = vor.u32 %v5608_v22, %v4949_v62 }
 0x111   :  { %8653 = vst [vmem:[#allocation245_spill] sm:$0xff] %v6662_v20  ;;  %2676 = vmatpush.bf16.msrb.mxu0 %v6665_v36  ;;  %2689 = vmatpush.bf16.msrb.mxu1 %v6669_v49  ;;  %v5381_v20 = vld [vmem:[#allocation5 + $0x14] sm:$0xf]  ;;  %v5598_v10 = vld [vmem:[#allocation5 + $0x6dc] sm:$0xf] }
 0x112   :  { %8654 = vst [vmem:[#allocation246_spill] sm:$0xff] %v6665_v36  ;;  %v4699_v36 = vld [vmem:[#allocation5 + $0x534] sm:$0xf0]  ;;  %v6685_v15 = vadd.f32 %v2459_v13, %v2447_v48  ;;  %v5437_v0 = vld [vmem:[#allocation5 + $0x1d4] sm:$0xf]  ;;  %v6695_v13 = vor.u32 %v5664_v11, %v5173_v52  ;;  %v6697_v48 = vor.u32 %v5381_v20, %v4055_v40 }
 0x113   :  { %8655 = vst [vmem:[#allocation247_spill] sm:$0xff] %v6669_v49  ;;  %2702 = vmatpush.bf16.msrb.mxu2 %v6671_v58  ;;  %2715 = vmatpush.bf16.msrb.mxu3 %v6674_v4  ;;  %v4923_v1 = vld [vmem:[#allocation5 + $0x6f4] sm:$0xf0]  ;;  %v5654_v49 = vld [vmem:[#allocation5 + $0x89c] sm:$0xf] }
 0x114   :  { %8656 = vst [vmem:[#allocation248_spill] sm:$0xff] %v6671_v58  ;;  %v5147_v53 = vld [vmem:[#allocation5 + $0x8b4] sm:$0xf0]  ;;  %v4279_v24 = vld [vmem:[#allocation5 + $0x1ec] sm:$0xf0]  ;;  %v6701_v58 = vor.u32 %v5598_v10, %v4923_v1 }
 0x115   :  { %8657 = vst [vmem:[#allocation249_spill] sm:$0xff] %v6674_v4  ;;  %2677 = vmatpush.bf16.msrb.mxu0 %v6677_v9  ;;  %2690 = vmatpush.bf16.msrb.mxu1 %v6681_v37  ;;  %v5710_v54 = vld [vmem:[#allocation5 + $0xa5c] sm:$0xf]  ;;  %v5371_v63 = vld [vmem:[#allocation5 + $0xa74] sm:$0xf0]  ;;  %v6699_v4 = vor.u32 %v5542_v60, %v4699_v36  ;;  %v6704_v62 = vor.u32 %v5654_v49, %v5147_v53 }
 0x116   :  { %8658 = vst [vmem:[#allocation250_spill] sm:$0xff] %v6677_v9  ;;  %v5535_v9 = vld [vmem:[#allocation5 + $0x4e4] sm:$0xf]  ;;  %v6706_v22 = vor.u32 %v5437_v0, %v4279_v24  ;;  %v6709_v40 = vor.u32 %v5710_v54, %v5371_v63  ;;  %v5119_v20 = vld [vmem:[#allocation5 + $0x87c] sm:$0xf0] }
 0x117   :  { %8659 = vst [vmem:[#allocation251_spill] sm:$0xff] %v6681_v37  ;;  %2703 = vmatpush.bf16.msrb.mxu2 %v6683_v30  ;;  %2716 = vmatpush.bf16.msrb.mxu3 %v6688_v2  ;;  %v4671_v37 = vld [vmem:[#allocation5 + $0x4fc] sm:$0xf0]  ;;  %v2448_v52 = vpop.f32.mrf.mxu2  ;;  %v2461_v11 = vpop.f32.mrf.mxu3  ;;  %v5647_v60 = vld [vmem:[#allocation5 + $0x864] sm:$0xf] }
 0x118   :  { %8660 = vst [vmem:[#allocation252_spill] sm:$0xff] %v6683_v30  ;;  %v4895_v30 = vld [vmem:[#allocation5 + $0x6bc] sm:$0xf0]  ;;  %v5703_v36 = vld [vmem:[#allocation5 + $0xa24] sm:$0xf]  ;;  %v6715_v10 = vor.u32 %v5535_v9, %v4671_v37  ;;  %v6721_v0 = vor.u32 %v5647_v60, %v5119_v20 }
 0x119   :  { %8661 = vst [vmem:[#allocation253_spill] sm:$0xff] %v6685_v15  ;;  %v5591_v15 = vld [vmem:[#allocation5 + $0x6a4] sm:$0xf]  ;;  %2678 = vmatpush.bf16.msrb.mxu0 %v6691_v28  ;;  %2691 = vmatpush.bf16.msrb.mxu1 %v6695_v13  ;;  %v5343_v49 = vld [vmem:[#allocation5 + $0xa3c] sm:$0xf0] }
 0x11a   :  { %8662 = vst [vmem:[#allocation254_spill] sm:$0xff] %v6688_v2  ;;  %v6717_v1 = vor.u32 %v5591_v15, %v4895_v30  ;;  %v5528_v53 = vld [vmem:[#allocation5 + $0x4ac] sm:$0xf]  ;;  %v4643_v24 = vld [vmem:[#allocation5 + $0x4c4] sm:$0xf0]  ;;  %v6725_v52 = vor.u32 %v5703_v36, %v5343_v49 }
 0x11b   :  { %8663 = vst [vmem:[#allocation255_spill] sm:$0xff] %v6691_v28  ;;  %2704 = vmatpush.bf16.msrb.mxu2 %v6697_v48  ;;  %2717 = vmatpush.bf16.msrb.mxu3 %v6706_v22  ;;  %v5584_v54 = vld [vmem:[#allocation5 + $0x66c] sm:$0xf]  ;;  %v4867_v63 = vld [vmem:[#allocation5 + $0x684] sm:$0xf0]  ;;  %v6731_v11 = vor.u32 %v5528_v53, %v4643_v24 }
 0x11c   :  { %8664 = vst [vmem:[#allocation256_spill] sm:$0xff] %v6695_v13  ;;  %2679 = vmatmul.bf16.vlgmr.msrb.gmra.mxu0 %v6148_v39  ;;  %v5640_v9 = vld [vmem:[#allocation5 + $0x82c] sm:$0xf]  ;;  %v5091_v37 = vld [vmem:[#allocation5 + $0x844] sm:$0xf0]  ;;  %2692 = vmatmul.bf16.vlgmr.msrb.gmra.mxu1 %v6150_v32  ;;  %v6733_v60 = vor.u32 %v5584_v54, %v4867_v63 }
 0x11d   :  { %8665 = vst [vmem:[#allocation257_spill] sm:$0xff] %v6697_v48  ;;  %2723 = vmatpush.bf16.msra.mxu0 %v6699_v4  ;;  %2736 = vmatpush.bf16.msra.mxu1 %v6701_v58  ;;  %v5696_v30 = vld [vmem:[#allocation5 + $0x9ec] sm:$0xf]  ;;  %v5315_v15 = vld [vmem:[#allocation5 + $0xa04] sm:$0xf0]  ;;  %v6736_v36 = vor.u32 %v5640_v9, %v5091_v37 }
 0x11e   :  { %8666 = vst [vmem:[#allocation258_spill] sm:$0xff] %v6699_v4  ;;  %2705 = vmatmul.bf16.vlgmr.msrb.gmra.mxu2 %v6083_v47  ;;  %v5521_v20 = vld [vmem:[#allocation5 + $0x474] sm:$0xf]  ;;  %v4615_v49 = vld [vmem:[#allocation5 + $0x48c] sm:$0xf0]  ;;  %2718 = vmatmul.bf16.vlgmr.msrb.gmra.mxu3 %v6085_v14 }
 0x11f   :  { %8667 = vst [vmem:[#allocation259_spill] sm:$0xff] %v6701_v58  ;;  %2749 = vmatpush.bf16.msra.mxu2 %v6704_v62  ;;  %2762 = vmatpush.bf16.msra.mxu3 %v6709_v40  ;;  %v5633_v48 = vld [vmem:[#allocation5 + $0x7f4] sm:$0xf]  ;;  %v5063_v2 = vld [vmem:[#allocation5 + $0x80c] sm:$0xf0]  ;;  %v6744_v54 = vor.u32 %v5521_v20, %v4615_v49 }
 0x120   :  { %8668 = vst [vmem:[#allocation260_spill] sm:$0xff] %v6704_v62  ;;  %v4839_v62 = vld [vmem:[#allocation5 + $0x64c] sm:$0xf0]  ;;  %v5689_v53 = vld [vmem:[#allocation5 + $0x9b4] sm:$0xf]  ;;  %v6749_v37 = vor.u32 %v5633_v48, %v5063_v2 }
 0x121   :  { %8669 = vst [vmem:[#allocation261_spill] sm:$0xff] %v6706_v22  ;;  %2724 = vmatpush.bf16.msra.mxu0 %v6715_v10  ;;  %2737 = vmatpush.bf16.msra.mxu1 %v6717_v1  ;;  %v6740_v22 = vor.u32 %v5696_v30, %v5315_v15  ;;  %v5287_v24 = vld [vmem:[#allocation5 + $0x9cc] sm:$0xf0]  ;;  %v5514_v9 = vld [vmem:[#allocation5 + $0x43c] sm:$0xf] }
 0x122   :  { %8670 = vst [vmem:[#allocation262_spill] sm:$0xff] %v6709_v40  ;;  %v5577_v40 = vld [vmem:[#allocation5 + $0x634] sm:$0xf]  ;;  %v5570_v30 = vld [vmem:[#allocation5 + $0x5fc] sm:$0xf] }
 0x123   :  { %8671 = vst [vmem:[#allocation263_spill] sm:$0xff] %v6715_v10  ;;  %2750 = vmatpush.bf16.msra.mxu2 %v6721_v0  ;;  %2763 = vmatpush.bf16.msra.mxu3 %v6725_v52  ;;  %v6746_v63 = vor.u32 %v5577_v40, %v4839_v62  ;;  %v4811_v15 = vld [vmem:[#allocation5 + $0x614] sm:$0xf0]  ;;  %v5682_v20 = vld [vmem:[#allocation5 + $0x97c] sm:$0xf] }
 0x124   :  { %8672 = vst [vmem:[#allocation264_spill] sm:$0xff] %v6717_v1  ;;  %v6752_v1 = vor.u32 %v5689_v53, %v5287_v24  ;;  %v5035_v10 = vld [vmem:[#allocation5 + $0x7d4] sm:$0xf0]  ;;  %v6758_v48 = vor.u32 %v5570_v30, %v4811_v15  ;;  %v5507_v40 = vld [vmem:[#allocation5 + $0x404] sm:$0xf] }
 0x125   :  { %8673 = vst [vmem:[#allocation265_spill] sm:$0xff] %v6721_v0  ;;  %2725 = vmatpush.bf16.msra.mxu0 %v6731_v11  ;;  %2738 = vmatpush.bf16.msra.mxu1 %v6733_v60  ;;  %v2472_v0 = vpop.f32.mrf.mxu0  ;;  %v5259_v49 = vld [vmem:[#allocation5 + $0x994] sm:$0xf0]  ;;  %v4559_v53 = vld [vmem:[#allocation5 + $0x41c] sm:$0xf0] }
 0x126   :  { %8674 = vst [vmem:[#allocation266_spill] sm:$0xff] %v6725_v52  ;;  %v4587_v52 = vld [vmem:[#allocation5 + $0x454] sm:$0xf0]  ;;  %v5563_v24 = vld [vmem:[#allocation5 + $0x5c4] sm:$0xf]  ;;  %v6764_v58 = vor.u32 %v5682_v20, %v5259_v49 }
 0x127   :  { %8675 = vst [vmem:[#allocation267_spill] sm:$0xff] %v6731_v11  ;;  %2751 = vmatpush.bf16.msra.mxu2 %v6736_v36  ;;  %2764 = vmatpush.bf16.msra.mxu3 %v6740_v22  ;;  %v5626_v11 = vld [vmem:[#allocation5 + $0x7bc] sm:$0xf]  ;;  %v6756_v2 = vor.u32 %v5514_v9, %v4587_v52  ;;  %v6768_v52 = vor.u32 %v5507_v40, %v4559_v53  ;;  %v4531_v15 = vld [vmem:[#allocation5 + $0x3e4] sm:$0xf0] }
 0x128   :  { %8676 = vst [vmem:[#allocation268_spill] sm:$0xff] %v6733_v60  ;;  %v2485_v60 = vpop.f32.mrf.mxu1  ;;  %v5556_v20 = vld [vmem:[#allocation5 + $0x58c] sm:$0xf]  ;;  %v4755_v49 = vld [vmem:[#allocation5 + $0x5a4] sm:$0xf0] }
 0x129   :  { %8677 = vst [vmem:[#allocation269_spill] sm:$0xff] %v6736_v36  ;;  %v2486_v62 = vadd.f32 %v2485_v60, %v2472_v0  ;;  %2726 = vmatpush.bf16.msra.mxu0 %v6744_v54  ;;  %2739 = vmatpush.bf16.msra.mxu1 %v6746_v63  ;;  %v4783_v36 = vld [vmem:[#allocation5 + $0x5dc] sm:$0xf0]  ;;  %v5619_v0 = vld [vmem:[#allocation5 + $0x784] sm:$0xf] }
 0x12a   :  { %8678 = vst [vmem:[#allocation270_spill] sm:$0xff] %v6740_v22  ;;  %v6761_v22 = vor.u32 %v5626_v11, %v5035_v10  ;;  %v5007_v60 = vld [vmem:[#allocation5 + $0x79c] sm:$0xf0]  ;;  %v6770_v9 = vor.u32 %v5563_v24, %v4783_v36  ;;  %v5500_v10 = vld [vmem:[#allocation5 + $0x3cc] sm:$0xf]  ;;  %v2498_v11 = vpop.f32.mrf.mxu2  ;;  %v2511_v36 = vpop.f32.mrf.mxu3 }
 0x12b   :  { %8679 = vst [vmem:[#allocation271_spill] sm:$0xff] %v6744_v54  ;;  %2752 = vmatpush.bf16.msra.mxu2 %v6749_v37  ;;  %2765 = vmatpush.bf16.msra.mxu3 %v6752_v1  ;;  %v5675_v54 = vld [vmem:[#allocation5 + $0x944] sm:$0xf]  ;;  %v6773_v30 = vor.u32 %v5619_v0, %v5007_v60  ;;  %v4979_v40 = vld [vmem:[#allocation5 + $0x764] sm:$0xf0]  ;;  %v6782_v0 = vor.u32 %v5500_v10, %v4531_v15 }
 0x12c   :  { %8680 = vst [vmem:[#allocation272_spill] sm:$0xff] %v6746_v63  ;;  %v5231_v63 = vld [vmem:[#allocation5 + $0x95c] sm:$0xf0]  ;;  %v5668_v24 = vld [vmem:[#allocation5 + $0x90c] sm:$0xf] }
 0x12d   :  { %8681 = vst [vmem:[#allocation273_spill] sm:$0xff] %v6749_v37  ;;  %2727 = vmatpush.bf16.msra.mxu0 %v6756_v2  ;;  %2740 = vmatpush.bf16.msra.mxu1 %v6758_v48  ;;  %v2499_v37 = vadd.f32 %v2498_v11, %v2486_v62  ;;  %v5203_v13 = vld [vmem:[#allocation5 + $0x924] sm:$0xf0]  ;;  %v5493_v62 = vld [vmem:[#allocation5 + $0x394] sm:$0xf] }
 0x12e   :  { %8682 = vst [vmem:[#allocation274_spill] sm:$0xff] %v6752_v1  ;;  %v2474_v1 = vpop.f32.mrf.mxu0  ;;  %v4503_v60 = vld [vmem:[#allocation5 + $0x3ac] sm:$0xf0]  ;;  %v4481_v10 = vld [vmem:[#allocation5 + $0x360] sm:$0xf] }
 0x12f   :  { %8683 = vst [vmem:[#allocation275_spill] sm:$0xff] %v6756_v2  ;;  %2753 = vmatpush.bf16.msra.mxu2 %v6761_v22  ;;  %2766 = vmatpush.bf16.msra.mxu3 %v6764_v58  ;;  %v6776_v2 = vor.u32 %v5675_v54, %v5231_v63  ;;  %v6778_v4 = vadd.f32 %v2511_v36, %v2499_v37  ;;  %v5549_v54 = vld [vmem:[#allocation5 + $0x554] sm:$0xf]  ;;  %v4727_v11 = vld [vmem:[#allocation5 + $0x56c] sm:$0xf0] }
 0x130   :  { %8684 = vst [vmem:[#allocation276_spill] sm:$0xff] %v6758_v48  ;;  %v5612_v48 = vld [vmem:[#allocation5 + $0x74c] sm:$0xf]  ;;  %v2487_v53 = vpop.f32.mrf.mxu1  ;;  %v6784_v1 = vor.u32 %v5556_v20, %v4755_v49  ;;  %v6790_v37 = vor.u32 %v5668_v24, %v5203_v13  ;;  %v4257_v36 = vld [vmem:[#allocation5 + $0x1a0] sm:$0xf] }
 0x131   :  { %8685 = vst [vmem:[#allocation277_spill] sm:$0xff] %v6761_v22  ;;  %2728 = vmatpush.bf16.msra.mxu0 %v6768_v52  ;;  %2741 = vmatpush.bf16.msra.mxu1 %v6770_v9  ;;  %v6787_v63 = vor.u32 %v5612_v48, %v4979_v40  ;;  %v5605_v53 = vld [vmem:[#allocation5 + $0x714] sm:$0xf]  ;;  %v5434_v22 = vld [vmem:[#allocation5 + $0x1b8] sm:$0xf0]  ;;  %v6796_v48 = vor.u32 %v5549_v54, %v4727_v11 }
 0x132   :  { %8686 = vst [vmem:[#allocation278_spill] sm:$0xff] %v6764_v58  ;;  %v4951_v58 = vld [vmem:[#allocation5 + $0x72c] sm:$0xf0]  ;;  %v5490_v15 = vld [vmem:[#allocation5 + $0x378] sm:$0xf0]  ;;  %v6801_v24 = vor.u32 %v5434_v22, %v4257_v36  ;;  %v2513_v11 = vpop.f32.mrf.mxu3 }
 0x133   :  { %8687 = vst [vmem:[#allocation279_spill] sm:$0xff] %v6768_v52  ;;  %2754 = vmatpush.bf16.msra.mxu2 %v6773_v30  ;;  %2767 = vmatpush.bf16.msra.mxu3 %v6776_v2  ;;  %v4705_v20 = vld [vmem:[#allocation5 + $0x520] sm:$0xf]  ;;  %v5546_v49 = vld [vmem:[#allocation5 + $0x538] sm:$0xf0]  ;;  %v2500_v52 = vpop.f32.mrf.mxu2  ;;  %v6799_v13 = vor.u32 %v5605_v53, %v4951_v58 }
 0x134   :  { %8688 = vst [vmem:[#allocation280_spill] sm:$0xff] %v6770_v9  ;;  %v5661_v40 = vld [vmem:[#allocation5 + $0x8d4] sm:$0xf]  ;;  %v5175_v9 = vld [vmem:[#allocation5 + $0x8ec] sm:$0xf0] }
 0x135   :  { %8689 = vst [vmem:[#allocation281_spill] sm:$0xff] %v6773_v30  ;;  %2729 = vmatpush.bf16.msra.mxu0 %v6782_v0  ;;  %2742 = vmatpush.bf16.msra.mxu1 %v6784_v1  ;;  %v6794_v30 = vor.u32 %v5493_v62, %v4503_v60  ;;  %v5602_v28 = vld [vmem:[#allocation5 + $0x6f8] sm:$0xf0]  ;;  %v4229_v62 = vld [vmem:[#allocation5 + $0x168] sm:$0xf]  ;;  %v6808_v35 = vor.u32 %v5661_v40, %v5175_v9 }
 0x136   :  { %8690 = vst [vmem:[#allocation282_spill] sm:$0xff] %v6776_v2  ;;  %v4929_v2 = vld [vmem:[#allocation5 + $0x6e0] sm:$0xf]  ;;  %v5427_v60 = vld [vmem:[#allocation5 + $0x180] sm:$0xf0] }
 0x137   :  { %8691 = vst [vmem:[#allocation283_spill] sm:$0xff] %v6782_v0  ;;  %2755 = vmatpush.bf16.msra.mxu2 %v6787_v63  ;;  %2768 = vmatpush.bf16.msra.mxu3 %v6790_v37  ;;  %v6804_v0 = vor.u32 %v5490_v15, %v4481_v10  ;;  %v4453_v54 = vld [vmem:[#allocation5 + $0x328] sm:$0xf]  ;;  %v5483_v52 = vld [vmem:[#allocation5 + $0x340] sm:$0xf0]  ;;  %v6812_v22 = vor.u32 %v5602_v28, %v4929_v2 }
 0x138   :  { %8692 = vst [vmem:[#allocation284_spill] sm:$0xff] %v6784_v1  ;;  %v6806_v1 = vor.u32 %v5546_v49, %v4705_v20  ;;  %v5539_v58 = vld [vmem:[#allocation5 + $0x500] sm:$0xf0]  ;;  %v6816_v53 = vor.u32 %v5427_v60, %v4229_v62  ;;  %v4901_v36 = vld [vmem:[#allocation5 + $0x6a8] sm:$0xf]  ;;  %v6820_v9 = vor.u32 %v5483_v52, %v4453_v54 }
 0x139   :  { %8693 = vst [vmem:[#allocation285_spill] sm:$0xff] %v6787_v63  ;;  %v4677_v63 = vld [vmem:[#allocation5 + $0x4e8] sm:$0xf]  ;;  %2730 = vmatpush.bf16.msra.mxu0 %v6794_v30  ;;  %2743 = vmatpush.bf16.msra.mxu1 %v6796_v48  ;;  %v5595_v10 = vld [vmem:[#allocation5 + $0x6c0] sm:$0xf0] }
 0x13a   :  { %8694 = vst [vmem:[#allocation286_spill] sm:$0xff] %v6790_v37  ;;  %v6822_v15 = vor.u32 %v5539_v58, %v4677_v63  ;;  %v4201_v20 = vld [vmem:[#allocation5 + $0x130] sm:$0xf]  ;;  %v5420_v49 = vld [vmem:[#allocation5 + $0x148] sm:$0xf0]  ;;  %v6827_v62 = vor.u32 %v5595_v10, %v4901_v36 }
 0x13b   :  { %8695 = vst [vmem:[#allocation287_spill] sm:$0xff] %v6794_v30  ;;  %2756 = vmatpush.bf16.msra.mxu2 %v6799_v13  ;;  %v4425_v28 = vld [vmem:[#allocation5 + $0x2f0] sm:$0xf]  ;;  %2769 = vmatpush.bf16.msra.mxu3 %v6808_v35  ;;  %v5476_v2 = vld [vmem:[#allocation5 + $0x308] sm:$0xf0]  ;;  %v6831_v63 = vor.u32 %v5420_v49, %v4201_v20 }
 0x13c   :  { %8696 = vst [vmem:[#allocation288_spill] sm:$0xff] %v6796_v48  ;;  %v4649_v40 = vld [vmem:[#allocation5 + $0x4b0] sm:$0xf]  ;;  %v5532_v11 = vld [vmem:[#allocation5 + $0x4c8] sm:$0xf0]  ;;  %2731 = vmatmul.bf16.vlgmr.msra.gmra.mxu0 %v6087_v26  ;;  %2744 = vmatmul.bf16.vlgmr.msra.gmra.mxu1 %v6089_v31  ;;  %v6836_v52 = vor.u32 %v5476_v2, %v4425_v28 }
 0x13d   :  { %8697 = vst [vmem:[#allocation289_spill] sm:$0xff] %v6799_v13  ;;  %2775 = vmatpush.bf16.msrb.mxu0 %v6801_v24  ;;  %2788 = vmatpush.bf16.msrb.mxu1 %v6804_v0  ;;  %v4873_v60 = vld [vmem:[#allocation5 + $0x670] sm:$0xf]  ;;  %v5588_v54 = vld [vmem:[#allocation5 + $0x688] sm:$0xf0]  ;;  %v6838_v58 = vor.u32 %v5532_v11, %v4649_v40 }
 0x13e   :  { %8698 = vst [vmem:[#allocation290_spill] sm:$0xff] %v6801_v24  ;;  %2757 = vmatmul.bf16.vlgmr.msra.gmra.mxu2 %v6148_v39  ;;  %v4173_v36 = vld [vmem:[#allocation5 + $0xf8] sm:$0xf]  ;;  %v5413_v10 = vld [vmem:[#allocation5 + $0x110] sm:$0xf0]  ;;  %2770 = vmatmul.bf16.vlgmr.msra.gmra.mxu3 %v6150_v32  ;;  %v6842_v20 = vor.u32 %v5588_v54, %v4873_v60 }
 0x13f   :  { %8699 = vst [vmem:[#allocation291_spill] sm:$0xff] %v6804_v0  ;;  %2801 = vmatpush.bf16.msrb.mxu2 %v6806_v1  ;;  %2814 = vmatpush.bf16.msrb.mxu3 %v6812_v22  ;;  %v5525_v13 = vld [vmem:[#allocation5 + $0x490] sm:$0xf0]  ;;  %v6845_v49 = vor.u32 %v5413_v10, %v4173_v36  ;;  %v4845_v28 = vld [vmem:[#allocation5 + $0x638] sm:$0xf]  ;;  %v2537_v10 = vpop.f32.mrf.mxu1 }
 0x140   :  { %8700 = vst [vmem:[#allocation292_spill] sm:$0xff] %v6806_v1  ;;  %v5469_v1 = vld [vmem:[#allocation5 + $0x2d0] sm:$0xf0]  ;;  %v4145_v37 = vld [vmem:[#allocation5 + $0xc0] sm:$0xf] }
 0x141   :  { %8701 = vst [vmem:[#allocation293_spill] sm:$0xff] %v6808_v35  ;;  %2776 = vmatpush.bf16.msrb.mxu0 %v6816_v53  ;;  %2789 = vmatpush.bf16.msrb.mxu1 %v6820_v9  ;;  %v4621_v35 = vld [vmem:[#allocation5 + $0x478] sm:$0xf]  ;;  %v5581_v2 = vld [vmem:[#allocation5 + $0x650] sm:$0xf0] }
 0x142   :  { %8702 = vst [vmem:[#allocation294_spill] sm:$0xff] %v6812_v22  ;;  %v4397_v22 = vld [vmem:[#allocation5 + $0x2b8] sm:$0xf]  ;;  %v6851_v11 = vor.u32 %v5525_v13, %v4621_v35  ;;  %v5462_v54 = vld [vmem:[#allocation5 + $0x298] sm:$0xf0] }
 0x143   :  { %8703 = vst [vmem:[#allocation295_spill] sm:$0xff] %v6816_v53  ;;  %2802 = vmatpush.bf16.msrb.mxu2 %v6822_v15  ;;  %2815 = vmatpush.bf16.msrb.mxu3 %v6827_v62  ;;  %v6849_v40 = vor.u32 %v5469_v1, %v4397_v22  ;;  %v5518_v36 = vld [vmem:[#allocation5 + $0x458] sm:$0xf0]  ;;  %v6855_v53 = vor.u32 %v5581_v2, %v4845_v28  ;;  %v4817_v13 = vld [vmem:[#allocation5 + $0x600] sm:$0xf] }
 0x144   :  { %8704 = vst [vmem:[#allocation296_spill] sm:$0xff] %v6820_v9  ;;  %v5406_v9 = vld [vmem:[#allocation5 + $0xd8] sm:$0xf0]  ;;  %v4341_v28 = vld [vmem:[#allocation5 + $0x248] sm:$0xf] }
 0x145   :  { %8705 = vst [vmem:[#allocation297_spill] sm:$0xff] %v6822_v15  ;;  %2777 = vmatpush.bf16.msrb.mxu0 %v6831_v63  ;;  %2790 = vmatpush.bf16.msrb.mxu1 %v6836_v52  ;;  %v2524_v15 = vpop.f32.mrf.mxu0  ;;  %v6858_v1 = vor.u32 %v5406_v9, %v4145_v37  ;;  %v5574_v22 = vld [vmem:[#allocation5 + $0x618] sm:$0xf0]  ;;  %v5455_v2 = vld [vmem:[#allocation5 + $0x260] sm:$0xf0] }
 0x146   :  { %8706 = vst [vmem:[#allocation298_spill] sm:$0xff] %v6827_v62  ;;  %v4369_v62 = vld [vmem:[#allocation5 + $0x280] sm:$0xf]  ;;  %v2525_v60 = vadd.f32 %v2524_v15, %v6778_v4  ;;  %v6869_v37 = vor.u32 %v5574_v22, %v4817_v13  ;;  %v5448_v13 = vld [vmem:[#allocation5 + $0x228] sm:$0xf0] }
 0x147   :  { %8707 = vst [vmem:[#allocation299_spill] sm:$0xff] %v6831_v63  ;;  %2803 = vmatpush.bf16.msrb.mxu2 %v6838_v58  ;;  %v4593_v63 = vld [vmem:[#allocation5 + $0x440] sm:$0xf]  ;;  %2816 = vmatpush.bf16.msrb.mxu3 %v6842_v20  ;;  %v6864_v4 = vor.u32 %v5462_v54, %v4369_v62  ;;  %v6876_v62 = vor.u32 %v5455_v2, %v4341_v28  ;;  %v4089_v54 = vld [vmem:[#allocation5 + $0x50] sm:$0xf] }
 0x148   :  { %8708 = vst [vmem:[#allocation300_spill] sm:$0xff] %v6836_v52  ;;  %v6860_v35 = vadd.f32 %v2537_v10, %v2525_v60  ;;  %v6866_v15 = vor.u32 %v5518_v36, %v4593_v63  ;;  %v4565_v52 = vld [vmem:[#allocation5 + $0x408] sm:$0xf]  ;;  %v5567_v10 = vld [vmem:[#allocation5 + $0x5e0] sm:$0xf0] }
 0x149   :  { %8709 = vst [vmem:[#allocation301_spill] sm:$0xff] %v6838_v58  ;;  %2778 = vmatpush.bf16.msrb.mxu0 %v6845_v49  ;;  %2791 = vmatpush.bf16.msrb.mxu1 %v6849_v40  ;;  %v4117_v58 = vld [vmem:[#allocation5 + $0x88] sm:$0xf]  ;;  %v5392_v36 = vld [vmem:[#allocation5 + $0x68] sm:$0xf0] }
 0x14a   :  { %8710 = vst [vmem:[#allocation302_spill] sm:$0xff] %v6842_v20  ;;  %v5399_v20 = vld [vmem:[#allocation5 + $0xa0] sm:$0xf0]  ;;  %v4789_v60 = vld [vmem:[#allocation5 + $0x5c8] sm:$0xf] }
 0x14b   :  { %8711 = vst [vmem:[#allocation303_spill] sm:$0xff] %v6845_v49  ;;  %2804 = vmatpush.bf16.msrb.mxu2 %v6851_v11  ;;  %v5511_v49 = vld [vmem:[#allocation5 + $0x420] sm:$0xf0]  ;;  %2817 = vmatpush.bf16.msrb.mxu3 %v6855_v53  ;;  %v6872_v9 = vor.u32 %v5399_v20, %v4117_v58  ;;  %v4537_v22 = vld [vmem:[#allocation5 + $0x3d0] sm:$0xf]  ;;  %v6881_v58 = vor.u32 %v5567_v10, %v4789_v60 }
 0x14c   :  { %8712 = vst [vmem:[#allocation304_spill] sm:$0xff] %v6849_v40  ;;  %v6878_v63 = vor.u32 %v5511_v49, %v4565_v52  ;;  %v5504_v40 = vld [vmem:[#allocation5 + $0x3e8] sm:$0xf0]  ;;  %v6884_v20 = vor.u32 %v5392_v36, %v4089_v54  ;;  %v4761_v28 = vld [vmem:[#allocation5 + $0x590] sm:$0xf]  ;;  %v2550_v49 = vpop.f32.mrf.mxu2 }
 0x14d   :  { %8713 = vst [vmem:[#allocation305_spill] sm:$0xff] %v6851_v11  ;;  %2779 = vmatpush.bf16.msrb.mxu0 %v6858_v1  ;;  %2792 = vmatpush.bf16.msrb.mxu1 %v6864_v4  ;;  %v4313_v11 = vld [vmem:[#allocation5 + $0x210] sm:$0xf]  ;;  %v5560_v2 = vld [vmem:[#allocation5 + $0x5a8] sm:$0xf0] }
 0x14e   :  { %8714 = vst [vmem:[#allocation306_spill] sm:$0xff] %v6855_v53  ;;  %v2526_v53 = vpop.f32.mrf.mxu0  ;;  %v4061_v52 = vld [vmem:[#allocation5 + $0x18] sm:$0xf]  ;;  %v5441_v60 = vld [vmem:[#allocation5 + $0x1f0] sm:$0xf0]  ;;  %v6893_v54 = vor.u32 %v5560_v2, %v4761_v28 }
 0x14f   :  { %8715 = vst [vmem:[#allocation307_spill] sm:$0xff] %v6858_v1  ;;  %2805 = vmatpush.bf16.msrb.mxu2 %v6866_v15  ;;  %v2539_v1 = vpop.f32.mrf.mxu1  ;;  %2818 = vmatpush.bf16.msrb.mxu3 %v6869_v37  ;;  %v6888_v53 = vor.u32 %v5448_v13, %v4313_v11  ;;  %v4509_v10 = vld [vmem:[#allocation5 + $0x398] sm:$0xf]  ;;  %v5658_v36 = vld [vmem:[#allocation5 + $0x8b8] sm:$0xf0] }
 0x150   :  { %8716 = vst [vmem:[#allocation308_spill] sm:$0xff] %v6864_v4  ;;  %v5385_v1 = vld [vmem:[#allocation5 + $0x30] sm:$0xf0]  ;;  %v5377_v0 = vld [vmem:[#allocation5 + $0xa60] sm:$0xf] }
 0x151   :  { %8717 = vst [vmem:[#allocation309_spill] sm:$0xff] %v6866_v15  ;;  %2780 = vmatpush.bf16.msrb.mxu0 %v6872_v9  ;;  %2793 = vmatpush.bf16.msrb.mxu1 %v6876_v62  ;;  %v6890_v15 = vor.u32 %v5504_v40, %v4537_v22  ;;  %v5497_v4 = vld [vmem:[#allocation5 + $0x3b0] sm:$0xf0]  ;;  %v5714_v48 = vld [vmem:[#allocation5 + $0xa78] sm:$0xf0]  ;;  %v6896_v11 = vor.u32 %v5385_v1, %v4061_v52 }
 0x152   :  { %8718 = vst [vmem:[#allocation310_spill] sm:$0xff] %v6869_v37  ;;  %v4285_v37 = vld [vmem:[#allocation5 + $0x1d8] sm:$0xf]  ;;  %v5553_v13 = vld [vmem:[#allocation5 + $0x570] sm:$0xf0]  ;;  %v6906_v2 = vor.u32 %v5714_v48, %v5377_v0 }
 0x153   :  { %8719 = vst [vmem:[#allocation311_spill] sm:$0xff] %v6872_v9  ;;  %2806 = vmatpush.bf16.msrb.mxu2 %v6878_v63  ;;  %v5153_v9 = vld [vmem:[#allocation5 + $0x8a0] sm:$0xf]  ;;  %2819 = vmatpush.bf16.msrb.mxu3 %v6881_v58  ;;  %v4733_v40 = vld [vmem:[#allocation5 + $0x558] sm:$0xf] }
 0x154   :  { %8720 = vst [vmem:[#allocation312_spill] sm:$0xff] %v6876_v62  ;;  %v2563_v62 = vpop.f32.mrf.mxu3  ;;  %v6904_v28 = vor.u32 %v5658_v36, %v5153_v9  ;;  %v5125_v24 = vld [vmem:[#allocation5 + $0x868] sm:$0xf]  ;;  %v6909_v52 = vor.u32 %v5553_v13, %v4733_v40  ;;  %v5651_v1 = vld [vmem:[#allocation5 + $0x880] sm:$0xf0] }
 0x155   :  { %8721 = vst [vmem:[#allocation313_spill] sm:$0xff] %v6878_v63  ;;  %2781 = vmatpush.bf16.msrb.mxu0 %v6884_v20  ;;  %v2564_v22 = vadd.f32 %v2563_v62, %v2550_v49  ;;  %2794 = vmatpush.bf16.msrb.mxu1 %v6888_v53  ;;  %v6900_v63 = vor.u32 %v5441_v60, %v4285_v37  ;;  %v5707_v62 = vld [vmem:[#allocation5 + $0xa40] sm:$0xf0]  ;;  %v2552_v49 = vpop.f32.mrf.mxu2  ;;  %v5644_v37 = vld [vmem:[#allocation5 + $0x848] sm:$0xf0] }
 0x156   :  { %8722 = vst [vmem:[#allocation314_spill] sm:$0xff] %v6881_v58  ;;  %v6902_v58 = vor.u32 %v5497_v4, %v4509_v10  ;;  %v6916_v0 = vor.u32 %v5651_v1, %v5125_v24  ;;  %v5097_v4 = vld [vmem:[#allocation5 + $0x830] sm:$0xf]  ;;  %v5700_v60 = vld [vmem:[#allocation5 + $0xa08] sm:$0xf0] }
 0x157   :  { %8723 = vst [vmem:[#allocation315_spill] sm:$0xff] %v6884_v20  ;;  %2807 = vmatpush.bf16.msrb.mxu2 %v6890_v15  ;;  %2820 = vmatpush.bf16.msrb.mxu3 %v6893_v54  ;;  %v5349_v20 = vld [vmem:[#allocation5 + $0xa28] sm:$0xf]  ;;  %v5321_v9 = vld [vmem:[#allocation5 + $0x9f0] sm:$0xf]  ;;  %v6928_v24 = vor.u32 %v5644_v37, %v5097_v4 }
 0x158   :  { %8724 = vst [vmem:[#allocation316_spill] sm:$0xff] %v6888_v53  ;;  %v6918_v48 = vor.u32 %v5707_v62, %v5349_v20  ;;  %v6930_v20 = vor.u32 %v5700_v60, %v5321_v9  ;;  %v5069_v36 = vld [vmem:[#allocation5 + $0x7f8] sm:$0xf]  ;;  %v5637_v40 = vld [vmem:[#allocation5 + $0x810] sm:$0xf0] }
 0x159   :  { %8725 = vst [vmem:[#allocation317_spill] sm:$0xff] %v6896_v11  ;;  %2782 = vmatpush.bf16.msrb.mxu0 %v6896_v11  ;;  %2795 = vmatpush.bf16.msrb.mxu1 %v6900_v63  ;;  %v5293_v13 = vld [vmem:[#allocation5 + $0x9b8] sm:$0xf]  ;;  %v5693_v1 = vld [vmem:[#allocation5 + $0x9d0] sm:$0xf0]  ;;  %v2576_v37 = vpop.f32.mrf.mxu0  ;;  %v2589_v9 = vpop.f32.mrf.mxu1 }
 0x15a   :  { %8726 = vst [vmem:[#allocation318_spill] sm:$0xff] %v6900_v63  ;;  %v5630_v62 = vld [vmem:[#allocation5 + $0x7d8] sm:$0xf0]  ;;  %v5265_v49 = vld [vmem:[#allocation5 + $0x980] sm:$0xf] }
 0x15b   :  { %8727 = vst [vmem:[#allocation319_spill] sm:$0xff] %v6904_v28  ;;  %2808 = vmatpush.bf16.msrb.mxu2 %v6902_v58  ;;  %2821 = vmatpush.bf16.msrb.mxu3 %v6909_v52  ;;  %v5686_v4 = vld [vmem:[#allocation5 + $0x998] sm:$0xf0] }
 0x15c   :  { %8728 = vst [vmem:[#allocation320_spill] sm:$0xff] %v6906_v2  ;;  %v2565_v10 = vpop.f32.mrf.mxu3  ;;  %2783 = vmatmul.bf16.vlgmr.msrb.gmra.mxu0 %v6083_v47  ;;  %2796 = vmatmul.bf16.vlgmr.msrb.gmra.mxu1 %v6085_v14  ;;  %v6937_v47 = vor.u32 %v5637_v40, %v5069_v36  ;;  %v5041_v14 = vld [vmem:[#allocation5 + $0x7c0] sm:$0xf]  ;;  %v5013_v36 = vld [vmem:[#allocation5 + $0x788] sm:$0xf] }
 0x15d   :  { %2827 = vmatpush.bf16.msra.mxu0 %v6904_v28  ;;  %2840 = vmatpush.bf16.msra.mxu1 %v6906_v2  ;;  %8729 = vst [vmem:[#allocation321_spill] sm:$0xff] %v6916_v0  ;;  %v6945_v60 = vor.u32 %v5630_v62, %v5041_v14  ;;  %v6947_v10 = vor.u32 %v5686_v4, %v5265_v49  ;;  %v4985_v14 = vld [vmem:[#allocation5 + $0x750] sm:$0xf]  ;;  %v5616_v49 = vld [vmem:[#allocation5 + $0x768] sm:$0xf0] }
 0x15e   :  { %8730 = vst [vmem:[#allocation322_spill] sm:$0xff] %v6918_v48  ;;  %2809 = vmatmul.bf16.vlgmr.msrb.gmra.mxu2 %v6087_v26  ;;  %2822 = vmatmul.bf16.vlgmr.msrb.gmra.mxu3 %v6089_v31  ;;  %v6939_v26 = vor.u32 %v5693_v1, %v5293_v13  ;;  %v2577_v31 = vadd.f32 %v2576_v37, %v2564_v22  ;;  %v5623_v13 = vld [vmem:[#allocation5 + $0x7a0] sm:$0xf0]  ;;  %v5237_v1 = vld [vmem:[#allocation5 + $0x948] sm:$0xf] }
 0x15f   :  { %2874 = vmatpush.bf16.msra.mxu2 %v5858_v3  ;;  %2887 = vmatpush.bf16.msra.mxu3 %v5860_v7  ;;  %8731 = vst [vmem:[#allocation323_spill] sm:$0xff] %v6928_v24  ;;  %v6953_v22 = vor.u32 %v5623_v13, %v5013_v36  ;;  %v5209_v4 = vld [vmem:[#allocation5 + $0x910] sm:$0xf]  ;;  %v4957_v13 = vld [vmem:[#allocation5 + $0x718] sm:$0xf] }
 0x160   :  { %v2590_v40 = vadd.f32 %v2589_v9, %v2577_v31  ;;  %v5672_v31 = vld [vmem:[#allocation5 + $0x928] sm:$0xf0] }
 0x161   :  { %2828 = vmatpush.bf16.msra.mxu0 %v6916_v0  ;;  %2841 = vmatpush.bf16.msra.mxu1 %v6918_v48  ;;  %v2602_v62 = vpop.f32.mrf.mxu2  ;;  %v2578_v9 = vpop.f32.mrf.mxu0  ;;  %v6965_v36 = vor.u32 %v5672_v31, %v5209_v4 }
 0x162   :  { %v5181_v9 = vld [vmem:[#allocation5 + $0x8d8] sm:$0xf] }
 0x163   :  { %2875 = vmatpush.bf16.msra.mxu2 %v5869_v16  ;;  %2888 = vmatpush.bf16.msra.mxu3 %v5871_v17 }
 0x165   :  { %2829 = vmatpush.bf16.msra.mxu0 %v6928_v24  ;;  %2842 = vmatpush.bf16.msra.mxu1 %v6930_v20 }
 0x167   :  { %2876 = vmatpush.bf16.msra.mxu2 %v5879_v29  ;;  %2889 = vmatpush.bf16.msra.mxu3 %v5883_v33  ;;  %v5679_v29 = vld [vmem:[#allocation5 + $0x960] sm:$0xf0]  ;;  %v2615_v33 = vpop.f32.mrf.mxu3 }
 0x168   :  { %v6955_v37 = vor.u32 %v5679_v29, %v5237_v1  ;;  %v6963_v29 = vor.u32 %v5616_v49, %v4985_v14  ;;  %v5609_v1 = vld [vmem:[#allocation5 + $0x730] sm:$0xf0] }
 0x169   :  { %2830 = vmatpush.bf16.msra.mxu0 %v6937_v47  ;;  %2843 = vmatpush.bf16.msra.mxu1 %v6939_v26  ;;  %v2604_v14 = vpop.f32.mrf.mxu2 }
 0x16b   :  { %2877 = vmatpush.bf16.msra.mxu2 %v5891_v44  ;;  %2890 = vmatpush.bf16.msra.mxu3 %v5895_v45  ;;  %v2603_v44 = vadd.f32 %v2602_v62, %v2590_v40  ;;  %v2591_v45 = vpop.f32.mrf.mxu1  ;;  %v5665_v40 = vld [vmem:[#allocation5 + $0x8f0] sm:$0xf0]  ;;  %v2857_v62 = vunpack.c.h.b16 %v6001_v61 }
 0x16c   :  { %v2856_v45 = vunpack.c.l.b16 %v6001_v61 }
 0x16d   :  { %2831 = vmatpush.bf16.msra.mxu0 %v6945_v60  ;;  %2844 = vmatpush.bf16.msra.mxu1 %v6947_v10  ;;  %v6959_v17 = vadd.f32 %v2615_v33, %v2603_v44  ;;  %v6971_v33 = vor.u32 %v5609_v1, %v4957_v13  ;;  %v6973_v44 = vor.u32 %v5665_v40, %v5181_v9  ;;  %v8733_v1 = vld [vmem:[#allocation44_spill] sm:$0xff]  ;;  %v8734_v9 = vld [vmem:[#allocation17_spill] sm:$0xff]  ;;  %v8735_v40 = vld [vmem:[#allocation18_spill] sm:$0xff] }
 0x16e   :  { %v6981_v4 = vpack.c.b16 %v2856_v45, %v2856_v45  ;;  %v6987_v31 = vpack.c.b16 %v2857_v62, %v2857_v62  ;;  %v8736_v62 = vld [vmem:[#allocation47_spill] sm:$0xff] }
 0x16f   :  { %2878 = vmatpush.bf16.msra.mxu2 %v5903_v56  ;;  %2891 = vmatpush.bf16.msra.mxu3 %v5907_v57  ;;  %v2617_v49 = vpop.f32.mrf.mxu3 }
 0x171   :  { %2832 = vmatpush.bf16.msra.mxu0 %v6953_v22  ;;  %2845 = vmatpush.bf16.msra.mxu1 %v6955_v37 }
 0x173   :  { %2879 = vmatpush.bf16.msra.mxu2 %v5915_v5  ;;  %2892 = vmatpush.bf16.msra.mxu3 %v5919_v6  ;;  %v8900_v5 = vld [vmem:[#allocation180_spill] sm:$0xff] }
 0x175   :  { %2833 = vmatpush.bf16.msra.mxu0 %v6963_v29  ;;  %2846 = vmatpush.bf16.msra.mxu1 %v6965_v36 }
 0x177   :  { %2880 = vmatpush.bf16.msra.mxu2 %v5927_v23  ;;  %2893 = vmatpush.bf16.msra.mxu3 %v5931_v27  ;;  %v8750_v27 = vld [vmem:[#allocation32_spill] sm:$0xff] }
 0x179   :  { %2834 = vmatpush.bf16.msra.mxu0 %v6971_v33  ;;  %2847 = vmatpush.bf16.msra.mxu1 %v6973_v44  ;;  %v2628_v61 = vpop.f32.mrf.mxu0 }
 0x17b   :  { %2881 = vmatpush.bf16.msra.mxu2 %v5939_v43  ;;  %2894 = vmatpush.bf16.msra.mxu3 %v5943_v51  ;;  %v8744_v51 = vld [vmem:[#allocation26_spill] sm:$0xff]  ;;  %v8748_v43 = vld [vmem:[#allocation29_spill] sm:$0xff] }
 0x17c   :  { %2835 = vmatmul.bf16.vlgmr.msra.gmra.mxu0 %v6148_v39  ;;  %2848 = vmatmul.bf16.vlgmr.msra.gmra.mxu1 %v6150_v32  ;;  %v2641_v39 = vpop.f32.mrf.mxu1  ;;  %v8732_v32 = vld [vmem:[#allocation43_spill] sm:$0xff] }
 0x17d   :  { %2900 = vmatpush.bf16.msrb.mxu0 %v5862_v8  ;;  %2913 = vmatpush.bf16.msrb.mxu1 %v5865_v12  ;;  %v2642_v13 = vadd.f32 %v2641_v39, %v2628_v61  ;;  %v8738_v39 = vld [vmem:[#allocation21_spill] sm:$0xff] }
 0x17e   :  { %2882 = vmatmul.bf16.vlgmr.msra.gmra.mxu2 %v6981_v4  ;;  %2895 = vmatmul.bf16.vlgmr.msra.gmra.mxu3 %v6987_v31 }
 0x17f   :  { %2926 = vmatpush.bf16.msrb.mxu2 %v5948_v55  ;;  %2939 = vmatpush.bf16.msrb.mxu3 %v5950_v59  ;;  %v8742_v59 = vld [vmem:[#allocation25_spill] sm:$0xff] }
 0x181   :  { %2901 = vmatpush.bf16.msrb.mxu0 %v5874_v21  ;;  %2914 = vmatpush.bf16.msrb.mxu1 %v5876_v25  ;;  %v2630_v45 = vpop.f32.mrf.mxu0  ;;  %v2654_v14 = vpop.f32.mrf.mxu2 }
 0x182   :  { %v2667_v61 = vpop.f32.mrf.mxu3  ;;  %v8743_v45 = vld [vmem:[#allocation49_spill] sm:$0xff] }
 0x183   :  { %2927 = vmatpush.bf16.msrb.mxu2 %v5963_v18  ;;  %2940 = vmatpush.bf16.msrb.mxu3 %v5965_v19  ;;  %v8739_v18 = vld [vmem:[#allocation22_spill] sm:$0xff]  ;;  %v2858_v55 = vunpack.c.l.b16 %v8743_v45 }
 0x184   :  { %v2643_v49 = vpop.f32.mrf.mxu1 }
 0x185   :  { %2902 = vmatpush.bf16.msrb.mxu0 %v5885_v34  ;;  %2915 = vmatpush.bf16.msrb.mxu1 %v5888_v38  ;;  %v8745_v49 = vld [vmem:[#allocation64_spill] sm:$0xff] }
 0x187   :  { %2928 = vmatpush.bf16.msrb.mxu2 %v5979_v41  ;;  %2941 = vmatpush.bf16.msrb.mxu3 %v5981_v42  ;;  %v2655_v41 = vadd.f32 %v2654_v14, %v2642_v13  ;;  %v8737_v42 = vld [vmem:[#allocation48_spill] sm:$0xff]  ;;  %v2860_v13 = vunpack.c.l.b16 %v8745_v49  ;;  %v2859_v14 = vunpack.c.h.b16 %v8743_v45  ;;  %v8752_v45 = vld [vmem:[#allocation34_spill] sm:$0xff] }
 0x189   :  { %2903 = vmatpush.bf16.msrb.mxu0 %v5897_v46  ;;  %2916 = vmatpush.bf16.msrb.mxu1 %v5900_v50  ;;  %v2668_v19 = vadd.f32 %v2667_v61, %v2655_v41  ;;  %v2861_v41 = vunpack.c.h.b16 %v8745_v49  ;;  %v8747_v61 = vld [vmem:[#allocation57_spill] sm:$0xff]  ;;  %v7030_v23 = vpack.c.b16 %v2859_v14, %v2859_v14  ;;  %v8757_v14 = vld [vmem:[#allocation38_spill] sm:$0xff] }
 0x18b   :  { %2929 = vmatpush.bf16.msrb.mxu2 %v8732_v32  ;;  %2942 = vmatpush.bf16.msrb.mxu3 %v8733_v1  ;;  %v8740_v32 = vld [vmem:[#allocation52_spill] sm:$0xff]  ;;  %v8741_v1 = vld [vmem:[#allocation53_spill] sm:$0xff]  ;;  %v7034_v49 = vpack.c.b16 %v2861_v41, %v2861_v41 }
 0x18c   :  { %v8758_v41 = vld [vmem:[#allocation69_spill] sm:$0xff] }
 0x18d   :  { %2904 = vmatpush.bf16.msrb.mxu0 %v8734_v9  ;;  %2917 = vmatpush.bf16.msrb.mxu1 %v8735_v40 }
 0x18f   :  { %2930 = vmatpush.bf16.msrb.mxu2 %v8736_v62  ;;  %2943 = vmatpush.bf16.msrb.mxu3 %v8737_v42  ;;  %v2656_v42 = vpop.f32.mrf.mxu2  ;;  %v8746_v62 = vld [vmem:[#allocation56_spill] sm:$0xff] }
 0x190   :  { %v8751_v42 = vld [vmem:[#allocation60_spill] sm:$0xff] }
 0x191   :  { %2905 = vmatpush.bf16.msrb.mxu0 %v8738_v39  ;;  %2918 = vmatpush.bf16.msrb.mxu1 %v8739_v18  ;;  %v8785_v39 = vld [vmem:[#allocation96_spill] sm:$0xff] }
 0x193   :  { %2931 = vmatpush.bf16.msrb.mxu2 %v8740_v32  ;;  %2944 = vmatpush.bf16.msrb.mxu3 %v8741_v1  ;;  %v2669_v32 = vpop.f32.mrf.mxu3  ;;  %v7024_v1 = vpack.c.b16 %v2858_v55, %v2858_v55  ;;  %v8755_v55 = vld [vmem:[#allocation66_spill] sm:$0xff] }
 0x194   :  { %v8754_v32 = vld [vmem:[#allocation61_spill] sm:$0xff] }
 0x195   :  { %2906 = vmatpush.bf16.msrb.mxu0 %v8742_v59  ;;  %2919 = vmatpush.bf16.msrb.mxu1 %v8744_v51  ;;  %v8749_v59 = vld [vmem:[#allocation33_spill] sm:$0xff]  ;;  %v7028_v51 = vpack.c.b16 %v2860_v13, %v2860_v13 }
 0x196   :  { %v8756_v13 = vld [vmem:[#allocation37_spill] sm:$0xff] }
 0x197   :  { %2932 = vmatpush.bf16.msrb.mxu2 %v8746_v62  ;;  %2945 = vmatpush.bf16.msrb.mxu3 %v8747_v61  ;;  %v8753_v61 = vld [vmem:[#allocation65_spill] sm:$0xff] }
 0x198   :  { %v8762_v62 = vld [vmem:[#allocation73_spill] sm:$0xff] }
 0x199   :  { %2907 = vmatpush.bf16.msrb.mxu0 %v8748_v43  ;;  %2920 = vmatpush.bf16.msrb.mxu1 %v8749_v59  ;;  %v8764_v43 = vld [vmem:[#allocation45_spill] sm:$0xff] }
 0x19b   :  { %2933 = vmatpush.bf16.msrb.mxu2 %v8751_v42  ;;  %2946 = vmatpush.bf16.msrb.mxu3 %v8754_v32  ;;  %v8759_v42 = vld [vmem:[#allocation70_spill] sm:$0xff] }
 0x19c   :  { %2908 = vmatmul.bf16.vlgmr.msrb.gmra.mxu0 %v7024_v1  ;;  %2921 = vmatmul.bf16.vlgmr.msrb.gmra.mxu1 %v7030_v23  ;;  %v8761_v32 = vld [vmem:[#allocation42_spill] sm:$0xff] }
 0x19d   :  { %2952 = vmatpush.bf16.msra.mxu0 %v8750_v27  ;;  %2965 = vmatpush.bf16.msra.mxu1 %v8752_v45  ;;  %v8763_v45 = vld [vmem:[#allocation74_spill] sm:$0xff]  ;;  %v2693_v27 = vpop.f32.mrf.mxu1 }
 0x19e   :  { %2934 = vmatmul.bf16.vlgmr.msrb.gmra.mxu2 %v7028_v51  ;;  %2947 = vmatmul.bf16.vlgmr.msrb.gmra.mxu3 %v7034_v49 }
 0x19f   :  { %2978 = vmatpush.bf16.msra.mxu2 %v8753_v61  ;;  %2991 = vmatpush.bf16.msra.mxu3 %v8755_v55  ;;  %v8760_v61 = vld [vmem:[#allocation41_spill] sm:$0xff]  ;;  %v2680_v55 = vpop.f32.mrf.mxu0 }
 0x1a0   :  { %v2681_v59 = vadd.f32 %v2680_v55, %v2668_v19  ;;  %v8772_v55 = vld [vmem:[#allocation54_spill] sm:$0xff] }
 0x1a1   :  { %2953 = vmatpush.bf16.msra.mxu0 %v8756_v13  ;;  %2966 = vmatpush.bf16.msra.mxu1 %v8757_v14  ;;  %v8765_v14 = vld [vmem:[#allocation46_spill] sm:$0xff] }
 0x1a2   :  { %v7052_v13 = vadd.f32 %v2693_v27, %v2681_v59  ;;  %v8773_v27 = vld [vmem:[#allocation55_spill] sm:$0xff]  ;;  %v8774_v59 = vld [vmem:[#allocation85_spill] sm:$0xff] }
 0x1a3   :  { %2979 = vmatpush.bf16.msra.mxu2 %v8758_v41  ;;  %2992 = vmatpush.bf16.msra.mxu3 %v8759_v42  ;;  %v8766_v41 = vld [vmem:[#allocation77_spill] sm:$0xff]  ;;  %v8767_v42 = vld [vmem:[#allocation78_spill] sm:$0xff] }
 0x1a5   :  { %2954 = vmatpush.bf16.msra.mxu0 %v8760_v61  ;;  %2967 = vmatpush.bf16.msra.mxu1 %v8761_v32  ;;  %v8768_v61 = vld [vmem:[#allocation50_spill] sm:$0xff]  ;;  %v8769_v32 = vld [vmem:[#allocation51_spill] sm:$0xff]  ;;  %v2695_v19 = vpop.f32.mrf.mxu1 }
 0x1a6   :  { %v8780_v19 = vld [vmem:[#allocation62_spill] sm:$0xff] }
 0x1a7   :  { %2980 = vmatpush.bf16.msra.mxu2 %v8762_v62  ;;  %2993 = vmatpush.bf16.msra.mxu3 %v8763_v45  ;;  %v8770_v62 = vld [vmem:[#allocation81_spill] sm:$0xff]  ;;  %v2682_v18 = vpop.f32.mrf.mxu0  ;;  %v8771_v45 = vld [vmem:[#allocation82_spill] sm:$0xff] }
 0x1a8   :  { %v8779_v18 = vld [vmem:[#allocation90_spill] sm:$0xff] }
 0x1a9   :  { %2955 = vmatpush.bf16.msra.mxu0 %v8764_v43  ;;  %2968 = vmatpush.bf16.msra.mxu1 %v8765_v14  ;;  %v2706_v14 = vpop.f32.mrf.mxu2  ;;  %v8776_v43 = vld [vmem:[#allocation58_spill] sm:$0xff] }
 0x1ab   :  { %2981 = vmatpush.bf16.msra.mxu2 %v8766_v41  ;;  %2994 = vmatpush.bf16.msra.mxu3 %v8767_v42  ;;  %v8775_v41 = vld [vmem:[#allocation86_spill] sm:$0xff]  ;;  %v2719_v42 = vpop.f32.mrf.mxu3 }
 0x1ad   :  { %2956 = vmatpush.bf16.msra.mxu0 %v8768_v61  ;;  %2969 = vmatpush.bf16.msra.mxu1 %v8769_v32  ;;  %v2720_v61 = vadd.f32 %v2719_v42, %v2706_v14  ;;  %v8777_v32 = vld [vmem:[#allocation59_spill] sm:$0xff]  ;;  %v8786_v42 = vld [vmem:[#allocation94_spill] sm:$0xff] }
 0x1af   :  { %2982 = vmatpush.bf16.msra.mxu2 %v8770_v62  ;;  %2995 = vmatpush.bf16.msra.mxu3 %v8771_v45  ;;  %v8778_v62 = vld [vmem:[#allocation89_spill] sm:$0xff]  ;;  %v8781_v45 = vld [vmem:[#allocation63_spill] sm:$0xff] }
 0x1b1   :  { %2957 = vmatpush.bf16.msra.mxu0 %v8772_v55  ;;  %2970 = vmatpush.bf16.msra.mxu1 %v8773_v27  ;;  %v8782_v27 = vld [vmem:[#allocation93_spill] sm:$0xff]  ;;  %v8783_v55 = vld [vmem:[#allocation67_spill] sm:$0xff] }
 0x1b3   :  { %2983 = vmatpush.bf16.msra.mxu2 %v8774_v59  ;;  %2996 = vmatpush.bf16.msra.mxu3 %v8775_v41  ;;  %v2708_v59 = vpop.f32.mrf.mxu2  ;;  %v8784_v41 = vld [vmem:[#allocation68_spill] sm:$0xff]  ;;  %v2721_v14 = vpop.f32.mrf.mxu3 }
 0x1b4   :  { %v8788_v59 = vld [vmem:[#allocation71_spill] sm:$0xff] }
 0x1b5   :  { %2958 = vmatpush.bf16.msra.mxu0 %v8776_v43  ;;  %2971 = vmatpush.bf16.msra.mxu1 %v8777_v32  ;;  %v8796_v43 = vld [vmem:[#allocation79_spill] sm:$0xff] }
 0x1b7   :  { %2984 = vmatpush.bf16.msra.mxu2 %v8778_v62  ;;  %2997 = vmatpush.bf16.msra.mxu3 %v8779_v18  ;;  %v8787_v18 = vld [vmem:[#allocation97_spill] sm:$0xff] }
 0x1b8   :  { %v8790_v62 = vld [vmem:[#allocation101_spill] sm:$0xff] }
 0x1b9   :  { %2959 = vmatpush.bf16.msra.mxu0 %v8780_v19  ;;  %2972 = vmatpush.bf16.msra.mxu1 %v8781_v45  ;;  %v2732_v14 = vpop.f32.mrf.mxu0  ;;  %v8794_v45 = vld [vmem:[#allocation105_spill] sm:$0xff]  ;;  %v8795_v19 = vld [vmem:[#allocation106_spill] sm:$0xff] }
 0x1bb   :  { %2985 = vmatpush.bf16.msra.mxu2 %v8782_v27  ;;  %2998 = vmatpush.bf16.msra.mxu3 %v8786_v42  ;;  %v8789_v27 = vld [vmem:[#allocation72_spill] sm:$0xff]  ;;  %v8792_v42 = vld [vmem:[#allocation75_spill] sm:$0xff] }
 0x1bc   :  { %2960 = vmatmul.bf16.vlgmr.msra.gmra.mxu0 %v6981_v4  ;;  %2973 = vmatmul.bf16.vlgmr.msra.gmra.mxu1 %v6987_v31 }
 0x1bd   :  { %3004 = vmatpush.bf16.msrb.mxu0 %v8783_v55  ;;  %3017 = vmatpush.bf16.msrb.mxu1 %v8784_v41  ;;  %v8793_v41 = vld [vmem:[#allocation76_spill] sm:$0xff]  ;;  %v2745_v55 = vpop.f32.mrf.mxu1 }
 0x1be   :  { %2986 = vmatmul.bf16.vlgmr.msra.gmra.mxu2 %v7024_v1  ;;  %2999 = vmatmul.bf16.vlgmr.msra.gmra.mxu3 %v7030_v23 }
 0x1bf   :  { %3030 = vmatpush.bf16.msrb.mxu2 %v8785_v39  ;;  %3043 = vmatpush.bf16.msrb.mxu3 %v8787_v18  ;;  %v8791_v39 = vld [vmem:[#allocation102_spill] sm:$0xff]  ;;  %v2733_v18 = vadd.f32 %v2732_v14, %v2720_v61 }
 0x1c1   :  { %3005 = vmatpush.bf16.msrb.mxu0 %v8788_v59  ;;  %3018 = vmatpush.bf16.msrb.mxu1 %v8789_v27  ;;  %v2746_v32 = vadd.f32 %v2745_v55, %v2733_v18  ;;  %v8797_v59 = vld [vmem:[#allocation80_spill] sm:$0xff]  ;;  %v8798_v27 = vld [vmem:[#allocation109_spill] sm:$0xff]  ;;  %v2758_v6 = vpop.f32.mrf.mxu2  ;;  %v8803_v55 = vld [vmem:[#allocation114_spill] sm:$0xff] }
 0x1c3   :  { %3031 = vmatpush.bf16.msrb.mxu2 %v8790_v62  ;;  %3044 = vmatpush.bf16.msrb.mxu3 %v8791_v39  ;;  %v8799_v62 = vld [vmem:[#allocation110_spill] sm:$0xff]  ;;  %v8800_v39 = vld [vmem:[#allocation83_spill] sm:$0xff]  ;;  %v2759_v14 = vadd.f32 %v2758_v6, %v2746_v32 }
 0x1c4   :  { %v8812_v32 = vld [vmem:[#allocation122_spill] sm:$0xff] }
 0x1c5   :  { %3006 = vmatpush.bf16.msrb.mxu0 %v8792_v42  ;;  %3019 = vmatpush.bf16.msrb.mxu1 %v8793_v41  ;;  %v2734_v42 = vpop.f32.mrf.mxu0  ;;  %v8801_v41 = vld [vmem:[#allocation84_spill] sm:$0xff]  ;;  %v2747_v61 = vpop.f32.mrf.mxu1 }
 0x1c6   :  { %v8809_v42 = vld [vmem:[#allocation91_spill] sm:$0xff]  ;;  %v8811_v61 = vld [vmem:[#allocation121_spill] sm:$0xff] }
 0x1c7   :  { %3032 = vmatpush.bf16.msrb.mxu2 %v8794_v45  ;;  %3045 = vmatpush.bf16.msrb.mxu3 %v8795_v19  ;;  %v8802_v45 = vld [vmem:[#allocation113_spill] sm:$0xff]  ;;  %v2771_v19 = vpop.f32.mrf.mxu3 }
 0x1c8   :  { %v7097_v18 = vadd.f32 %v2771_v19, %v2759_v14  ;;  %v8813_v19 = vld [vmem:[#allocation95_spill] sm:$0xff] }
 0x1c9   :  { %3007 = vmatpush.bf16.msrb.mxu0 %v8796_v43  ;;  %3020 = vmatpush.bf16.msrb.mxu1 %v8797_v59  ;;  %v8805_v59 = vld [vmem:[#allocation87_spill] sm:$0xff]  ;;  %v8810_v43 = vld [vmem:[#allocation92_spill] sm:$0xff] }
 0x1ca   :  { %8804 = vst [vmem:[#allocation17_spill] sm:$0xff] %v7097_v18  ;;  %v8814_v14 = vld [vmem:[#allocation99_spill] sm:$0xff]  ;;  %v8836_v18 = vld [vmem:[#allocation146_spill] sm:$0xff] }
 0x1cb   :  { %3033 = vmatpush.bf16.msrb.mxu2 %v8798_v27  ;;  %3046 = vmatpush.bf16.msrb.mxu3 %v8799_v62  ;;  %v8806_v27 = vld [vmem:[#allocation88_spill] sm:$0xff]  ;;  %v8807_v62 = vld [vmem:[#allocation117_spill] sm:$0xff] }
 0x1cd   :  { %3008 = vmatpush.bf16.msrb.mxu0 %v8800_v39  ;;  %3021 = vmatpush.bf16.msrb.mxu1 %v8801_v41  ;;  %v8808_v39 = vld [vmem:[#allocation118_spill] sm:$0xff]  ;;  %v2760_v41 = vpop.f32.mrf.mxu2 }
 0x1ce   :  { %v8819_v41 = vld [vmem:[#allocation126_spill] sm:$0xff] }
 0x1cf   :  { %3034 = vmatpush.bf16.msrb.mxu2 %v8802_v45  ;;  %3047 = vmatpush.bf16.msrb.mxu3 %v8803_v55  ;;  %v2773_v6 = vpop.f32.mrf.mxu3  ;;  %v8815_v55 = vld [vmem:[#allocation125_spill] sm:$0xff]  ;;  %v8816_v45 = vld [vmem:[#allocation98_spill] sm:$0xff] }
 0x1d0   :  { %v8820_v6 = vld [vmem:[#allocation129_spill] sm:$0xff] }
 0x1d1   :  { %3009 = vmatpush.bf16.msrb.mxu0 %v8805_v59  ;;  %3022 = vmatpush.bf16.msrb.mxu1 %v8806_v27  ;;  %v8832_v27 = vld [vmem:[#allocation142_spill] sm:$0xff] }
 0x1d3   :  { %3035 = vmatpush.bf16.msrb.mxu2 %v8807_v62  ;;  %3048 = vmatpush.bf16.msrb.mxu3 %v8808_v39  ;;  %v8817_v62 = vld [vmem:[#allocation100_spill] sm:$0xff] }
 0x1d4   :  { %v8818_v39 = vld [vmem:[#allocation128_spill] sm:$0xff] }
 0x1d5   :  { %3010 = vmatpush.bf16.msrb.mxu0 %v8809_v42  ;;  %3023 = vmatpush.bf16.msrb.mxu1 %v8810_v43  ;;  %v8828_v43 = vld [vmem:[#allocation138_spill] sm:$0xff]  ;;  %v8829_v42 = vld [vmem:[#allocation111_spill] sm:$0xff] }
 0x1d7   :  { %3036 = vmatpush.bf16.msrb.mxu2 %v8811_v61  ;;  %3049 = vmatpush.bf16.msrb.mxu3 %v8812_v32  ;;  %v8821_v32 = vld [vmem:[#allocation103_spill] sm:$0xff]  ;;  %v8823_v61 = vld [vmem:[#allocation133_spill] sm:$0xff] }
 0x1d9   :  { %3011 = vmatpush.bf16.msrb.mxu0 %v8813_v19  ;;  %3024 = vmatpush.bf16.msrb.mxu1 %v8814_v14  ;;  %v8827_v14 = vld [vmem:[#allocation137_spill] sm:$0xff] }
 0x1db   :  { %3037 = vmatpush.bf16.msrb.mxu2 %v8815_v55  ;;  %3050 = vmatpush.bf16.msrb.mxu3 %v8819_v41  ;;  %v8822_v55 = vld [vmem:[#allocation104_spill] sm:$0xff] }
 0x1dc   :  { %3012 = vmatmul.bf16.vlgmr.msrb.gmra.mxu0 %v7028_v51  ;;  %3025 = vmatmul.bf16.vlgmr.msrb.gmra.mxu1 %v7034_v49  ;;  %v8826_v41 = vld [vmem:[#allocation108_spill] sm:$0xff] }
 0x1dd   :  { %3056 = vmatpush.bf16.msra.mxu0 %v8816_v45  ;;  %3069 = vmatpush.bf16.msra.mxu1 %v8817_v62  ;;  %v8824_v62 = vld [vmem:[#allocation134_spill] sm:$0xff]  ;;  %v2784_v45 = vpop.f32.mrf.mxu0 }
 0x1de   :  { %3038 = vmatmul.bf16.vlgmr.msrb.gmra.mxu2 %v6981_v4  ;;  %3051 = vmatmul.bf16.vlgmr.msrb.gmra.mxu3 %v6987_v31 }
 0x1df   :  { %3082 = vmatpush.bf16.msra.mxu2 %v8818_v39  ;;  %3095 = vmatpush.bf16.msra.mxu3 %v8820_v6  ;;  %v8825_v39 = vld [vmem:[#allocation107_spill] sm:$0xff]  ;;  %v2797_v6 = vpop.f32.mrf.mxu1 }
 0x1e0   :  { %v2798_v19 = vadd.f32 %v2797_v6, %v2784_v45 }
 0x1e1   :  { %3057 = vmatpush.bf16.msra.mxu0 %v8821_v32  ;;  %3070 = vmatpush.bf16.msra.mxu1 %v8822_v55  ;;  %v8830_v32 = vld [vmem:[#allocation112_spill] sm:$0xff]  ;;  %v8831_v55 = vld [vmem:[#allocation141_spill] sm:$0xff]  ;;  %v2823_v59 = vpop.f32.mrf.mxu3 }
 0x1e3   :  { %3083 = vmatpush.bf16.msra.mxu2 %v8823_v61  ;;  %3096 = vmatpush.bf16.msra.mxu3 %v8824_v62  ;;  %v2810_v61 = vpop.f32.mrf.mxu2 }
 0x1e4   :  { %v2811_v62 = vadd.f32 %v2810_v61, %v2798_v19  ;;  %v8840_v61 = vld [vmem:[#allocation150_spill] sm:$0xff]  ;;  %v8841_v19 = vld [vmem:[#allocation123_spill] sm:$0xff] }
 0x1e5   :  { %3058 = vmatpush.bf16.msra.mxu0 %v8825_v39  ;;  %3071 = vmatpush.bf16.msra.mxu1 %v8826_v41  ;;  %v8833_v39 = vld [vmem:[#allocation115_spill] sm:$0xff]  ;;  %v8834_v41 = vld [vmem:[#allocation116_spill] sm:$0xff]  ;;  %v2786_v45 = vpop.f32.mrf.mxu0 }
 0x1e6   :  { %v2824_v6 = vadd.f32 %v2823_v59, %v2811_v62  ;;  %v8844_v62 = vld [vmem:[#allocation154_spill] sm:$0xff]  ;;  %v8846_v59 = vld [vmem:[#allocation131_spill] sm:$0xff] }
 0x1e7   :  { %3084 = vmatpush.bf16.msra.mxu2 %v8827_v14  ;;  %3097 = vmatpush.bf16.msra.mxu3 %v8828_v43  ;;  %v8835_v14 = vld [vmem:[#allocation145_spill] sm:$0xff]  ;;  %v2799_v43 = vpop.f32.mrf.mxu1 }
 0x1e8   :  { %v8845_v43 = vld [vmem:[#allocation127_spill] sm:$0xff] }
 0x1e9   :  { %3059 = vmatpush.bf16.msra.mxu0 %v8829_v42  ;;  %3072 = vmatpush.bf16.msra.mxu1 %v8830_v32  ;;  %v8837_v42 = vld [vmem:[#allocation119_spill] sm:$0xff]  ;;  %v8838_v32 = vld [vmem:[#allocation120_spill] sm:$0xff]  ;;  %v2825_v45 = vpop.f32.mrf.mxu3 }
 0x1ea   :  { %v8852_v45 = vld [vmem:[#allocation161_spill] sm:$0xff] }
 0x1eb   :  { %3085 = vmatpush.bf16.msra.mxu2 %v8831_v55  ;;  %3098 = vmatpush.bf16.msra.mxu3 %v8832_v27  ;;  %v8839_v55 = vld [vmem:[#allocation149_spill] sm:$0xff]  ;;  %v2812_v27 = vpop.f32.mrf.mxu2 }
 0x1ec   :  { %v8849_v27 = vld [vmem:[#allocation132_spill] sm:$0xff] }
 0x1ed   :  { %3060 = vmatpush.bf16.msra.mxu0 %v8833_v39  ;;  %3073 = vmatpush.bf16.msra.mxu1 %v8834_v41  ;;  %v8842_v41 = vld [vmem:[#allocation124_spill] sm:$0xff] }
 0x1ee   :  { %v8868_v39 = vld [vmem:[#allocation148_spill] sm:$0xff] }
 0x1ef   :  { %3086 = vmatpush.bf16.msra.mxu2 %v8835_v14  ;;  %3099 = vmatpush.bf16.msra.mxu3 %v8836_v18  ;;  %v8843_v14 = vld [vmem:[#allocation153_spill] sm:$0xff] }
 0x1f0   :  { %v8847_v18 = vld [vmem:[#allocation157_spill] sm:$0xff] }
 0x1f1   :  { %3061 = vmatpush.bf16.msra.mxu0 %v8837_v42  ;;  %3074 = vmatpush.bf16.msra.mxu1 %v8838_v32  ;;  %v8848_v32 = vld [vmem:[#allocation130_spill] sm:$0xff] }
 0x1f2   :  { %v8865_v42 = vld [vmem:[#allocation174_spill] sm:$0xff] }
 0x1f3   :  { %3087 = vmatpush.bf16.msra.mxu2 %v8839_v55  ;;  %3100 = vmatpush.bf16.msra.mxu3 %v8840_v61  ;;  %v8850_v61 = vld [vmem:[#allocation160_spill] sm:$0xff]  ;;  %v8851_v55 = vld [vmem:[#allocation158_spill] sm:$0xff] }
 0x1f5   :  { %3062 = vmatpush.bf16.msra.mxu0 %v8841_v19  ;;  %3075 = vmatpush.bf16.msra.mxu1 %v8842_v41  ;;  %v8861_v19 = vld [vmem:[#allocation170_spill] sm:$0xff] }
 0x1f7   :  { %3088 = vmatpush.bf16.msra.mxu2 %v8843_v14  ;;  %3101 = vmatpush.bf16.msra.mxu3 %v8844_v62  ;;  %v8853_v62 = vld [vmem:[#allocation135_spill] sm:$0xff]  ;;  %v8855_v14 = vld [vmem:[#allocation165_spill] sm:$0xff] }
 0x1f9   :  { %3063 = vmatpush.bf16.msra.mxu0 %v8845_v43  ;;  %3076 = vmatpush.bf16.msra.mxu1 %v8846_v59  ;;  %v8859_v43 = vld [vmem:[#allocation169_spill] sm:$0xff] }
 0x1fb   :  { %3089 = vmatpush.bf16.msra.mxu2 %v8847_v18  ;;  %3102 = vmatpush.bf16.msra.mxu3 %v8851_v55  ;;  %v8854_v18 = vld [vmem:[#allocation136_spill] sm:$0xff]  ;;  %v8857_v55 = vld [vmem:[#allocation139_spill] sm:$0xff] }
 0x1fc   :  { %3064 = vmatmul.bf16.vlgmr.msra.gmra.mxu0 %v7024_v1  ;;  %3077 = vmatmul.bf16.vlgmr.msra.gmra.mxu1 %v7030_v23 }
 0x1fd   :  { %3108 = vmatpush.bf16.msrb.mxu0 %v8848_v32  ;;  %3121 = vmatpush.bf16.msrb.mxu1 %v8849_v27  ;;  %v8856_v27 = vld [vmem:[#allocation166_spill] sm:$0xff]  ;;  %v8858_v32 = vld [vmem:[#allocation140_spill] sm:$0xff] }
 0x1fe   :  { %3090 = vmatmul.bf16.vlgmr.msra.gmra.mxu2 %v7028_v51  ;;  %3103 = vmatmul.bf16.vlgmr.msra.gmra.mxu3 %v7034_v49 }
 0x1ff   :  { %3134 = vmatpush.bf16.msrb.mxu2 %v8850_v61  ;;  %3147 = vmatpush.bf16.msrb.mxu3 %v8852_v45  ;;  %v2836_v61 = vpop.f32.mrf.mxu0  ;;  %v2849_v45 = vpop.f32.mrf.mxu1 }
 0x200   :  { %v2837_v59 = vadd.f32 %v2836_v61, %v2824_v6 }
 0x201   :  { %3109 = vmatpush.bf16.msrb.mxu0 %v8853_v62  ;;  %3122 = vmatpush.bf16.msrb.mxu1 %v8854_v18  ;;  %v8862_v62 = vld [vmem:[#allocation143_spill] sm:$0xff]  ;;  %v8863_v18 = vld [vmem:[#allocation144_spill] sm:$0xff] }
 0x202   :  { %v7162_v41 = vadd.f32 %v2849_v45, %v2837_v59  ;;  %v8869_v59 = vld [vmem:[#allocation177_spill] sm:$0xff] }
 0x203   :  { %3135 = vmatpush.bf16.msrb.mxu2 %v8855_v14  ;;  %3148 = vmatpush.bf16.msrb.mxu3 %v8856_v27  ;;  %v8864_v14 = vld [vmem:[#allocation173_spill] sm:$0xff]  ;;  %v2883_v27 = vpop.f32.mrf.mxu2 }
 0x204   :  { %8860 = vst [vmem:[#allocation18_spill] sm:$0xff] %v7162_v41  ;;  %v8873_v41 = vld [vmem:[#allocation181_spill] sm:$0xff] }
 0x205   :  { %3110 = vmatpush.bf16.msrb.mxu0 %v8857_v55  ;;  %3123 = vmatpush.bf16.msrb.mxu1 %v8858_v32  ;;  %v8866_v55 = vld [vmem:[#allocation223_spill] sm:$0xff] }
 0x206   :  { %v2884_v6 = vadd.f32 %v2883_v27, %v8866_v55  ;;  %v8867_v32 = vld [vmem:[#allocation147_spill] sm:$0xff]  ;;  %v8874_v55 = vld [vmem:[#allocation182_spill] sm:$0xff] }
 0x207   :  { %3136 = vmatpush.bf16.msrb.mxu2 %v8859_v43  ;;  %3149 = vmatpush.bf16.msrb.mxu3 %v8861_v19  ;;  %v2838_v61 = vpop.f32.mrf.mxu0  ;;  %v2896_v43 = vpop.f32.mrf.mxu3  ;;  %v8875_v27 = vld [vmem:[#allocation155_spill] sm:$0xff] }
 0x208   :  { %v2897_v45 = vadd.f32 %v2896_v43, %v2884_v6  ;;  %v2851_v19 = vpop.f32.mrf.mxu1  ;;  %v8878_v43 = vld [vmem:[#allocation186_spill] sm:$0xff]  ;;  %v8880_v6 = vld [vmem:[#allocation163_spill] sm:$0xff] }
 0x209   :  { %3111 = vmatpush.bf16.msrb.mxu0 %v8862_v62  ;;  %3124 = vmatpush.bf16.msrb.mxu1 %v8863_v18  ;;  %v8870_v62 = vld [vmem:[#allocation178_spill] sm:$0xff]  ;;  %v8871_v18 = vld [vmem:[#allocation151_spill] sm:$0xff] }
 0x20a   :  { %v8879_v19 = vld [vmem:[#allocation159_spill] sm:$0xff] }
 0x20b   :  { %3137 = vmatpush.bf16.msrb.mxu2 %v8864_v14  ;;  %3150 = vmatpush.bf16.msrb.mxu3 %v8865_v42  ;;  %v8872_v14 = vld [vmem:[#allocation152_spill] sm:$0xff]  ;;  %v2885_v42 = vpop.f32.mrf.mxu2 }
 0x20c   :  { %v8883_v42 = vld [vmem:[#allocation164_spill] sm:$0xff] }
 0x20d   :  { %3112 = vmatpush.bf16.msrb.mxu0 %v8867_v32  ;;  %3125 = vmatpush.bf16.msrb.mxu1 %v8868_v39  ;;  %v8876_v32 = vld [vmem:[#allocation156_spill] sm:$0xff]  ;;  %v8877_v39 = vld [vmem:[#allocation185_spill] sm:$0xff] }
 0x20f   :  { %3138 = vmatpush.bf16.msrb.mxu2 %v8869_v59  ;;  %3151 = vmatpush.bf16.msrb.mxu3 %v8870_v62  ;;  %v2898_v61 = vpop.f32.mrf.mxu3  ;;  %v8881_v62 = vld [vmem:[#allocation189_spill] sm:$0xff]  ;;  %v8882_v59 = vld [vmem:[#allocation162_spill] sm:$0xff] }
 0x210   :  { %v8886_v61 = vld [vmem:[#allocation193_spill] sm:$0xff] }
 0x211   :  { %3113 = vmatpush.bf16.msrb.mxu0 %v8871_v18  ;;  %3126 = vmatpush.bf16.msrb.mxu1 %v8872_v14  ;;  %v8895_v14 = vld [vmem:[#allocation175_spill] sm:$0xff] }
 0x213   :  { %3139 = vmatpush.bf16.msrb.mxu2 %v8873_v41  ;;  %3152 = vmatpush.bf16.msrb.mxu3 %v8874_v55  ;;  %v8884_v55 = vld [vmem:[#allocation192_spill] sm:$0xff]  ;;  %v8885_v41 = vld [vmem:[#allocation190_spill] sm:$0xff] }
 0x215   :  { %3114 = vmatpush.bf16.msrb.mxu0 %v8875_v27  ;;  %3127 = vmatpush.bf16.msrb.mxu1 %v8876_v32  ;;  %v8894_v27 = vld [vmem:[#allocation202_spill] sm:$0xff] }
 0x217   :  { %3140 = vmatpush.bf16.msrb.mxu2 %v8877_v39  ;;  %3153 = vmatpush.bf16.msrb.mxu3 %v8878_v43  ;;  %v8887_v43 = vld [vmem:[#allocation167_spill] sm:$0xff]  ;;  %v8889_v39 = vld [vmem:[#allocation197_spill] sm:$0xff] }
 0x219   :  { %3115 = vmatpush.bf16.msrb.mxu0 %v8879_v19  ;;  %3128 = vmatpush.bf16.msrb.mxu1 %v8880_v6  ;;  %v8892_v19 = vld [vmem:[#allocation172_spill] sm:$0xff] }
 0x21b   :  { %3141 = vmatpush.bf16.msrb.mxu2 %v8881_v62  ;;  %3154 = vmatpush.bf16.msrb.mxu3 %v8885_v41  ;;  %v8888_v62 = vld [vmem:[#allocation168_spill] sm:$0xff]  ;;  %v8891_v41 = vld [vmem:[#allocation171_spill] sm:$0xff] }
 0x21c   :  { %3116 = vmatmul.bf16.vlgmr.msrb.gmra.mxu0 %v6981_v4  ;;  %3129 = vmatmul.bf16.vlgmr.msrb.gmra.mxu1 %v6987_v31 }
 0x21d   :  { %3160 = vmatpush.bf16.msra.mxu0 %v8882_v59  ;;  %3173 = vmatpush.bf16.msra.mxu1 %v8883_v42  ;;  %v8890_v42 = vld [vmem:[#allocation198_spill] sm:$0xff]  ;;  %v2922_v59 = vpop.f32.mrf.mxu1 }
 0x21e   :  { %3142 = vmatmul.bf16.vlgmr.msrb.gmra.mxu2 %v7024_v1  ;;  %3155 = vmatmul.bf16.vlgmr.msrb.gmra.mxu3 %v7030_v23 }
 0x21f   :  { %3186 = vmatpush.bf16.msra.mxu2 %v8884_v55  ;;  %3199 = vmatpush.bf16.msra.mxu3 %v8886_v61  ;;  %v2909_v55 = vpop.f32.mrf.mxu0  ;;  %v8893_v61 = vld [vmem:[#allocation201_spill] sm:$0xff] }
 0x220   :  { %v2910_v6 = vadd.f32 %v2909_v55, %v2897_v45  ;;  %v8899_v55 = vld [vmem:[#allocation179_spill] sm:$0xff] }
 0x221   :  { %3161 = vmatpush.bf16.msra.mxu0 %v8887_v43  ;;  %3174 = vmatpush.bf16.msra.mxu1 %v8888_v62  ;;  %v8896_v43 = vld [vmem:[#allocation176_spill] sm:$0xff]  ;;  %v8897_v62 = vld [vmem:[#allocation205_spill] sm:$0xff] }
 0x222   :  { %v2923_v32 = vadd.f32 %v2922_v59, %v2910_v6  ;;  %v8901_v59 = vld [vmem:[#allocation209_spill] sm:$0xff] }
 0x223   :  { %3187 = vmatpush.bf16.msra.mxu2 %v8889_v39  ;;  %3200 = vmatpush.bf16.msra.mxu3 %v8890_v42  ;;  %v2935_v39 = vpop.f32.mrf.mxu2  ;;  %v8898_v42 = vld [vmem:[#allocation206_spill] sm:$0xff] }
 0x224   :  { %v2936_v18 = vadd.f32 %v2935_v39, %v2923_v32  ;;  %v8907_v32 = vld [vmem:[#allocation214_spill] sm:$0xff] }
 0x225   :  { %3162 = vmatpush.bf16.msra.mxu0 %v8891_v41  ;;  %3175 = vmatpush.bf16.msra.mxu1 %v8892_v19  ;;  %v2948_v41 = vpop.f32.mrf.mxu3  ;;  %v2924_v19 = vpop.f32.mrf.mxu1 }
 0x226   :  { %v7209_v6 = vadd.f32 %v2948_v41, %v2936_v18  ;;  %v8909_v19 = vld [vmem:[#allocation188_spill] sm:$0xff]  ;;  %v8911_v18 = vld [vmem:[#allocation218_spill] sm:$0xff]  ;;  %v8912_v41 = vld [vmem:[#allocation191_spill] sm:$0xff] }
 0x227   :  { %3188 = vmatpush.bf16.msra.mxu2 %v8893_v61  ;;  %3201 = vmatpush.bf16.msra.mxu3 %v8894_v27  ;;  %v2911_v45 = vpop.f32.mrf.mxu0  ;;  %v8903_v27 = vld [vmem:[#allocation210_spill] sm:$0xff]  ;;  %v8904_v61 = vld [vmem:[#allocation183_spill] sm:$0xff] }
 0x228   :  { %8902 = vst [vmem:[#allocation49_spill] sm:$0xff] %v7209_v6  ;;  %v8915_v6 = vld [vmem:[#allocation194_spill] sm:$0xff] }
 0x229   :  { %3163 = vmatpush.bf16.msra.mxu0 %v8895_v14  ;;  %3176 = vmatpush.bf16.msra.mxu1 %v8896_v43  ;;  %v8906_v43 = vld [vmem:[#allocation213_spill] sm:$0xff] }
 0x22b   :  { %3189 = vmatpush.bf16.msra.mxu2 %v8897_v62  ;;  %3202 = vmatpush.bf16.msra.mxu3 %v8898_v42  ;;  %v8905_v62 = vld [vmem:[#allocation184_spill] sm:$0xff]  ;;  %v2937_v39 = vpop.f32.mrf.mxu2  ;;  %v8908_v42 = vld [vmem:[#allocation187_spill] sm:$0xff] }
 0x22c   :  { %v8916_v39 = vld [vmem:[#allocation196_spill] sm:$0xff] }
 0x22d   :  { %3164 = vmatpush.bf16.msra.mxu0 %v8899_v55  ;;  %3177 = vmatpush.bf16.msra.mxu1 %v8900_v5  ;;  %v2950_v45 = vpop.f32.mrf.mxu3  ;;  %v8910_v5 = vld [vmem:[#allocation217_spill] sm:$0xff]  ;;  %v8932_v55 = vld [vmem:[#allocation239_spill] sm:$0xff] }
 0x22e   :  { %v8918_v45 = vld [vmem:[#allocation222_spill] sm:$0xff] }
 0x22f   :  { %3190 = vmatpush.bf16.msra.mxu2 %v8901_v59  ;;  %3203 = vmatpush.bf16.msra.mxu3 %v8903_v27  ;;  %v8913_v27 = vld [vmem:[#allocation195_spill] sm:$0xff]  ;;  %v8914_v59 = vld [vmem:[#allocation221_spill] sm:$0xff] }
 0x231   :  { %3165 = vmatpush.bf16.msra.mxu0 %v8904_v61  ;;  %3178 = vmatpush.bf16.msra.mxu1 %v8905_v62  ;;  %v8928_v62 = vld [vmem:[#allocation235_spill] sm:$0xff] }
 0x233   :  { %3191 = vmatpush.bf16.msra.mxu2 %v8906_v43  ;;  %3204 = vmatpush.bf16.msra.mxu3 %v8907_v32  ;;  %v8917_v32 = vld [vmem:[#allocation225_spill] sm:$0xff]  ;;  %v8922_v43 = vld [vmem:[#allocation230_spill] sm:$0xff] }
 0x235   :  { %3166 = vmatpush.bf16.msra.mxu0 %v8908_v42  ;;  %3179 = vmatpush.bf16.msra.mxu1 %v8909_v19  ;;  %v8926_v19 = vld [vmem:[#allocation204_spill] sm:$0xff] }
 0x237   :  { %3192 = vmatpush.bf16.msra.mxu2 %v8910_v5  ;;  %3205 = vmatpush.bf16.msra.mxu3 %v8911_v18  ;;  %v8919_v5 = vld [vmem:[#allocation226_spill] sm:$0xff]  ;;  %v8920_v18 = vld [vmem:[#allocation199_spill] sm:$0xff] }
 0x239   :  { %3167 = vmatpush.bf16.msra.mxu0 %v8912_v41  ;;  %3180 = vmatpush.bf16.msra.mxu1 %v8913_v27  ;;  %v8925_v27 = vld [vmem:[#allocation253_spill] sm:$0xff]  ;;  %v2974_v41 = vpop.f32.mrf.mxu1 }
 0x23b   :  { %3193 = vmatpush.bf16.msra.mxu2 %v8914_v59  ;;  %3206 = vmatpush.bf16.msra.mxu3 %v8918_v45  ;;  %v8921_v59 = vld [vmem:[#allocation200_spill] sm:$0xff]  ;;  %v8924_v45 = vld [vmem:[#allocation203_spill] sm:$0xff] }
 0x23c   :  { %3168 = vmatmul.bf16.vlgmr.msra.gmra.mxu0 %v7028_v51  ;;  %3181 = vmatmul.bf16.vlgmr.msra.gmra.mxu1 %v7034_v49 }
 0x23d   :  { %3212 = vmatpush.bf16.msrb.mxu0 %v8915_v6  ;;  %3225 = vmatpush.bf16.msrb.mxu1 %v8916_v39  ;;  %v8923_v39 = vld [vmem:[#allocation231_spill] sm:$0xff] }
 0x23e   :  { %3194 = vmatmul.bf16.vlgmr.msra.gmra.mxu2 %v6981_v4  ;;  %3207 = vmatmul.bf16.vlgmr.msra.gmra.mxu3 %v6987_v31 }
 0x23f   :  { %3238 = vmatpush.bf16.msrb.mxu2 %v8917_v32  ;;  %3251 = vmatpush.bf16.msrb.mxu3 %v8919_v5  ;;  %v2961_v32 = vpop.f32.mrf.mxu0  ;;  %v8927_v5 = vld [vmem:[#allocation234_spill] sm:$0xff] }
 0x240   :  { %v2962_v6 = vadd.f32 %v2961_v32, %v8925_v27  ;;  %v8933_v32 = vld [vmem:[#allocation211_spill] sm:$0xff] }
 0x241   :  { %3213 = vmatpush.bf16.msrb.mxu0 %v8920_v18  ;;  %3226 = vmatpush.bf16.msrb.mxu1 %v8921_v59  ;;  %v8929_v18 = vld [vmem:[#allocation207_spill] sm:$0xff]  ;;  %v8930_v59 = vld [vmem:[#allocation208_spill] sm:$0xff]  ;;  %v2976_v14 = vpop.f32.mrf.mxu1 }
 0x242   :  { %v2975_v42 = vadd.f32 %v2974_v41, %v2962_v6  ;;  %v8935_v6 = vld [vmem:[#allocation242_spill] sm:$0xff]  ;;  %v8936_v41 = vld [vmem:[#allocation243_spill] sm:$0xff] }
 0x243   :  { %3239 = vmatpush.bf16.msrb.mxu2 %v8922_v43  ;;  %3252 = vmatpush.bf16.msrb.mxu3 %v8923_v39  ;;  %v8931_v43 = vld [vmem:[#allocation238_spill] sm:$0xff]  ;;  %v2987_v39 = vpop.f32.mrf.mxu2 }
 0x244   :  { %v2988_v61 = vadd.f32 %v2987_v39, %v2975_v42  ;;  %v8940_v39 = vld [vmem:[#allocation247_spill] sm:$0xff]  ;;  %v8943_v14 = vld [vmem:[#allocation250_spill] sm:$0xff] }
 0x245   :  { %3214 = vmatpush.bf16.msrb.mxu0 %v8924_v45  ;;  %3227 = vmatpush.bf16.msrb.mxu1 %v8926_v19  ;;  %v3000_v45 = vpop.f32.mrf.mxu3 }
 0x246   :  { %v3001_v19 = vadd.f32 %v3000_v45, %v2988_v61  ;;  %v8942_v61 = vld [vmem:[#allocation220_spill] sm:$0xff]  ;;  %v8944_v45 = vld [vmem:[#allocation251_spill] sm:$0xff] }
 0x247   :  { %3240 = vmatpush.bf16.msrb.mxu2 %v8927_v5  ;;  %3253 = vmatpush.bf16.msrb.mxu3 %v8928_v62  ;;  %v2963_v27 = vpop.f32.mrf.mxu0  ;;  %v8934_v5 = vld [vmem:[#allocation212_spill] sm:$0xff]  ;;  %v8937_v62 = vld [vmem:[#allocation215_spill] sm:$0xff] }
 0x249   :  { %3215 = vmatpush.bf16.msrb.mxu0 %v8929_v18  ;;  %3228 = vmatpush.bf16.msrb.mxu1 %v8930_v59  ;;  %v8938_v59 = vld [vmem:[#allocation216_spill] sm:$0xff] }
 0x24b   :  { %3241 = vmatpush.bf16.msrb.mxu2 %v8931_v43  ;;  %3254 = vmatpush.bf16.msrb.mxu3 %v8932_v55  ;;  %v8939_v43 = vld [vmem:[#allocation246_spill] sm:$0xff]  ;;  %v2989_v42 = vpop.f32.mrf.mxu2  ;;  %v8941_v55 = vld [vmem:[#allocation219_spill] sm:$0xff] }
 0x24c   :  { %v8949_v42 = vld [vmem:[#allocation229_spill] sm:$0xff] }
 0x24d   :  { %3216 = vmatpush.bf16.msrb.mxu0 %v8933_v32  ;;  %3229 = vmatpush.bf16.msrb.mxu1 %v8934_v5  ;;  %v3002_v27 = vpop.f32.mrf.mxu3 }
 0x24e   :  { %v8951_v27 = vld [vmem:[#allocation256_spill] sm:$0xff] }
 0x24f   :  { %3242 = vmatpush.bf16.msrb.mxu2 %v8935_v6  ;;  %3255 = vmatpush.bf16.msrb.mxu3 %v8936_v41  ;;  %v8945_v6 = vld [vmem:[#allocation224_spill] sm:$0xff] }
 0x250   :  { %v8946_v41 = vld [vmem:[#allocation228_spill] sm:$0xff] }
 0x251   :  { %3217 = vmatpush.bf16.msrb.mxu0 %v8937_v62  ;;  %3230 = vmatpush.bf16.msrb.mxu1 %v8938_v59  ;;  %v8947_v62 = vld [vmem:[#allocation255_spill] sm:$0xff] }
 0x252   :  { %v8948_v59 = vld [vmem:[#allocation227_spill] sm:$0xff] }
 0x253   :  { %3243 = vmatpush.bf16.msrb.mxu2 %v8939_v43  ;;  %3256 = vmatpush.bf16.msrb.mxu3 %v8940_v39  ;;  %v8950_v39 = vld [vmem:[#allocation258_spill] sm:$0xff]  ;;  %v8955_v43 = vld [vmem:[#allocation263_spill] sm:$0xff] }
 0x255   :  { %3218 = vmatpush.bf16.msrb.mxu0 %v8941_v55  ;;  %3231 = vmatpush.bf16.msrb.mxu1 %v8942_v61  ;;  %v8961_v55 = vld [vmem:[#allocation268_spill] sm:$0xff] }
 0x257   :  { %3244 = vmatpush.bf16.msrb.mxu2 %v8943_v14  ;;  %3257 = vmatpush.bf16.msrb.mxu3 %v8944_v45  ;;  %v8952_v14 = vld [vmem:[#allocation259_spill] sm:$0xff]  ;;  %v8953_v45 = vld [vmem:[#allocation232_spill] sm:$0xff] }
 0x259   :  { %3219 = vmatpush.bf16.msrb.mxu0 %v8945_v6  ;;  %3232 = vmatpush.bf16.msrb.mxu1 %v8946_v41  ;;  %v8958_v6 = vld [vmem:[#allocation237_spill] sm:$0xff] }
 0x25b   :  { %3245 = vmatpush.bf16.msrb.mxu2 %v8947_v62  ;;  %3258 = vmatpush.bf16.msrb.mxu3 %v8951_v27  ;;  %v8954_v62 = vld [vmem:[#allocation233_spill] sm:$0xff]  ;;  %v8957_v27 = vld [vmem:[#allocation236_spill] sm:$0xff] }
 0x25c   :  { %3220 = vmatmul.bf16.vlgmr.msrb.gmra.mxu0 %v7024_v1  ;;  %3233 = vmatmul.bf16.vlgmr.msrb.gmra.mxu1 %v7030_v23 }
 0x25d   :  { %3264 = vmatpush.bf16.msra.mxu0 %v8948_v59  ;;  %3277 = vmatpush.bf16.msra.mxu1 %v8949_v42  ;;  %v8956_v42 = vld [vmem:[#allocation264_spill] sm:$0xff]  ;;  %v3026_v59 = vpop.f32.mrf.mxu1 }
 0x25e   :  { %3246 = vmatmul.bf16.vlgmr.msrb.gmra.mxu2 %v7028_v51  ;;  %3259 = vmatmul.bf16.vlgmr.msrb.gmra.mxu3 %v7034_v49 }
 0x25f   :  { %3290 = vmatpush.bf16.msra.mxu2 %v8950_v39  ;;  %3303 = vmatpush.bf16.msra.mxu3 %v8952_v14  ;;  %v3013_v39 = vpop.f32.mrf.mxu0  ;;  %v8959_v14 = vld [vmem:[#allocation267_spill] sm:$0xff] }
 0x260   :  { %v3014_v41 = vadd.f32 %v3013_v39, %v3001_v19 }
 0x261   :  { %3265 = vmatpush.bf16.msra.mxu0 %v8953_v45  ;;  %3278 = vmatpush.bf16.msra.mxu1 %v8954_v62  ;;  %v8962_v45 = vld [vmem:[#allocation240_spill] sm:$0xff]  ;;  %v8963_v62 = vld [vmem:[#allocation241_spill] sm:$0xff]  ;;  %v3052_v19 = vpop.f32.mrf.mxu3 }
 0x262   :  { %v7276_v61 = vadd.f32 %v3026_v59, %v3014_v41  ;;  %v8967_v41 = vld [vmem:[#allocation245_spill] sm:$0xff] }
 0x263   :  { %3291 = vmatpush.bf16.msra.mxu2 %v8955_v43  ;;  %3304 = vmatpush.bf16.msra.mxu3 %v8956_v42  ;;  %v8964_v43 = vld [vmem:[#allocation271_spill] sm:$0xff]  ;;  %v3039_v42 = vpop.f32.mrf.mxu2 }
 0x264   :  { %8960 = vst [vmem:[#allocation64_spill] sm:$0xff] %v7276_v61  ;;  %v3040_v5 = vadd.f32 %v3039_v42, %v6860_v35  ;;  %v8969_v61 = vld [vmem:[#allocation276_spill] sm:$0xff] }
 0x265   :  { %3266 = vmatpush.bf16.msra.mxu0 %v8957_v27  ;;  %3279 = vmatpush.bf16.msra.mxu1 %v8958_v6  ;;  %v8965_v27 = vld [vmem:[#allocation272_spill] sm:$0xff]  ;;  %v3028_v59 = vpop.f32.mrf.mxu1 }
 0x266   :  { %v8966_v6 = vld [vmem:[#allocation244_spill] sm:$0xff] }
 0x267   :  { %3292 = vmatpush.bf16.msra.mxu2 %v8959_v14  ;;  %3305 = vmatpush.bf16.msra.mxu3 %v8961_v55  ;;  %v3015_v39 = vpop.f32.mrf.mxu0  ;;  %v3053_v14 = vadd.f32 %v3052_v19, %v3040_v5  ;;  %v8968_v55 = vld [vmem:[#allocation275_spill] sm:$0xff]  ;;  %v8973_v42 = vld [vmem:[#allocation280_spill] sm:$0xff]  ;;  %v8975_v5 = vld [vmem:[#allocation254_spill] sm:$0xff] }
 0x268   :  { %v8976_v19 = vld [vmem:[#allocation283_spill] sm:$0xff]  ;;  %v8977_v59 = vld [vmem:[#allocation284_spill] sm:$0xff] }
 0x269   :  { %3267 = vmatpush.bf16.msra.mxu0 %v8962_v45  ;;  %3280 = vmatpush.bf16.msra.mxu1 %v8963_v62  ;;  %v8970_v62 = vld [vmem:[#allocation248_spill] sm:$0xff]  ;;  %v8972_v45 = vld [vmem:[#allocation279_spill] sm:$0xff]  ;;  %v3054_v39 = vpop.f32.mrf.mxu3 }
 0x26a   :  { %v8983_v39 = vld [vmem:[#allocation288_spill] sm:$0xff] }
 0x26b   :  { %3293 = vmatpush.bf16.msra.mxu2 %v8964_v43  ;;  %3306 = vmatpush.bf16.msra.mxu3 %v8965_v27  ;;  %v8971_v43 = vld [vmem:[#allocation249_spill] sm:$0xff]  ;;  %v3041_v35 = vpop.f32.mrf.mxu2  ;;  %v8974_v27 = vld [vmem:[#allocation252_spill] sm:$0xff] }
 0x26c   :  { %v8981_v35 = vld [vmem:[#allocation262_spill] sm:$0xff] }
 0x26d   :  { %3268 = vmatpush.bf16.msra.mxu0 %v8966_v6  ;;  %3281 = vmatpush.bf16.msra.mxu1 %v8967_v41  ;;  %v8996_v41 = vld [vmem:[#allocation304_spill] sm:$0xff] }
 0x26f   :  { %3294 = vmatpush.bf16.msra.mxu2 %v8968_v55  ;;  %3307 = vmatpush.bf16.msra.mxu3 %v8969_v61  ;;  %v8978_v55 = vld [vmem:[#allocation257_spill] sm:$0xff] }
 0x270   :  { %v8979_v61 = vld [vmem:[#allocation261_spill] sm:$0xff] }
 0x271   :  { %3269 = vmatpush.bf16.msra.mxu0 %v8970_v62  ;;  %3282 = vmatpush.bf16.msra.mxu1 %v8971_v43  ;;  %v8980_v43 = vld [vmem:[#allocation260_spill] sm:$0xff]  ;;  %v8993_v62 = vld [vmem:[#allocation273_spill] sm:$0xff] }
 0x273   :  { %3295 = vmatpush.bf16.msra.mxu2 %v8972_v45  ;;  %3308 = vmatpush.bf16.msra.mxu3 %v8973_v42  ;;  %v8982_v42 = vld [vmem:[#allocation290_spill] sm:$0xff]  ;;  %v8987_v45 = vld [vmem:[#allocation295_spill] sm:$0xff] }
 0x275   :  { %3270 = vmatpush.bf16.msra.mxu0 %v8974_v27  ;;  %3283 = vmatpush.bf16.msra.mxu1 %v8975_v5  ;;  %v8992_v27 = vld [vmem:[#allocation300_spill] sm:$0xff] }
 0x277   :  { %3296 = vmatpush.bf16.msra.mxu2 %v8976_v19  ;;  %3309 = vmatpush.bf16.msra.mxu3 %v8977_v59  ;;  %v8984_v19 = vld [vmem:[#allocation291_spill] sm:$0xff]  ;;  %v8985_v59 = vld [vmem:[#allocation265_spill] sm:$0xff] }
 0x279   :  { %3271 = vmatpush.bf16.msra.mxu0 %v8978_v55  ;;  %3284 = vmatpush.bf16.msra.mxu1 %v8979_v61  ;;  %v8990_v55 = vld [vmem:[#allocation270_spill] sm:$0xff] }
 0x27b   :  { %3297 = vmatpush.bf16.msra.mxu2 %v6794_v30  ;;  %3310 = vmatpush.bf16.msra.mxu3 %v8983_v39  ;;  %v8986_v30 = vld [vmem:[#allocation266_spill] sm:$0xff]  ;;  %v8989_v39 = vld [vmem:[#allocation269_spill] sm:$0xff] }
 0x27c   :  { %3272 = vmatmul.bf16.vlgmr.msra.gmra.mxu0 %v6981_v4  ;;  %3285 = vmatmul.bf16.vlgmr.msra.gmra.mxu1 %v6987_v31 }
 0x27d   :  { %3316 = vmatpush.bf16.msrb.mxu0 %v8980_v43  ;;  %3329 = vmatpush.bf16.msrb.mxu1 %v8981_v35  ;;  %v8988_v35 = vld [vmem:[#allocation296_spill] sm:$0xff]  ;;  %v3078_v43 = vpop.f32.mrf.mxu1 }
 0x27e   :  { %3298 = vmatmul.bf16.vlgmr.msra.gmra.mxu2 %v7024_v1  ;;  %3311 = vmatmul.bf16.vlgmr.msra.gmra.mxu3 %v7030_v23 }
 0x27f   :  { %3342 = vmatpush.bf16.msrb.mxu2 %v8982_v42  ;;  %3355 = vmatpush.bf16.msrb.mxu3 %v8984_v19  ;;  %v3065_v42 = vpop.f32.mrf.mxu0  ;;  %v8991_v19 = vld [vmem:[#allocation299_spill] sm:$0xff] }
 0x280   :  { %v3066_v61 = vadd.f32 %v3065_v42, %v3053_v14  ;;  %v8997_v42 = vld [vmem:[#allocation277_spill] sm:$0xff] }
 0x281   :  { %3317 = vmatpush.bf16.msrb.mxu0 %v8985_v59  ;;  %3330 = vmatpush.bf16.msrb.mxu1 %v8986_v30  ;;  %v8994_v59 = vld [vmem:[#allocation274_spill] sm:$0xff]  ;;  %v8995_v30 = vld [vmem:[#allocation303_spill] sm:$0xff] }
 0x282   :  { %v3079_v5 = vadd.f32 %v3078_v43, %v3066_v61  ;;  %v8999_v43 = vld [vmem:[#allocation278_spill] sm:$0xff]  ;;  %v9000_v61 = vld [vmem:[#allocation307_spill] sm:$0xff] }
 0x283   :  { %3343 = vmatpush.bf16.msrb.mxu2 %v8987_v45  ;;  %3356 = vmatpush.bf16.msrb.mxu3 %v8988_v35  ;;  %v3091_v45 = vpop.f32.mrf.mxu2 }
 0x284   :  { %v3092_v35 = vadd.f32 %v3091_v45, %v3079_v5  ;;  %v9004_v45 = vld [vmem:[#allocation311_spill] sm:$0xff] }
 0x285   :  { %3318 = vmatpush.bf16.msrb.mxu0 %v8989_v39  ;;  %3331 = vmatpush.bf16.msrb.mxu1 %v8990_v55  ;;  %v3104_v39 = vpop.f32.mrf.mxu3 }
 0x286   :  { %v7321_v55 = vadd.f32 %v3104_v39, %v3092_v35  ;;  %v9007_v35 = vld [vmem:[#allocation286_spill] sm:$0xff]  ;;  %v9009_v39 = vld [vmem:[#allocation289_spill] sm:$0xff] }
 0x287   :  { %3344 = vmatpush.bf16.msrb.mxu2 %v8991_v19  ;;  %3357 = vmatpush.bf16.msrb.mxu3 %v8992_v27  ;;  %v3067_v14 = vpop.f32.mrf.mxu0  ;;  %v3080_v19 = vpop.f32.mrf.mxu1  ;;  %v9001_v27 = vld [vmem:[#allocation308_spill] sm:$0xff] }
 0x288   :  { %8998 = vst [vmem:[#allocation223_spill] sm:$0xff] %v7321_v55  ;;  %v9008_v19 = vld [vmem:[#allocation315_spill] sm:$0xff]  ;;  %v9010_v55 = vld [vmem:[#allocation293_spill] sm:$0xff] }
 0x289   :  { %3319 = vmatpush.bf16.msrb.mxu0 %v8993_v62  ;;  %3332 = vmatpush.bf16.msrb.mxu1 %v8994_v59  ;;  %v9002_v59 = vld [vmem:[#allocation281_spill] sm:$0xff] }
 0x28b   :  { %3345 = vmatpush.bf16.msrb.mxu2 %v8995_v30  ;;  %3358 = vmatpush.bf16.msrb.mxu3 %v8996_v41  ;;  %v9003_v30 = vld [vmem:[#allocation282_spill] sm:$0xff]  ;;  %v3093_v5 = vpop.f32.mrf.mxu2  ;;  %v9005_v41 = vld [vmem:[#allocation312_spill] sm:$0xff] }
 0x28c   :  { %v9012_v5 = vld [vmem:[#allocation294_spill] sm:$0xff] }
 0x28d   :  { %3320 = vmatpush.bf16.msrb.mxu0 %v8997_v42  ;;  %3333 = vmatpush.bf16.msrb.mxu1 %v8999_v43  ;;  %v3106_v14 = vpop.f32.mrf.mxu3  ;;  %v9006_v42 = vld [vmem:[#allocation285_spill] sm:$0xff] }
 0x28e   :  { %v9013_v14 = vld [vmem:[#allocation297_spill] sm:$0xff] }
 0x28f   :  { %3346 = vmatpush.bf16.msrb.mxu2 %v9000_v61  ;;  %3359 = vmatpush.bf16.msrb.mxu3 %v9001_v27  ;;  %v9011_v27 = vld [vmem:[#allocation292_spill] sm:$0xff] }
 0x291   :  { %3321 = vmatpush.bf16.msrb.mxu0 %v9002_v59  ;;  %3334 = vmatpush.bf16.msrb.mxu1 %v9003_v30 }
 0x293   :  { %3347 = vmatpush.bf16.msrb.mxu2 %v9004_v45  ;;  %3360 = vmatpush.bf16.msrb.mxu3 %v9005_v41  ;;  %v9018_v41 = vld [vmem:[#allocation306_spill] sm:$0xff] }
 0x295   :  { %3322 = vmatpush.bf16.msrb.mxu0 %v9006_v42  ;;  %3335 = vmatpush.bf16.msrb.mxu1 %v9007_v35 }
 0x297   :  { %3348 = vmatpush.bf16.msrb.mxu2 %v9008_v19  ;;  %3361 = vmatpush.bf16.msrb.mxu3 %v6888_v53  ;;  %v9016_v19 = vld [vmem:[#allocation302_spill] sm:$0xff] }
 0x299   :  { %3323 = vmatpush.bf16.msrb.mxu0 %v9009_v39  ;;  %3336 = vmatpush.bf16.msrb.mxu1 %v9010_v55 }
 0x29b   :  { %3349 = vmatpush.bf16.msrb.mxu2 %v6896_v11  ;;  %3362 = vmatpush.bf16.msrb.mxu3 %v6900_v63  ;;  %v9014_v11 = vld [vmem:[#allocation298_spill] sm:$0xff]  ;;  %v9015_v63 = vld [vmem:[#allocation301_spill] sm:$0xff] }
 0x29c   :  { %3324 = vmatmul.bf16.vlgmr.msrb.gmra.mxu0 %v7028_v51  ;;  %3337 = vmatmul.bf16.vlgmr.msrb.gmra.mxu1 %v7034_v49 }
 0x29d   :  { %3368 = vmatpush.bf16.msra.mxu0 %v9011_v27  ;;  %3381 = vmatpush.bf16.msra.mxu1 %v9012_v5 }
 0x29e   :  { %3350 = vmatmul.bf16.vlgmr.msrb.gmra.mxu2 %v6981_v4  ;;  %3363 = vmatmul.bf16.vlgmr.msrb.gmra.mxu3 %v6987_v31  ;;  %v3130_v4 = vpop.f32.mrf.mxu1  ;;  %v9017_v31 = vld [vmem:[#allocation305_spill] sm:$0xff] }
 0x29f   :  { %3394 = vmatpush.bf16.msra.mxu2 %v6904_v28  ;;  %3407 = vmatpush.bf16.msra.mxu3 %v6906_v2  ;;  %v3117_v28 = vpop.f32.mrf.mxu0 }
 0x2a0   :  { %v3118_v53 = vadd.f32 %v3117_v28, %v6959_v17  ;;  %v9019_v28 = vld [vmem:[#allocation309_spill] sm:$0xff] }
 0x2a1   :  { %3369 = vmatpush.bf16.msra.mxu0 %v9013_v14  ;;  %3382 = vmatpush.bf16.msra.mxu1 %v9014_v11  ;;  %v3156_v45 = vpop.f32.mrf.mxu3 }
 0x2a2   :  { %v3131_v2 = vadd.f32 %v3130_v4, %v3118_v53  ;;  %v9021_v53 = vld [vmem:[#allocation313_spill] sm:$0xff]  ;;  %v9022_v4 = vld [vmem:[#allocation314_spill] sm:$0xff] }
 0x2a3   :  { %3395 = vmatpush.bf16.msra.mxu2 %v6916_v0  ;;  %3408 = vmatpush.bf16.msra.mxu3 %v6918_v48  ;;  %v3143_v48 = vpop.f32.mrf.mxu2 }
 0x2a4   :  { %v3144_v0 = vadd.f32 %v3143_v48, %v3131_v2 }
 0x2a5   :  { %3370 = vmatpush.bf16.msra.mxu0 %v9015_v63  ;;  %3383 = vmatpush.bf16.msra.mxu1 %v9016_v19 }
 0x2a6   :  { %v3157_v61 = vadd.f32 %v3156_v45, %v3144_v0  ;;  %v3132_v19 = vpop.f32.mrf.mxu1  ;;  %v9023_v0 = vld [vmem:[#allocation12_spill] sm:$0xff] }
 0x2a7   :  { %3396 = vmatpush.bf16.msra.mxu2 %v6928_v24  ;;  %3409 = vmatpush.bf16.msra.mxu3 %v6930_v20  ;;  %v3119_v17 = vpop.f32.mrf.mxu0  ;;  %v9020_v24 = vld [vmem:[#allocation310_spill] sm:$0xff]  ;;  %v9030_v19 = vld [vmem:[#allocation21_spill] sm:$0xff] }
 0x2a9   :  { %3371 = vmatpush.bf16.msra.mxu0 %v9017_v31  ;;  %3384 = vmatpush.bf16.msra.mxu1 %v9018_v41  ;;  %v3158_v48 = vpop.f32.mrf.mxu3 }
 0x2aa   :  { %v9034_v48 = vld [vmem:[#allocation25_spill] sm:$0xff] }
 0x2ab   :  { %3397 = vmatpush.bf16.msra.mxu2 %v6937_v47  ;;  %3410 = vmatpush.bf16.msra.mxu3 %v6939_v26  ;;  %v3145_v2 = vpop.f32.mrf.mxu2 }
 0x2ac   :  { %v9032_v2 = vld [vmem:[#allocation23_spill] sm:$0xff] }
 0x2ad   :  { %3372 = vmatpush.bf16.msra.mxu0 %v9019_v28  ;;  %3385 = vmatpush.bf16.msra.mxu1 %v9020_v24 }
 0x2af   :  { %3398 = vmatpush.bf16.msra.mxu2 %v6945_v60  ;;  %3411 = vmatpush.bf16.msra.mxu3 %v6947_v10 }
 0x2b1   :  { %3373 = vmatpush.bf16.msra.mxu0 %v9021_v53  ;;  %3386 = vmatpush.bf16.msra.mxu1 %v9022_v4 }
 0x2b3   :  { %3399 = vmatpush.bf16.msra.mxu2 %v6953_v22  ;;  %3412 = vmatpush.bf16.msra.mxu3 %v6955_v37 }
 0x2b5   :  { %3374 = vmatpush.bf16.msra.mxu0 %v6890_v15  ;;  %3387 = vmatpush.bf16.msra.mxu1 %v6893_v54 }
 0x2b7   :  { %3400 = vmatpush.bf16.msra.mxu2 %v6963_v29  ;;  %3413 = vmatpush.bf16.msra.mxu3 %v6965_v36 }
 0x2b9   :  { %3375 = vmatpush.bf16.msra.mxu0 %v6902_v58  ;;  %3388 = vmatpush.bf16.msra.mxu1 %v6909_v52 }
 0x2bb   :  { %3401 = vmatpush.bf16.msra.mxu2 %v6971_v33  ;;  %3414 = vmatpush.bf16.msra.mxu3 %v6973_v44 }
 0x2bc   :  { %3376 = vmatmul.bf16.vlgmr.msra.gmra.mxu0 %v7024_v1  ;;  %3389 = vmatmul.bf16.vlgmr.msra.gmra.mxu1 %v7030_v23  ;;  %v3182_v1 = vpop.f32.mrf.mxu1  ;;  %v9027_v23 = vld [vmem:[#allocation16_spill] sm:$0xff] }
 0x2bd   :  { %3420 = vmatpush.bf16.msrb.mxu0 %v5858_v3  ;;  %3433 = vmatpush.bf16.msrb.mxu1 %v5860_v7  ;;  %v3169_v3 = vpop.f32.mrf.mxu0  ;;  %v9024_v7 = vld [vmem:[#allocation13_spill] sm:$0xff] }
 0x2be   :  { %3402 = vmatmul.bf16.vlgmr.msra.gmra.mxu2 %v7028_v51  ;;  %3415 = vmatmul.bf16.vlgmr.msra.gmra.mxu3 %v7034_v49  ;;  %v9025_v51 = vld [vmem:[#allocation14_spill] sm:$0xff] }
 0x2bf   :  { %3446 = vmatpush.bf16.msrb.mxu2 %v5862_v8  ;;  %3459 = vmatpush.bf16.msrb.mxu3 %v5865_v12  ;;  %v3170_v8 = vadd.f32 %v3169_v3, %v3157_v61  ;;  %v9036_v3 = vld [vmem:[#allocation27_spill] sm:$0xff] }
 0x2c1   :  { %3421 = vmatpush.bf16.msrb.mxu0 %v5869_v16  ;;  %3434 = vmatpush.bf16.msrb.mxu1 %v9023_v0  ;;  %v7390_v12 = vadd.f32 %v3182_v1, %v3170_v8  ;;  %v9026_v16 = vld [vmem:[#allocation15_spill] sm:$0xff]  ;;  %v3208_v49 = vpop.f32.mrf.mxu3  ;;  %v542_v0 = vld.sshfl [vmem:[#allocation1 + $0x10] sm:$0xff pattern:$0x73625140] }
 0x2c2   :  { %v543_v8 = vld.sshfl [vmem:[#allocation1 + $0x18] sm:$0xff pattern:$0x73625140]  ;;  %v9037_v1 = vld [vmem:[#allocation28_spill] sm:$0xff] }
 0x2c3   :  { %3447 = vmatpush.bf16.msrb.mxu2 %v5874_v21  ;;  %3460 = vmatpush.bf16.msrb.mxu3 %v5876_v25  ;;  %v3195_v21 = vpop.f32.mrf.mxu2 }
 0x2c4   :  { %v3196_v25 = vadd.f32 %v3195_v21, %v7052_v13  ;;  %v3184_v45 = vpop.f32.mrf.mxu1  ;;  %v9039_v21 = vld [vmem:[#allocation30_spill] sm:$0xff] }
 0x2c5   :  { %3422 = vmatpush.bf16.msrb.mxu0 %v9024_v7  ;;  %3435 = vmatpush.bf16.msrb.mxu1 %v9025_v51  ;;  %v3171_v61 = vpop.f32.mrf.mxu0  ;;  %v9038_v51 = vld [vmem:[#allocation29_spill] sm:$0xff]  ;;  %v7423_v45 = vpack.c.bf16 %v543_v8, %v543_v8  ;;  %v9053_v8 = vld [vmem:[#allocation44_spill] sm:$0xff] }
 0x2c6   :  { %v9042_v61 = vld [vmem:[#allocation33_spill] sm:$0xff] }
 0x2c7   :  { %3448 = vmatpush.bf16.msrb.mxu2 %v5885_v34  ;;  %3461 = vmatpush.bf16.msrb.mxu3 %v5888_v38  ;;  %v3209_v34 = vadd.f32 %v3208_v49, %v3196_v25  ;;  %v9028_v38 = vld [vmem:[#allocation19_spill] sm:$0xff]  ;;  %v9041_v49 = vld [vmem:[#allocation32_spill] sm:$0xff] }
 0x2c8   :  { %v9040_v25 = vld [vmem:[#allocation31_spill] sm:$0xff] }
 0x2c9   :  { %3423 = vmatpush.bf16.msrb.mxu0 %v9026_v16  ;;  %3436 = vmatpush.bf16.msrb.mxu1 %v9027_v23  ;;  %v3210_v17 = vpop.f32.mrf.mxu3  ;;  %v7417_v23 = vpack.c.bf16 %v542_v0, %v542_v0  ;;  %v9051_v0 = vld [vmem:[#allocation42_spill] sm:$0xff] }
 0x2cb   :  { %3449 = vmatpush.bf16.msrb.mxu2 %v5897_v46  ;;  %3462 = vmatpush.bf16.msrb.mxu3 %v5900_v50  ;;  %v9029_v46 = vld [vmem:[#allocation20_spill] sm:$0xff]  ;;  %v3197_v13 = vpop.f32.mrf.mxu2  ;;  %v9031_v50 = vld [vmem:[#allocation22_spill] sm:$0xff] }
 0x2cc   :  { %v9046_v13 = vld [vmem:[#allocation37_spill] sm:$0xff] }
 0x2cd   :  { %3424 = vmatpush.bf16.msrb.mxu0 %v5903_v56  ;;  %3437 = vmatpush.bf16.msrb.mxu1 %v5907_v57  ;;  %v9033_v56 = vld [vmem:[#allocation24_spill] sm:$0xff]  ;;  %v540_v57 = vld.sshfl [vmem:[#allocation1] sm:$0xff pattern:$0x73625140] }
 0x2ce   :  { %v7411_v7 = vpack.c.bf16 %v540_v57, %v540_v57 }
 0x2cf   :  { %3450 = vmatpush.bf16.msrb.mxu2 %v8734_v9  ;;  %3463 = vmatpush.bf16.msrb.mxu3 %v8735_v40  ;;  %v541_v9 = vld.sshfl [vmem:[#allocation1 + $0x8] sm:$0xff pattern:$0x73625140]  ;;  %v9035_v40 = vld [vmem:[#allocation26_spill] sm:$0xff] }
 0x2d0   :  { %v7415_v16 = vpack.c.bf16 %v541_v9, %v541_v9  ;;  %v9050_v9 = vld [vmem:[#allocation41_spill] sm:$0xff] }
 0x2d1   :  { %3425 = vmatpush.bf16.msrb.mxu0 %v9028_v38  ;;  %3438 = vmatpush.bf16.msrb.mxu1 %v9029_v46  ;;  %v9043_v38 = vld [vmem:[#allocation34_spill] sm:$0xff]  ;;  %v9044_v46 = vld [vmem:[#allocation35_spill] sm:$0xff] }
 0x2d3   :  { %3451 = vmatpush.bf16.msrb.mxu2 %v9030_v19  ;;  %3464 = vmatpush.bf16.msrb.mxu3 %v9031_v50  ;;  %v9045_v19 = vld [vmem:[#allocation36_spill] sm:$0xff]  ;;  %v9047_v50 = vld [vmem:[#allocation38_spill] sm:$0xff] }
 0x2d5   :  { %3426 = vmatpush.bf16.msrb.mxu0 %v9032_v2  ;;  %3439 = vmatpush.bf16.msrb.mxu1 %v9033_v56  ;;  %v9048_v2 = vld [vmem:[#allocation39_spill] sm:$0xff]  ;;  %v9049_v56 = vld [vmem:[#allocation40_spill] sm:$0xff] }
 0x2d7   :  { %3452 = vmatpush.bf16.msrb.mxu2 %v9034_v48  ;;  %3465 = vmatpush.bf16.msrb.mxu3 %v9035_v40 }
 0x2d9   :  { %3427 = vmatpush.bf16.msrb.mxu0 %v9036_v3  ;;  %3440 = vmatpush.bf16.msrb.mxu1 %v9037_v1  ;;  %v3221_v17 = vpop.f32.mrf.mxu0  ;;  %v3234_v57 = vpop.f32.mrf.mxu1  ;;  %v9052_v3 = vld [vmem:[#allocation43_spill] sm:$0xff]  ;;  %v9054_v1 = vld [vmem:[#allocation45_spill] sm:$0xff] }
 0x2da   :  { %v3222_v48 = vadd.f32 %v3221_v17, %v3209_v34  ;;  %v9057_v34 = vld [vmem:[#allocation48_spill] sm:$0xff] }
 0x2db   :  { %3453 = vmatpush.bf16.msrb.mxu2 %v9038_v51  ;;  %3466 = vmatpush.bf16.msrb.mxu3 %v9042_v61  ;;  %v9060_v17 = vld [vmem:[#allocation52_spill] sm:$0xff] }
 0x2dc   :  { %3428 = vmatmul.bf16.vlgmr.msrb.gmra.mxu0 %v7411_v7  ;;  %3441 = vmatmul.bf16.vlgmr.msrb.gmra.mxu1 %v7415_v16  ;;  %v3235_v40 = vadd.f32 %v3234_v57, %v3222_v48  ;;  %v9063_v57 = vld [vmem:[#allocation55_spill] sm:$0xff] }
 0x2dd   :  { %3472 = vmatpush.bf16.msra.mxu0 %v9039_v21  ;;  %3485 = vmatpush.bf16.msra.mxu1 %v9040_v25  ;;  %v9055_v21 = vld [vmem:[#allocation46_spill] sm:$0xff] }
 0x2de   :  { %3454 = vmatmul.bf16.vlgmr.msrb.gmra.mxu2 %v7417_v23  ;;  %3467 = vmatmul.bf16.vlgmr.msrb.gmra.mxu3 %v7423_v45 }
 0x2df   :  { %3498 = vmatpush.bf16.msra.mxu2 %v9041_v49  ;;  %3511 = vmatpush.bf16.msra.mxu3 %v9043_v38  ;;  %v9056_v38 = vld [vmem:[#allocation47_spill] sm:$0xff] }
 0x2e1   :  { %3473 = vmatpush.bf16.msra.mxu0 %v9044_v46  ;;  %3486 = vmatpush.bf16.msra.mxu1 %v9045_v19  ;;  %v3247_v51 = vpop.f32.mrf.mxu2  ;;  %v3260_v49 = vpop.f32.mrf.mxu3 }
 0x2e2   :  { %v3248_v25 = vadd.f32 %v3247_v51, %v3235_v40  ;;  %v3223_v61 = vpop.f32.mrf.mxu0  ;;  %v3236_v19 = vpop.f32.mrf.mxu1  ;;  %v9065_v40 = vld [vmem:[#allocation57_spill] sm:$0xff]  ;;  %v9067_v51 = vld [vmem:[#allocation59_spill] sm:$0xff] }
 0x2e3   :  { %3499 = vmatpush.bf16.msra.mxu2 %v9046_v13  ;;  %3512 = vmatpush.bf16.msra.mxu3 %v9047_v50  ;;  %v9058_v13 = vld [vmem:[#allocation50_spill] sm:$0xff]  ;;  %v9059_v50 = vld [vmem:[#allocation51_spill] sm:$0xff] }
 0x2e4   :  { %v7444_v46 = vadd.f32 %v3260_v49, %v3248_v25  ;;  %v9068_v25 = vld [vmem:[#allocation60_spill] sm:$0xff]  ;;  %v9069_v49 = vld [vmem:[#allocation61_spill] sm:$0xff]  ;;  %v9072_v19 = vld [vmem:[#allocation66_spill] sm:$0xff] }
 0x2e5   :  { %3474 = vmatpush.bf16.msra.mxu0 %v9048_v2  ;;  %3487 = vmatpush.bf16.msra.mxu1 %v9049_v56  ;;  %v9061_v2 = vld [vmem:[#allocation53_spill] sm:$0xff]  ;;  %v9062_v56 = vld [vmem:[#allocation54_spill] sm:$0xff] }
 0x2e7   :  { %3500 = vmatpush.bf16.msra.mxu2 %v9050_v9  ;;  %3513 = vmatpush.bf16.msra.mxu3 %v9051_v0  ;;  %v9064_v0 = vld [vmem:[#allocation56_spill] sm:$0xff] }
 0x2e9   :  { %3475 = vmatpush.bf16.msra.mxu0 %v9052_v3  ;;  %3488 = vmatpush.bf16.msra.mxu1 %v9053_v8  ;;  %v3249_v48 = vpop.f32.mrf.mxu2  ;;  %v3262_v9 = vpop.f32.mrf.mxu3  ;;  %v544_v3 = vld.sshfl [vmem:[#allocation1 + $0x20] sm:$0xff pattern:$0x73625140] }
 0x2ea   :  { %v9066_v8 = vld [vmem:[#allocation58_spill] sm:$0xff]  ;;  %v9078_v48 = vld [vmem:[#allocation71_spill] sm:$0xff]  ;;  %v9080_v9 = vld [vmem:[#allocation73_spill] sm:$0xff] }
 0x2eb   :  { %3501 = vmatpush.bf16.msra.mxu2 %v9054_v1  ;;  %3514 = vmatpush.bf16.msra.mxu3 %v9055_v21  ;;  %v545_v1 = vld.sshfl [vmem:[#allocation1 + $0x28] sm:$0xff pattern:$0x73625140]  ;;  %v7456_v21 = vpack.c.bf16 %v544_v3, %v544_v3 }
 0x2ec   :  { %v7460_v61 = vpack.c.bf16 %v545_v1, %v545_v1  ;;  %v9082_v3 = vld [vmem:[#allocation75_spill] sm:$0xff] }
 0x2ed   :  { %3476 = vmatpush.bf16.msra.mxu0 %v9056_v38  ;;  %3489 = vmatpush.bf16.msra.mxu1 %v9057_v34  ;;  %v9070_v38 = vld [vmem:[#allocation62_spill] sm:$0xff]  ;;  %v9071_v34 = vld [vmem:[#allocation65_spill] sm:$0xff] }
 0x2ef   :  { %3502 = vmatpush.bf16.msra.mxu2 %v9058_v13  ;;  %3515 = vmatpush.bf16.msra.mxu3 %v9059_v50  ;;  %v9073_v13 = vld [vmem:[#allocation67_spill] sm:$0xff] }
 0x2f0   :  { %v9074_v50 = vld [vmem:[#allocation63_spill] sm:$0xff] }
 0x2f1   :  { %3477 = vmatpush.bf16.msra.mxu0 %v9060_v17  ;;  %3490 = vmatpush.bf16.msra.mxu1 %v9061_v2  ;;  %v9075_v17 = vld [vmem:[#allocation68_spill] sm:$0xff]  ;;  %v9076_v2 = vld [vmem:[#allocation69_spill] sm:$0xff] }
 0x2f3   :  { %3503 = vmatpush.bf16.msra.mxu2 %v9062_v56  ;;  %3516 = vmatpush.bf16.msra.mxu3 %v9063_v57  ;;  %v9077_v56 = vld [vmem:[#allocation70_spill] sm:$0xff]  ;;  %v9079_v57 = vld [vmem:[#allocation72_spill] sm:$0xff] }
 0x2f5   :  { %3478 = vmatpush.bf16.msra.mxu0 %v9064_v0  ;;  %3491 = vmatpush.bf16.msra.mxu1 %v9065_v40  ;;  %v9081_v40 = vld [vmem:[#allocation74_spill] sm:$0xff] }
 0x2f7   :  { %3504 = vmatpush.bf16.msra.mxu2 %v9066_v8  ;;  %3517 = vmatpush.bf16.msra.mxu3 %v9067_v51  ;;  %v9083_v8 = vld [vmem:[#allocation17_spill] sm:$0xff] }
 0x2f9   :  { %3479 = vmatpush.bf16.msra.mxu0 %v9068_v25  ;;  %3492 = vmatpush.bf16.msra.mxu1 %v9069_v49  ;;  %v3273_v0 = vpop.f32.mrf.mxu0  ;;  %v3286_v51 = vpop.f32.mrf.mxu1  ;;  %v9084_v25 = vld [vmem:[#allocation76_spill] sm:$0xff] }
 0x2fa   :  { %v3274_v1 = vadd.f32 %v3273_v0, %v9083_v8  ;;  %v9093_v8 = vld [vmem:[#allocation85_spill] sm:$0xff] }
 0x2fb   :  { %3505 = vmatpush.bf16.msra.mxu2 %v9070_v38  ;;  %3518 = vmatpush.bf16.msra.mxu3 %v9074_v50  ;;  %v9085_v38 = vld [vmem:[#allocation77_spill] sm:$0xff]  ;;  %v9088_v50 = vld [vmem:[#allocation80_spill] sm:$0xff] }
 0x2fc   :  { %3480 = vmatmul.bf16.vlgmr.msra.gmra.mxu0 %v7456_v21  ;;  %3493 = vmatmul.bf16.vlgmr.msra.gmra.mxu1 %v7460_v61  ;;  %v3287_v49 = vadd.f32 %v3286_v51, %v3274_v1  ;;  %v9094_v1 = vld [vmem:[#allocation86_spill] sm:$0xff]  ;;  %v9095_v51 = vld [vmem:[#allocation87_spill] sm:$0xff] }
 0x2fd   :  { %3524 = vmatpush.bf16.msrb.mxu0 %v9071_v34  ;;  %3537 = vmatpush.bf16.msrb.mxu1 %v9072_v19  ;;  %v9086_v34 = vld [vmem:[#allocation78_spill] sm:$0xff]  ;;  %v9087_v19 = vld [vmem:[#allocation79_spill] sm:$0xff] }
 0x2fe   :  { %3506 = vmatmul.bf16.vlgmr.msra.gmra.mxu2 %v7411_v7  ;;  %3519 = vmatmul.bf16.vlgmr.msra.gmra.mxu3 %v7415_v16 }
 0x2ff   :  { %3550 = vmatpush.bf16.msrb.mxu2 %v9073_v13  ;;  %3563 = vmatpush.bf16.msrb.mxu3 %v9075_v17 }
 0x301   :  { %3525 = vmatpush.bf16.msrb.mxu0 %v9076_v2  ;;  %3538 = vmatpush.bf16.msrb.mxu1 %v9077_v56  ;;  %v3299_v13 = vpop.f32.mrf.mxu2  ;;  %v9089_v2 = vld [vmem:[#allocation81_spill] sm:$0xff]  ;;  %v3312_v56 = vpop.f32.mrf.mxu3 }
 0x302   :  { %v3300_v17 = vadd.f32 %v3299_v13, %v3287_v49  ;;  %v9096_v49 = vld [vmem:[#allocation88_spill] sm:$0xff]  ;;  %v9099_v13 = vld [vmem:[#allocation91_spill] sm:$0xff] }
 0x303   :  { %3551 = vmatpush.bf16.msrb.mxu2 %v9078_v48  ;;  %3564 = vmatpush.bf16.msrb.mxu3 %v9079_v57  ;;  %v3275_v48 = vpop.f32.mrf.mxu0  ;;  %v9090_v57 = vld [vmem:[#allocation82_spill] sm:$0xff] }
 0x304   :  { %v3313_v0 = vadd.f32 %v3312_v56, %v3300_v17  ;;  %v9101_v17 = vld [vmem:[#allocation93_spill] sm:$0xff]  ;;  %v9103_v56 = vld [vmem:[#allocation95_spill] sm:$0xff]  ;;  %v9104_v48 = vld [vmem:[#allocation96_spill] sm:$0xff] }
 0x305   :  { %3526 = vmatpush.bf16.msrb.mxu0 %v9080_v9  ;;  %3539 = vmatpush.bf16.msrb.mxu1 %v9081_v40  ;;  %v9091_v9 = vld [vmem:[#allocation83_spill] sm:$0xff]  ;;  %v3288_v40 = vpop.f32.mrf.mxu1 }
 0x306   :  { %v9107_v40 = vld [vmem:[#allocation99_spill] sm:$0xff] }
 0x307   :  { %3552 = vmatpush.bf16.msrb.mxu2 %v9082_v3  ;;  %3565 = vmatpush.bf16.msrb.mxu3 %v9084_v25  ;;  %v9092_v3 = vld [vmem:[#allocation84_spill] sm:$0xff] }
 0x309   :  { %3527 = vmatpush.bf16.msrb.mxu0 %v9085_v38  ;;  %3540 = vmatpush.bf16.msrb.mxu1 %v9086_v34  ;;  %v3301_v25 = vpop.f32.mrf.mxu2  ;;  %v9097_v38 = vld [vmem:[#allocation89_spill] sm:$0xff]  ;;  %v3314_v34 = vpop.f32.mrf.mxu3 }
 0x30a   :  { %v9112_v25 = vld [vmem:[#allocation104_spill] sm:$0xff]  ;;  %v9114_v34 = vld [vmem:[#allocation106_spill] sm:$0xff] }
 0x30b   :  { %3553 = vmatpush.bf16.msrb.mxu2 %v9087_v19  ;;  %3566 = vmatpush.bf16.msrb.mxu3 %v9088_v50  ;;  %v9098_v19 = vld [vmem:[#allocation90_spill] sm:$0xff]  ;;  %v9100_v50 = vld [vmem:[#allocation92_spill] sm:$0xff] }
 0x30d   :  { %3528 = vmatpush.bf16.msrb.mxu0 %v9089_v2  ;;  %3541 = vmatpush.bf16.msrb.mxu1 %v9090_v57  ;;  %v9102_v2 = vld [vmem:[#allocation94_spill] sm:$0xff]  ;;  %v9105_v57 = vld [vmem:[#allocation97_spill] sm:$0xff] }
 0x30f   :  { %3554 = vmatpush.bf16.msrb.mxu2 %v9091_v9  ;;  %3567 = vmatpush.bf16.msrb.mxu3 %v9092_v3  ;;  %v9106_v9 = vld [vmem:[#allocation98_spill] sm:$0xff]  ;;  %v9108_v3 = vld [vmem:[#allocation100_spill] sm:$0xff] }
 0x311   :  { %3529 = vmatpush.bf16.msrb.mxu0 %v9093_v8  ;;  %3542 = vmatpush.bf16.msrb.mxu1 %v9094_v1  ;;  %v9109_v8 = vld [vmem:[#allocation101_spill] sm:$0xff]  ;;  %v9110_v1 = vld [vmem:[#allocation102_spill] sm:$0xff] }
 0x313   :  { %3555 = vmatpush.bf16.msrb.mxu2 %v9095_v51  ;;  %3568 = vmatpush.bf16.msrb.mxu3 %v9096_v49  ;;  %v9111_v51 = vld [vmem:[#allocation103_spill] sm:$0xff]  ;;  %v9113_v49 = vld [vmem:[#allocation105_spill] sm:$0xff] }
 0x315   :  { %3530 = vmatpush.bf16.msrb.mxu0 %v9097_v38  ;;  %3543 = vmatpush.bf16.msrb.mxu1 %v9098_v19  ;;  %v9115_v19 = vld [vmem:[#allocation107_spill] sm:$0xff] }
 0x317   :  { %3556 = vmatpush.bf16.msrb.mxu2 %v9099_v13  ;;  %3569 = vmatpush.bf16.msrb.mxu3 %v9100_v50 }
 0x319   :  { %3531 = vmatpush.bf16.msrb.mxu0 %v9101_v17  ;;  %3544 = vmatpush.bf16.msrb.mxu1 %v9102_v2  ;;  %v3325_v38 = vpop.f32.mrf.mxu0  ;;  %v3338_v50 = vpop.f32.mrf.mxu1  ;;  %v9116_v17 = vld [vmem:[#allocation108_spill] sm:$0xff] }
 0x31a   :  { %v3326_v13 = vadd.f32 %v3325_v38, %v3313_v0 }
 0x31b   :  { %3557 = vmatpush.bf16.msrb.mxu2 %v9103_v56  ;;  %3570 = vmatpush.bf16.msrb.mxu3 %v9107_v40  ;;  %v9117_v56 = vld [vmem:[#allocation109_spill] sm:$0xff] }
 0x31c   :  { %3532 = vmatmul.bf16.vlgmr.msrb.gmra.mxu0 %v7417_v23  ;;  %3545 = vmatmul.bf16.vlgmr.msrb.gmra.mxu1 %v7423_v45  ;;  %v7517_v2 = vadd.f32 %v3338_v50, %v3326_v13  ;;  %v9126_v13 = vld [vmem:[#allocation117_spill] sm:$0xff]  ;;  %v9127_v50 = vld [vmem:[#allocation118_spill] sm:$0xff] }
 0x31d   :  { %3576 = vmatpush.bf16.msra.mxu0 %v9104_v48  ;;  %3589 = vmatpush.bf16.msra.mxu1 %v9105_v57  ;;  %v9118_v48 = vld [vmem:[#allocation110_spill] sm:$0xff]  ;;  %v9119_v57 = vld [vmem:[#allocation111_spill] sm:$0xff] }
 0x31e   :  { %3558 = vmatmul.bf16.vlgmr.msrb.gmra.mxu2 %v7456_v21  ;;  %3571 = vmatmul.bf16.vlgmr.msrb.gmra.mxu3 %v7460_v61 }
 0x31f   :  { %3602 = vmatpush.bf16.msra.mxu2 %v9106_v9  ;;  %3615 = vmatpush.bf16.msra.mxu3 %v9108_v3  ;;  %v9120_v9 = vld [vmem:[#allocation112_spill] sm:$0xff]  ;;  %v9121_v3 = vld [vmem:[#allocation18_spill] sm:$0xff] }
 0x321   :  { %3577 = vmatpush.bf16.msra.mxu0 %v9109_v8  ;;  %3590 = vmatpush.bf16.msra.mxu1 %v9110_v1  ;;  %v3351_v40 = vpop.f32.mrf.mxu2  ;;  %v9122_v1 = vld [vmem:[#allocation113_spill] sm:$0xff]  ;;  %v3327_v0 = vpop.f32.mrf.mxu0 }
 0x322   :  { %v3352_v8 = vadd.f32 %v3351_v40, %v9121_v3  ;;  %v9131_v40 = vld [vmem:[#allocation122_spill] sm:$0xff]  ;;  %v9132_v3 = vld [vmem:[#allocation123_spill] sm:$0xff] }
 0x323   :  { %3603 = vmatpush.bf16.msra.mxu2 %v9111_v51  ;;  %3616 = vmatpush.bf16.msra.mxu3 %v9112_v25  ;;  %v3364_v51 = vpop.f32.mrf.mxu3  ;;  %v9123_v25 = vld [vmem:[#allocation114_spill] sm:$0xff]  ;;  %v9136_v0 = vld [vmem:[#allocation127_spill] sm:$0xff] }
 0x324   :  { %v3365_v38 = vadd.f32 %v3364_v51, %v3352_v8  ;;  %v9133_v8 = vld [vmem:[#allocation124_spill] sm:$0xff]  ;;  %v9135_v51 = vld [vmem:[#allocation126_spill] sm:$0xff] }
 0x325   :  { %3578 = vmatpush.bf16.msra.mxu0 %v9113_v49  ;;  %3591 = vmatpush.bf16.msra.mxu1 %v9114_v34  ;;  %v9124_v49 = vld [vmem:[#allocation115_spill] sm:$0xff]  ;;  %v3340_v34 = vpop.f32.mrf.mxu1 }
 0x326   :  { %v9139_v34 = vld [vmem:[#allocation130_spill] sm:$0xff] }
 0x327   :  { %3604 = vmatpush.bf16.msra.mxu2 %v9115_v19  ;;  %3617 = vmatpush.bf16.msra.mxu3 %v9116_v17  ;;  %v9125_v19 = vld [vmem:[#allocation116_spill] sm:$0xff]  ;;  %v9128_v17 = vld [vmem:[#allocation119_spill] sm:$0xff] }
 0x329   :  { %3579 = vmatpush.bf16.msra.mxu0 %v9117_v56  ;;  %3592 = vmatpush.bf16.msra.mxu1 %v9118_v48  ;;  %v9129_v56 = vld [vmem:[#allocation120_spill] sm:$0xff]  ;;  %v3353_v48 = vpop.f32.mrf.mxu2 }
 0x32a   :  { %v9145_v48 = vld [vmem:[#allocation136_spill] sm:$0xff] }
 0x32b   :  { %3605 = vmatpush.bf16.msra.mxu2 %v9119_v57  ;;  %3618 = vmatpush.bf16.msra.mxu3 %v9120_v9  ;;  %v9130_v57 = vld [vmem:[#allocation121_spill] sm:$0xff]  ;;  %v3366_v9 = vpop.f32.mrf.mxu3 }
 0x32c   :  { %v9147_v9 = vld [vmem:[#allocation138_spill] sm:$0xff] }
 0x32d   :  { %3580 = vmatpush.bf16.msra.mxu0 %v9122_v1  ;;  %3593 = vmatpush.bf16.msra.mxu1 %v9123_v25  ;;  %v9134_v1 = vld [vmem:[#allocation125_spill] sm:$0xff]  ;;  %v9137_v25 = vld [vmem:[#allocation128_spill] sm:$0xff] }
 0x32f   :  { %3606 = vmatpush.bf16.msra.mxu2 %v9124_v49  ;;  %3619 = vmatpush.bf16.msra.mxu3 %v9125_v19  ;;  %v9138_v49 = vld [vmem:[#allocation129_spill] sm:$0xff]  ;;  %v9140_v19 = vld [vmem:[#allocation131_spill] sm:$0xff] }
 0x331   :  { %3581 = vmatpush.bf16.msra.mxu0 %v9126_v13  ;;  %3594 = vmatpush.bf16.msra.mxu1 %v9127_v50  ;;  %v9141_v13 = vld [vmem:[#allocation132_spill] sm:$0xff]  ;;  %v9142_v50 = vld [vmem:[#allocation133_spill] sm:$0xff] }
 0x333   :  { %3607 = vmatpush.bf16.msra.mxu2 %v9128_v17  ;;  %3620 = vmatpush.bf16.msra.mxu3 %v9129_v56  ;;  %v9143_v17 = vld [vmem:[#allocation134_spill] sm:$0xff]  ;;  %v9144_v56 = vld [vmem:[#allocation135_spill] sm:$0xff] }
 0x335   :  { %3582 = vmatpush.bf16.msra.mxu0 %v9130_v57  ;;  %3595 = vmatpush.bf16.msra.mxu1 %v9131_v40  ;;  %v9146_v57 = vld [vmem:[#allocation137_spill] sm:$0xff] }
 0x337   :  { %3608 = vmatpush.bf16.msra.mxu2 %v9132_v3  ;;  %3621 = vmatpush.bf16.msra.mxu3 %v9133_v8  ;;  %v9148_v3 = vld [vmem:[#allocation139_spill] sm:$0xff] }
 0x339   :  { %3583 = vmatpush.bf16.msra.mxu0 %v9134_v1  ;;  %3596 = vmatpush.bf16.msra.mxu1 %v9135_v51  ;;  %v3377_v40 = vpop.f32.mrf.mxu0  ;;  %v3390_v1 = vpop.f32.mrf.mxu1  ;;  %v9149_v51 = vld [vmem:[#allocation140_spill] sm:$0xff] }
 0x33a   :  { %v3378_v8 = vadd.f32 %v3377_v40, %v3365_v38 }
 0x33b   :  { %3609 = vmatpush.bf16.msra.mxu2 %v9136_v0  ;;  %3622 = vmatpush.bf16.msra.mxu3 %v9140_v19  ;;  %v9153_v19 = vld [vmem:[#allocation144_spill] sm:$0xff] }
 0x33c   :  { %3584 = vmatmul.bf16.vlgmr.msra.gmra.mxu0 %v7411_v7  ;;  %3597 = vmatmul.bf16.vlgmr.msra.gmra.mxu1 %v7415_v16  ;;  %v3391_v0 = vadd.f32 %v3390_v1, %v3378_v8  ;;  %v9158_v8 = vld [vmem:[#allocation149_spill] sm:$0xff]  ;;  %v9159_v1 = vld [vmem:[#allocation150_spill] sm:$0xff] }
 0x33d   :  { %3628 = vmatpush.bf16.msrb.mxu0 %v9137_v25  ;;  %3641 = vmatpush.bf16.msrb.mxu1 %v9138_v49  ;;  %v9150_v25 = vld [vmem:[#allocation141_spill] sm:$0xff]  ;;  %v9151_v49 = vld [vmem:[#allocation142_spill] sm:$0xff] }
 0x33e   :  { %3610 = vmatmul.bf16.vlgmr.msra.gmra.mxu2 %v7417_v23  ;;  %3623 = vmatmul.bf16.vlgmr.msra.gmra.mxu3 %v7423_v45 }
 0x33f   :  { %3654 = vmatpush.bf16.msrb.mxu2 %v9139_v34  ;;  %3667 = vmatpush.bf16.msrb.mxu3 %v9141_v13  ;;  %v9152_v34 = vld [vmem:[#allocation143_spill] sm:$0xff] }
 0x341   :  { %3629 = vmatpush.bf16.msrb.mxu0 %v9142_v50  ;;  %3642 = vmatpush.bf16.msrb.mxu1 %v9143_v17  ;;  %v3403_v13 = vpop.f32.mrf.mxu2  ;;  %v9154_v17 = vld [vmem:[#allocation145_spill] sm:$0xff]  ;;  %v3379_v38 = vpop.f32.mrf.mxu0 }
 0x342   :  { %v3404_v50 = vadd.f32 %v3403_v13, %v3391_v0  ;;  %v3392_v40 = vpop.f32.mrf.mxu1  ;;  %v9161_v0 = vld [vmem:[#allocation152_spill] sm:$0xff]  ;;  %v9164_v13 = vld [vmem:[#allocation155_spill] sm:$0xff] }
 0x343   :  { %3655 = vmatpush.bf16.msrb.mxu2 %v9144_v56  ;;  %3668 = vmatpush.bf16.msrb.mxu3 %v9145_v48  ;;  %v9155_v56 = vld [vmem:[#allocation146_spill] sm:$0xff]  ;;  %v3416_v48 = vpop.f32.mrf.mxu3  ;;  %v9169_v38 = vld [vmem:[#allocation160_spill] sm:$0xff] }
 0x344   :  { %v9171_v40 = vld [vmem:[#allocation162_spill] sm:$0xff] }
 0x345   :  { %3630 = vmatpush.bf16.msrb.mxu0 %v9146_v57  ;;  %3643 = vmatpush.bf16.msrb.mxu1 %v9147_v9  ;;  %v9156_v57 = vld [vmem:[#allocation147_spill] sm:$0xff]  ;;  %v7563_v9 = vadd.f32 %v3416_v48, %v3404_v50  ;;  %v9165_v50 = vld [vmem:[#allocation156_spill] sm:$0xff] }
 0x346   :  { %v9168_v48 = vld [vmem:[#allocation159_spill] sm:$0xff] }
 0x347   :  { %3656 = vmatpush.bf16.msrb.mxu2 %v9148_v3  ;;  %3669 = vmatpush.bf16.msrb.mxu3 %v9149_v51  ;;  %v9157_v3 = vld [vmem:[#allocation148_spill] sm:$0xff]  ;;  %v9160_v51 = vld [vmem:[#allocation151_spill] sm:$0xff] }
 0x349   :  { %3631 = vmatpush.bf16.msrb.mxu0 %v9150_v25  ;;  %3644 = vmatpush.bf16.msrb.mxu1 %v9151_v49  ;;  %v3405_v25 = vpop.f32.mrf.mxu2  ;;  %v9162_v49 = vld [vmem:[#allocation153_spill] sm:$0xff] }
 0x34a   :  { %v9177_v25 = vld [vmem:[#allocation168_spill] sm:$0xff] }
 0x34b   :  { %3657 = vmatpush.bf16.msrb.mxu2 %v9152_v34  ;;  %3670 = vmatpush.bf16.msrb.mxu3 %v9153_v19  ;;  %v9163_v34 = vld [vmem:[#allocation154_spill] sm:$0xff]  ;;  %v3418_v19 = vpop.f32.mrf.mxu3 }
 0x34c   :  { %v9180_v19 = vld [vmem:[#allocation171_spill] sm:$0xff] }
 0x34d   :  { %3632 = vmatpush.bf16.msrb.mxu0 %v9154_v17  ;;  %3645 = vmatpush.bf16.msrb.mxu1 %v9155_v56  ;;  %v9166_v17 = vld [vmem:[#allocation157_spill] sm:$0xff]  ;;  %v9167_v56 = vld [vmem:[#allocation158_spill] sm:$0xff] }
 0x34f   :  { %3658 = vmatpush.bf16.msrb.mxu2 %v9156_v57  ;;  %3671 = vmatpush.bf16.msrb.mxu3 %v9157_v3  ;;  %v9170_v57 = vld [vmem:[#allocation161_spill] sm:$0xff]  ;;  %v9172_v3 = vld [vmem:[#allocation163_spill] sm:$0xff] }
 0x351   :  { %3633 = vmatpush.bf16.msrb.mxu0 %v9158_v8  ;;  %3646 = vmatpush.bf16.msrb.mxu1 %v9159_v1  ;;  %v9173_v8 = vld [vmem:[#allocation164_spill] sm:$0xff]  ;;  %v9174_v1 = vld [vmem:[#allocation165_spill] sm:$0xff] }
 0x353   :  { %3659 = vmatpush.bf16.msrb.mxu2 %v9160_v51  ;;  %3672 = vmatpush.bf16.msrb.mxu3 %v9161_v0  ;;  %v9175_v51 = vld [vmem:[#allocation166_spill] sm:$0xff]  ;;  %v9176_v0 = vld [vmem:[#allocation167_spill] sm:$0xff] }
 0x355   :  { %3634 = vmatpush.bf16.msrb.mxu0 %v9162_v49  ;;  %3647 = vmatpush.bf16.msrb.mxu1 %v9163_v34  ;;  %v9178_v49 = vld [vmem:[#allocation169_spill] sm:$0xff]  ;;  %v9179_v34 = vld [vmem:[#allocation170_spill] sm:$0xff] }
 0x357   :  { %3660 = vmatpush.bf16.msrb.mxu2 %v9164_v13  ;;  %3673 = vmatpush.bf16.msrb.mxu3 %v9165_v50 }
 0x359   :  { %3635 = vmatpush.bf16.msrb.mxu0 %v9166_v17  ;;  %3648 = vmatpush.bf16.msrb.mxu1 %v9167_v56  ;;  %v3429_v13 = vpop.f32.mrf.mxu0  ;;  %v3442_v50 = vpop.f32.mrf.mxu1  ;;  %v9181_v17 = vld [vmem:[#allocation172_spill] sm:$0xff] }
 0x35a   :  { %v3443_v56 = vadd.f32 %v3442_v50, %v3429_v13  ;;  %v9190_v50 = vld [vmem:[#allocation181_spill] sm:$0xff] }
 0x35b   :  { %3661 = vmatpush.bf16.msrb.mxu2 %v9168_v48  ;;  %3674 = vmatpush.bf16.msrb.mxu3 %v9172_v3  ;;  %v9182_v48 = vld [vmem:[#allocation173_spill] sm:$0xff] }
 0x35c   :  { %3636 = vmatmul.bf16.vlgmr.msrb.gmra.mxu0 %v7456_v21  ;;  %3649 = vmatmul.bf16.vlgmr.msrb.gmra.mxu1 %v7460_v61  ;;  %v9186_v3 = vld [vmem:[#allocation177_spill] sm:$0xff] }
 0x35d   :  { %3680 = vmatpush.bf16.msra.mxu0 %v9169_v38  ;;  %3693 = vmatpush.bf16.msra.mxu1 %v9170_v57  ;;  %v9183_v38 = vld [vmem:[#allocation174_spill] sm:$0xff]  ;;  %v9184_v57 = vld [vmem:[#allocation175_spill] sm:$0xff] }
 0x35e   :  { %3662 = vmatmul.bf16.vlgmr.msrb.gmra.mxu2 %v7411_v7  ;;  %3675 = vmatmul.bf16.vlgmr.msrb.gmra.mxu3 %v7415_v16 }
 0x35f   :  { %3706 = vmatpush.bf16.msra.mxu2 %v9171_v40  ;;  %3719 = vmatpush.bf16.msra.mxu3 %v9173_v8  ;;  %v9185_v40 = vld [vmem:[#allocation176_spill] sm:$0xff] }
 0x361   :  { %3681 = vmatpush.bf16.msra.mxu0 %v9174_v1  ;;  %3694 = vmatpush.bf16.msra.mxu1 %v9175_v51  ;;  %v3455_v8 = vpop.f32.mrf.mxu2  ;;  %v9187_v1 = vld [vmem:[#allocation178_spill] sm:$0xff]  ;;  %v9188_v51 = vld [vmem:[#allocation179_spill] sm:$0xff] }
 0x363   :  { %3707 = vmatpush.bf16.msra.mxu2 %v9176_v0  ;;  %3720 = vmatpush.bf16.msra.mxu3 %v9177_v25  ;;  %v3431_v0 = vpop.f32.mrf.mxu0  ;;  %v3456_v25 = vadd.f32 %v3455_v8, %v3443_v56  ;;  %v9197_v8 = vld [vmem:[#allocation188_spill] sm:$0xff] }
 0x364   :  { %v9199_v0 = vld [vmem:[#allocation190_spill] sm:$0xff] }
 0x365   :  { %3682 = vmatpush.bf16.msra.mxu0 %v9178_v49  ;;  %3695 = vmatpush.bf16.msra.mxu1 %v9179_v34  ;;  %v3444_v49 = vpop.f32.mrf.mxu1  ;;  %v3468_v34 = vpop.f32.mrf.mxu3 }
 0x366   :  { %v3469_v13 = vadd.f32 %v3468_v34, %v3456_v25  ;;  %v9200_v25 = vld [vmem:[#allocation191_spill] sm:$0xff]  ;;  %v9201_v49 = vld [vmem:[#allocation192_spill] sm:$0xff]  ;;  %v9202_v34 = vld [vmem:[#allocation193_spill] sm:$0xff] }
 0x367   :  { %3708 = vmatpush.bf16.msra.mxu2 %v9180_v19  ;;  %3721 = vmatpush.bf16.msra.mxu3 %v9181_v17  ;;  %v9189_v19 = vld [vmem:[#allocation180_spill] sm:$0xff]  ;;  %v9191_v17 = vld [vmem:[#allocation182_spill] sm:$0xff] }
 0x369   :  { %3683 = vmatpush.bf16.msra.mxu0 %v9182_v48  ;;  %3696 = vmatpush.bf16.msra.mxu1 %v9183_v38  ;;  %v9192_v48 = vld [vmem:[#allocation183_spill] sm:$0xff]  ;;  %v9193_v38 = vld [vmem:[#allocation184_spill] sm:$0xff] }
 0x36b   :  { %3709 = vmatpush.bf16.msra.mxu2 %v9184_v57  ;;  %3722 = vmatpush.bf16.msra.mxu3 %v9185_v40  ;;  %v9194_v57 = vld [vmem:[#allocation185_spill] sm:$0xff]  ;;  %v3457_v40 = vpop.f32.mrf.mxu2 }
 0x36c   :  { %v9209_v40 = vld [vmem:[#allocation200_spill] sm:$0xff] }
 0x36d   :  { %3684 = vmatpush.bf16.msra.mxu0 %v9186_v3  ;;  %3697 = vmatpush.bf16.msra.mxu1 %v9187_v1  ;;  %v9195_v3 = vld [vmem:[#allocation186_spill] sm:$0xff]  ;;  %v9196_v1 = vld [vmem:[#allocation187_spill] sm:$0xff]  ;;  %v3470_v56 = vpop.f32.mrf.mxu3 }
 0x36e   :  { %v9211_v56 = vld [vmem:[#allocation202_spill] sm:$0xff] }
 0x36f   :  { %3710 = vmatpush.bf16.msra.mxu2 %v9188_v51  ;;  %3723 = vmatpush.bf16.msra.mxu3 %v9189_v19  ;;  %v9198_v51 = vld [vmem:[#allocation189_spill] sm:$0xff]  ;;  %v9203_v19 = vld [vmem:[#allocation194_spill] sm:$0xff] }
 0x371   :  { %3685 = vmatpush.bf16.msra.mxu0 %v9190_v50  ;;  %3698 = vmatpush.bf16.msra.mxu1 %v9191_v17  ;;  %v9204_v50 = vld [vmem:[#allocation195_spill] sm:$0xff]  ;;  %v9205_v17 = vld [vmem:[#allocation196_spill] sm:$0xff] }
 0x373   :  { %3711 = vmatpush.bf16.msra.mxu2 %v9192_v48  ;;  %3724 = vmatpush.bf16.msra.mxu3 %v9193_v38  ;;  %v9206_v48 = vld [vmem:[#allocation197_spill] sm:$0xff]  ;;  %v9207_v38 = vld [vmem:[#allocation198_spill] sm:$0xff] }
 0x375   :  { %3686 = vmatpush.bf16.msra.mxu0 %v9194_v57  ;;  %3699 = vmatpush.bf16.msra.mxu1 %v9195_v3  ;;  %v9208_v57 = vld [vmem:[#allocation199_spill] sm:$0xff]  ;;  %v9210_v3 = vld [vmem:[#allocation201_spill] sm:$0xff] }
 0x377   :  { %3712 = vmatpush.bf16.msra.mxu2 %v9196_v1  ;;  %3725 = vmatpush.bf16.msra.mxu3 %v9197_v8  ;;  %v9212_v8 = vld [vmem:[#allocation203_spill] sm:$0xff] }
 0x379   :  { %3687 = vmatpush.bf16.msra.mxu0 %v9198_v51  ;;  %3700 = vmatpush.bf16.msra.mxu1 %v9199_v0  ;;  %v3481_v1 = vpop.f32.mrf.mxu0  ;;  %v3494_v0 = vpop.f32.mrf.mxu1 }
 0x37a   :  { %v3482_v51 = vadd.f32 %v3481_v1, %v3469_v13  ;;  %v9219_v13 = vld [vmem:[#allocation210_spill] sm:$0xff]  ;;  %v9220_v1 = vld [vmem:[#allocation212_spill] sm:$0xff] }
 0x37b   :  { %3713 = vmatpush.bf16.msra.mxu2 %v9200_v25  ;;  %3726 = vmatpush.bf16.msra.mxu3 %v9204_v50  ;;  %v9213_v25 = vld [vmem:[#allocation204_spill] sm:$0xff]  ;;  %v9216_v50 = vld [vmem:[#allocation49_spill] sm:$0xff] }
 0x37c   :  { %3688 = vmatmul.bf16.vlgmr.msra.gmra.mxu0 %v7417_v23  ;;  %3701 = vmatmul.bf16.vlgmr.msra.gmra.mxu1 %v7423_v45 }
 0x37d   :  { %3732 = vmatpush.bf16.msrb.mxu0 %v9201_v49  ;;  %3745 = vmatpush.bf16.msrb.mxu1 %v9202_v34  ;;  %v3495_v49 = vadd.f32 %v3494_v0, %v3482_v51  ;;  %v9214_v34 = vld [vmem:[#allocation205_spill] sm:$0xff]  ;;  %v9223_v0 = vld [vmem:[#allocation215_spill] sm:$0xff] }
 0x37e   :  { %3714 = vmatmul.bf16.vlgmr.msra.gmra.mxu2 %v7456_v21  ;;  %3727 = vmatmul.bf16.vlgmr.msra.gmra.mxu3 %v7460_v61  ;;  %v9221_v51 = vld [vmem:[#allocation213_spill] sm:$0xff] }
 0x37f   :  { %3758 = vmatpush.bf16.msrb.mxu2 %v9203_v19  ;;  %3771 = vmatpush.bf16.msrb.mxu3 %v9205_v17  ;;  %v9215_v19 = vld [vmem:[#allocation206_spill] sm:$0xff]  ;;  %v7634_v17 = vadd.f32 %v3495_v49, %v9216_v50  ;;  %v9225_v49 = vld [vmem:[#allocation217_spill] sm:$0xff]  ;;  %v9227_v50 = vld [vmem:[#allocation219_spill] sm:$0xff] }
 0x381   :  { %3733 = vmatpush.bf16.msrb.mxu0 %v9206_v48  ;;  %3746 = vmatpush.bf16.msrb.mxu1 %v9207_v38  ;;  %v9217_v48 = vld [vmem:[#allocation208_spill] sm:$0xff]  ;;  %v9218_v38 = vld [vmem:[#allocation209_spill] sm:$0xff] }
 0x383   :  { %3759 = vmatpush.bf16.msrb.mxu2 %v9208_v57  ;;  %3772 = vmatpush.bf16.msrb.mxu3 %v9209_v40  ;;  %v3507_v57 = vpop.f32.mrf.mxu2  ;;  %v3483_v40 = vpop.f32.mrf.mxu0 }
 0x384   :  { %v9231_v40 = vld [vmem:[#allocation224_spill] sm:$0xff] }
 0x385   :  { %3734 = vmatpush.bf16.msrb.mxu0 %v9210_v3  ;;  %3747 = vmatpush.bf16.msrb.mxu1 %v9211_v56  ;;  %v3496_v3 = vpop.f32.mrf.mxu1  ;;  %v3520_v56 = vpop.f32.mrf.mxu3 }
 0x386   :  { %v9233_v3 = vld [vmem:[#allocation226_spill] sm:$0xff] }
 0x387   :  { %3760 = vmatpush.bf16.msrb.mxu2 %v9212_v8  ;;  %3773 = vmatpush.bf16.msrb.mxu3 %v9213_v25  ;;  %v3521_v8 = vadd.f32 %v3520_v56, %v3507_v57  ;;  %v9224_v25 = vld [vmem:[#allocation216_spill] sm:$0xff]  ;;  %v9230_v57 = vld [vmem:[#allocation222_spill] sm:$0xff] }
 0x388   :  { %v9235_v56 = vld [vmem:[#allocation228_spill] sm:$0xff] }
 0x389   :  { %3735 = vmatpush.bf16.msrb.mxu0 %v9214_v34  ;;  %3748 = vmatpush.bf16.msrb.mxu1 %v9215_v19  ;;  %v9226_v19 = vld [vmem:[#allocation218_spill] sm:$0xff] }
 0x38b   :  { %3761 = vmatpush.bf16.msrb.mxu2 %v8929_v18  ;;  %3774 = vmatpush.bf16.msrb.mxu3 %v9217_v48  ;;  %v9222_v18 = vld [vmem:[#allocation214_spill] sm:$0xff]  ;;  %v3509_v34 = vpop.f32.mrf.mxu2 }
 0x38c   :  { %v9241_v34 = vld [vmem:[#allocation234_spill] sm:$0xff] }
 0x38d   :  { %3736 = vmatpush.bf16.msrb.mxu0 %v9218_v38  ;;  %3749 = vmatpush.bf16.msrb.mxu1 %v9219_v13  ;;  %v3522_v48 = vpop.f32.mrf.mxu3  ;;  %v9229_v38 = vld [vmem:[#allocation221_spill] sm:$0xff] }
 0x38e   :  { %v9232_v13 = vld [vmem:[#allocation225_spill] sm:$0xff] }
 0x38f   :  { %3762 = vmatpush.bf16.msrb.mxu2 %v8933_v32  ;;  %3775 = vmatpush.bf16.msrb.mxu3 %v9220_v1  ;;  %v9228_v32 = vld [vmem:[#allocation220_spill] sm:$0xff]  ;;  %v9234_v1 = vld [vmem:[#allocation227_spill] sm:$0xff] }
 0x391   :  { %3737 = vmatpush.bf16.msrb.mxu0 %v9221_v51  ;;  %3750 = vmatpush.bf16.msrb.mxu1 %v9222_v18  ;;  %v9236_v51 = vld [vmem:[#allocation229_spill] sm:$0xff]  ;;  %v9237_v18 = vld [vmem:[#allocation230_spill] sm:$0xff] }
 0x393   :  { %3763 = vmatpush.bf16.msrb.mxu2 %v9223_v0  ;;  %3776 = vmatpush.bf16.msrb.mxu3 %v9224_v25  ;;  %v9238_v0 = vld [vmem:[#allocation231_spill] sm:$0xff]  ;;  %v9239_v25 = vld [vmem:[#allocation232_spill] sm:$0xff] }
 0x395   :  { %3738 = vmatpush.bf16.msrb.mxu0 %v9225_v49  ;;  %3751 = vmatpush.bf16.msrb.mxu1 %v9226_v19  ;;  %v9240_v49 = vld [vmem:[#allocation233_spill] sm:$0xff]  ;;  %v9242_v19 = vld [vmem:[#allocation235_spill] sm:$0xff] }
 0x397   :  { %3764 = vmatpush.bf16.msrb.mxu2 %v9227_v50  ;;  %3777 = vmatpush.bf16.msrb.mxu3 %v9228_v32  ;;  %v9243_v50 = vld [vmem:[#allocation236_spill] sm:$0xff] }
 0x399   :  { %3739 = vmatpush.bf16.msrb.mxu0 %v9229_v38  ;;  %3752 = vmatpush.bf16.msrb.mxu1 %v9230_v57  ;;  %v3533_v32 = vpop.f32.mrf.mxu0  ;;  %v3546_v48 = vpop.f32.mrf.mxu1  ;;  %v9244_v38 = vld [vmem:[#allocation237_spill] sm:$0xff] }
 0x39a   :  { %v3534_v57 = vadd.f32 %v3533_v32, %v3521_v8 }
 0x39b   :  { %3765 = vmatpush.bf16.msrb.mxu2 %v9231_v40  ;;  %3778 = vmatpush.bf16.msrb.mxu3 %v9235_v56  ;;  %v9245_v40 = vld [vmem:[#allocation238_spill] sm:$0xff]  ;;  %v9248_v56 = vld [vmem:[#allocation241_spill] sm:$0xff] }
 0x39c   :  { %3740 = vmatmul.bf16.vlgmr.msrb.gmra.mxu0 %v7411_v7  ;;  %3753 = vmatmul.bf16.vlgmr.msrb.gmra.mxu1 %v7415_v16 }
 0x39d   :  { %3784 = vmatpush.bf16.msra.mxu0 %v9232_v13  ;;  %3797 = vmatpush.bf16.msra.mxu1 %v9233_v3  ;;  %v9246_v13 = vld [vmem:[#allocation239_spill] sm:$0xff]  ;;  %v3547_v3 = vadd.f32 %v3546_v48, %v3534_v57  ;;  %v9251_v48 = vld [vmem:[#allocation245_spill] sm:$0xff]  ;;  %v9252_v57 = vld [vmem:[#allocation64_spill] sm:$0xff] }
 0x39e   :  { %3766 = vmatmul.bf16.vlgmr.msrb.gmra.mxu2 %v7417_v23  ;;  %3779 = vmatmul.bf16.vlgmr.msrb.gmra.mxu3 %v7423_v45 }
 0x39f   :  { %3810 = vmatpush.bf16.msra.mxu2 %v9234_v1  ;;  %3823 = vmatpush.bf16.msra.mxu3 %v9236_v51  ;;  %v9247_v1 = vld [vmem:[#allocation240_spill] sm:$0xff] }
 0x3a1   :  { %3785 = vmatpush.bf16.msra.mxu0 %v9237_v18  ;;  %3798 = vmatpush.bf16.msra.mxu1 %v9238_v0  ;;  %v3559_v51 = vpop.f32.mrf.mxu2  ;;  %v7673_v0 = vld [vmem:[#allocation7] sm:$0xff]  ;;  %v3548_v32 = vpop.f32.mrf.mxu1 }
 0x3a2   :  { %v3560_v18 = vadd.f32 %v3559_v51, %v3547_v3  ;;  %v9254_v3 = vld [vmem:[#allocation247_spill] sm:$0xff]  ;;  %v9256_v51 = vld [vmem:[#allocation249_spill] sm:$0xff]  ;;  %v9259_v32 = vld [vmem:[#allocation252_spill] sm:$0xff] }
 0x3a3   :  { %3811 = vmatpush.bf16.msra.mxu2 %v9239_v25  ;;  %3824 = vmatpush.bf16.msra.mxu3 %v9240_v49  ;;  %v9249_v25 = vld [vmem:[#allocation242_spill] sm:$0xff]  ;;  %v9250_v49 = vld [vmem:[#allocation243_spill] sm:$0xff] }
 0x3a5   :  { %3786 = vmatpush.bf16.msra.mxu0 %v9241_v34  ;;  %3799 = vmatpush.bf16.msra.mxu1 %v9242_v19  ;;  %v3572_v34 = vpop.f32.mrf.mxu3  ;;  %v3976_v19 = vperm.slane %v7673_v0, 1 }
 0x3a6   :  { %v3573_v8 = vadd.f32 %v3572_v34, %v3560_v18  ;;  %v9258_v34 = vld [vmem:[#allocation251_spill] sm:$0xff] }
 0x3a7   :  { %3812 = vmatpush.bf16.msra.mxu2 %v9243_v50  ;;  %3825 = vmatpush.bf16.msra.mxu3 %v9244_v38  ;;  %v3535_v50 = vpop.f32.mrf.mxu0  ;;  %v3975_v38 = vperm.slane %v7673_v0, 0 }
 0x3a9   :  { %3787 = vmatpush.bf16.msra.mxu0 %v9245_v40  ;;  %3800 = vmatpush.bf16.msra.mxu1 %v9246_v13  ;;  %v3967_v40 = vadd.f32 %v3573_v8, %v9252_v57  ;;  %v9253_v13 = vld [vmem:[#allocation246_spill] sm:$0xff]  ;;  %v3989_v18 = vadd.f32 %v3975_v38, %v7634_v17  ;;  %v9262_v57 = vld [vmem:[#allocation256_spill] sm:$0xff]  ;;  %v9265_v38 = vld [vmem:[#allocation259_spill] sm:$0xff] }
 0x3aa   :  { %v9264_v17 = vld [vmem:[#allocation258_spill] sm:$0xff] }
 0x3ab   :  { %3813 = vmatpush.bf16.msra.mxu2 %v9247_v1  ;;  %3826 = vmatpush.bf16.msra.mxu3 %v9248_v56  ;;  %v3990_v1 = vadd.f32 %v3976_v19, %v3967_v40  ;;  %v9255_v56 = vld [vmem:[#allocation248_spill] sm:$0xff]  ;;  %v9261_v19 = vld [vmem:[#allocation255_spill] sm:$0xff]  ;;  %v9263_v40 = vld [vmem:[#allocation257_spill] sm:$0xff] }
 0x3ad   :  { %3788 = vmatpush.bf16.msra.mxu0 %v9249_v25  ;;  %3801 = vmatpush.bf16.msra.mxu1 %v9250_v49  ;;  %v4003_v25 = vrot.slane %v3990_v1, 6  ;;  %v9257_v49 = vld [vmem:[#allocation250_spill] sm:$0xff]  ;;  %v3574_v50 = vpop.f32.mrf.mxu3 }
 0x3ae   :  { %v9268_v1 = vld [vmem:[#allocation262_spill] sm:$0xff] }
 0x3af   :  { %3814 = vmatpush.bf16.msra.mxu2 %v8966_v6  ;;  %3827 = vmatpush.bf16.msra.mxu3 %v9251_v48  ;;  %v3561_v6 = vpop.f32.mrf.mxu2  ;;  %v7691_v8 = vsel %vm480_vm0, %v3989_v18, %v4003_v25  ;;  %v9260_v48 = vld [vmem:[#allocation254_spill] sm:$0xff]  ;;  %v9273_v25 = vld [vmem:[#allocation267_spill] sm:$0xff] }
 0x3b0   :  { %v9271_v6 = vld [vmem:[#allocation265_spill] sm:$0xff]  ;;  %v9272_v18 = vld [vmem:[#allocation266_spill] sm:$0xff] }
 0x3b1   :  { %3789 = vmatpush.bf16.msra.mxu0 %v9253_v13  ;;  %3802 = vmatpush.bf16.msra.mxu1 %v9254_v3  ;;  %v9266_v13 = vld [vmem:[#allocation260_spill] sm:$0xff]  ;;  %v9267_v3 = vld [vmem:[#allocation261_spill] sm:$0xff] }
 0x3b3   :  { %3815 = vmatpush.bf16.msra.mxu2 %v9255_v56  ;;  %3828 = vmatpush.bf16.msra.mxu3 %v9256_v51  ;;  %v9269_v56 = vld [vmem:[#allocation263_spill] sm:$0xff]  ;;  %v9270_v51 = vld [vmem:[#allocation264_spill] sm:$0xff] }
 0x3b5   :  { %3790 = vmatpush.bf16.msra.mxu0 %v9257_v49  ;;  %3803 = vmatpush.bf16.msra.mxu1 %v9258_v34  ;;  %v9274_v49 = vld [vmem:[#allocation268_spill] sm:$0xff]  ;;  %v9275_v34 = vld [vmem:[#allocation269_spill] sm:$0xff] }
 0x3b7   :  { %3816 = vmatpush.bf16.msra.mxu2 %v9259_v32  ;;  %3829 = vmatpush.bf16.msra.mxu3 %v9260_v48  ;;  %v9276_v48 = vld [vmem:[#allocation270_spill] sm:$0xff] }
 0x3b9   :  { %3791 = vmatpush.bf16.msra.mxu0 %v9261_v19  ;;  %3804 = vmatpush.bf16.msra.mxu1 %v9262_v57  ;;  %v7713_v50 = vpop.f32.mrf.mxu0  ;;  %v7715_v32 = vpop.f32.mrf.mxu1  ;;  %v9277_v19 = vld [vmem:[#allocation271_spill] sm:$0xff]  ;;  %v9278_v57 = vld [vmem:[#allocation272_spill] sm:$0xff] }
 0x3bb   :  { %3817 = vmatpush.bf16.msra.mxu2 %v9263_v40  ;;  %3830 = vmatpush.bf16.msra.mxu3 %v9267_v3  ;;  %v9279_v40 = vld [vmem:[#allocation274_spill] sm:$0xff]  ;;  %v9282_v3 = vld [vmem:[#allocation277_spill] sm:$0xff] }
 0x3bc   :  { %3792 = vmatmul.bf16.vlgmr.msra.gmra.mxu0 %v7456_v21  ;;  %3805 = vmatmul.bf16.vlgmr.msra.gmra.mxu1 %v7460_v61 }
 0x3bd   :  { %3836 = vmatpush.bf16.msrb.mxu0 %v9264_v17  ;;  %3849 = vmatpush.bf16.msrb.mxu1 %v9265_v38  ;;  %v9280_v17 = vld [vmem:[#allocation275_spill] sm:$0xff] }
 0x3be   :  { %3818 = vmatmul.bf16.vlgmr.msra.gmra.mxu2 %v7411_v7  ;;  %3831 = vmatmul.bf16.vlgmr.msra.gmra.mxu3 %v7415_v16 }
 0x3bf   :  { %3862 = vmatpush.bf16.msrb.mxu2 %v9266_v13  ;;  %3875 = vmatpush.bf16.msrb.mxu3 %v9268_v1  ;;  %v9281_v13 = vld [vmem:[#allocation276_spill] sm:$0xff] }
 0x3c1   :  { %3837 = vmatpush.bf16.msrb.mxu0 %v9269_v56  ;;  %3850 = vmatpush.bf16.msrb.mxu1 %v9270_v51  ;;  %v7723_v38 = vpop.f32.mrf.mxu2  ;;  %v3587_v1 = vpop.f32.mrf.mxu0 }
 0x3c2   :  { %v3600_v56 = vpop.f32.mrf.mxu1  ;;  %v7727_v51 = vpop.f32.mrf.mxu3 }
 0x3c3   :  { %3863 = vmatpush.bf16.msrb.mxu2 %v9271_v6  ;;  %3876 = vmatpush.bf16.msrb.mxu3 %v9272_v18  ;;  %v9283_v6 = vld [vmem:[#allocation279_spill] sm:$0xff]  ;;  %v9284_v18 = vld [vmem:[#allocation280_spill] sm:$0xff] }
 0x3c4   :  { %v9301_v56 = vld [vmem:[#allocation312_spill] sm:$0xff] }
 0x3c5   :  { %3838 = vmatpush.bf16.msrb.mxu0 %v9273_v25  ;;  %3851 = vmatpush.bf16.msrb.mxu1 %v9274_v49  ;;  %v9286_v49 = vld [vmem:[#allocation284_spill] sm:$0xff] }
 0x3c7   :  { %3864 = vmatpush.bf16.msrb.mxu2 %v9275_v34  ;;  %3877 = vmatpush.bf16.msrb.mxu3 %v9276_v48  ;;  %v9287_v48 = vld [vmem:[#allocation287_spill] sm:$0xff] }
 0x3c9   :  { %3839 = vmatpush.bf16.msrb.mxu0 %v9277_v19  ;;  %3852 = vmatpush.bf16.msrb.mxu1 %v9278_v57  ;;  %v3613_v25 = vpop.f32.mrf.mxu2  ;;  %v9289_v19 = vld [vmem:[#allocation290_spill] sm:$0xff] }
 0x3ca   :  { %v3626_v34 = vpop.f32.mrf.mxu3  ;;  %v9307_v25 = vld [vmem:[#allocation320_spill] sm:$0xff] }
 0x3cb   :  { %3865 = vmatpush.bf16.msrb.mxu2 %v8993_v62  ;;  %3878 = vmatpush.bf16.msrb.mxu3 %v9279_v40  ;;  %v9285_v62 = vld [vmem:[#allocation283_spill] sm:$0xff]  ;;  %v9297_v40 = vld [vmem:[#allocation304_spill] sm:$0xff] }
 0x3cd   :  { %3840 = vmatpush.bf16.msrb.mxu0 %v9280_v17  ;;  %3853 = vmatpush.bf16.msrb.mxu1 %v9281_v13  ;;  %v9299_v13 = vld [vmem:[#allocation308_spill] sm:$0xff] }
 0x3cf   :  { %3866 = vmatpush.bf16.msrb.mxu2 %v9282_v3  ;;  %3879 = vmatpush.bf16.msrb.mxu3 %v8999_v43  ;;  %v9288_v43 = vld [vmem:[#allocation288_spill] sm:$0xff] }
 0x3d1   :  { %3841 = vmatpush.bf16.msrb.mxu0 %v9283_v6  ;;  %3854 = vmatpush.bf16.msrb.mxu1 %v9284_v18  ;;  %v3599_v6 = vadd.f32 %v7715_v32, %v7713_v50  ;;  %v9303_v18 = vld [vmem:[#allocation316_spill] sm:$0xff]  ;;  %v9309_v50 = vld [vmem:[#allocation322_spill] sm:$0xff] }
 0x3d3   :  { %3867 = vmatpush.bf16.msrb.mxu2 %v9002_v59  ;;  %3880 = vmatpush.bf16.msrb.mxu3 %v9003_v30  ;;  %v9290_v59 = vld [vmem:[#allocation291_spill] sm:$0xff] }
 0x3d4   :  { %v9291_v30 = vld [vmem:[#allocation295_spill] sm:$0xff] }
 0x3d5   :  { %3842 = vmatpush.bf16.msrb.mxu0 %v9285_v62  ;;  %3855 = vmatpush.bf16.msrb.mxu1 %v9286_v49  ;;  %v9310_v49 = vld [vmem:[#allocation323_spill] sm:$0xff] }
 0x3d7   :  { %3868 = vmatpush.bf16.msrb.mxu2 %v9006_v42  ;;  %3881 = vmatpush.bf16.msrb.mxu3 %v9007_v35  ;;  %v9292_v42 = vld [vmem:[#allocation296_spill] sm:$0xff] }
 0x3d9   :  { %3843 = vmatpush.bf16.msrb.mxu0 %v9287_v48  ;;  %3856 = vmatpush.bf16.msrb.mxu1 %v9288_v43  ;;  %v3637_v35 = vpop.f32.mrf.mxu0  ;;  %v3650_v57 = vpop.f32.mrf.mxu1  ;;  %v9311_v48 = vld [vmem:[#allocation223_spill] sm:$0xff] }
 0x3db   :  { %3869 = vmatpush.bf16.msrb.mxu2 %v9009_v39  ;;  %3882 = vmatpush.bf16.msrb.mxu3 %v9010_v55  ;;  %v9293_v55 = vld [vmem:[#allocation299_spill] sm:$0xff]  ;;  %v9294_v39 = vld [vmem:[#allocation300_spill] sm:$0xff] }
 0x3dc   :  { %3844 = vmatmul.bf16.vlgmr.msrb.gmra.mxu0 %v7417_v23  ;;  %3857 = vmatmul.bf16.vlgmr.msrb.gmra.mxu1 %v7423_v45 }
 0x3dd   :  { %3888 = vmatpush.bf16.msra.mxu0 %v9289_v19  ;;  %3901 = vmatpush.bf16.msra.mxu1 %v9290_v59  ;;  %v3978_v59 = vperm.slane %v7673_v0, 3 }
 0x3de   :  { %3870 = vmatmul.bf16.vlgmr.msrb.gmra.mxu2 %v7456_v21  ;;  %3883 = vmatmul.bf16.vlgmr.msrb.gmra.mxu3 %v7460_v61 }
 0x3df   :  { %3914 = vmatpush.bf16.msra.mxu2 %v9011_v27  ;;  %3927 = vmatpush.bf16.msra.mxu3 %v9012_v5  ;;  %v9295_v27 = vld [vmem:[#allocation302_spill] sm:$0xff]  ;;  %v9296_v5 = vld [vmem:[#allocation303_spill] sm:$0xff] }
 0x3e1   :  { %3889 = vmatpush.bf16.msra.mxu0 %v9291_v30  ;;  %3902 = vmatpush.bf16.msra.mxu1 %v9292_v42  ;;  %v3639_v17 = vpop.f32.mrf.mxu0  ;;  %v3652_v3 = vpop.f32.mrf.mxu1 }
 0x3e2   :  { %v3676_v1 = vpop.f32.mrf.mxu3 }
 0x3e3   :  { %3915 = vmatpush.bf16.msra.mxu2 %v9013_v14  ;;  %3928 = vmatpush.bf16.msra.mxu3 %v9014_v11  ;;  %v9298_v14 = vld [vmem:[#allocation307_spill] sm:$0xff]  ;;  %v3663_v11 = vpop.f32.mrf.mxu2 }
 0x3e4   :  { %v3677_v32 = vadd.f32 %v3676_v1, %v3663_v11 }
 0x3e5   :  { %3890 = vmatpush.bf16.msra.mxu0 %v9293_v55  ;;  %3903 = vmatpush.bf16.msra.mxu1 %v9294_v39 }
 0x3e7   :  { %3916 = vmatpush.bf16.msra.mxu2 %v9015_v63  ;;  %3929 = vmatpush.bf16.msra.mxu3 %v9295_v27  ;;  %v9300_v63 = vld [vmem:[#allocation311_spill] sm:$0xff] }
 0x3e9   :  { %3891 = vmatpush.bf16.msra.mxu0 %v9296_v5  ;;  %3904 = vmatpush.bf16.msra.mxu1 %v9297_v40 }
 0x3ea   :  { %v3678_v62 = vpop.f32.mrf.mxu3 }
 0x3eb   :  { %3917 = vmatpush.bf16.msra.mxu2 %v9017_v31  ;;  %3930 = vmatpush.bf16.msra.mxu3 %v9018_v41  ;;  %v9302_v41 = vld [vmem:[#allocation315_spill] sm:$0xff]  ;;  %v3665_v31 = vpop.f32.mrf.mxu2 }
 0x3ed   :  { %3892 = vmatpush.bf16.msra.mxu0 %v9298_v14  ;;  %3905 = vmatpush.bf16.msra.mxu1 %v9299_v13 }
 0x3ef   :  { %3918 = vmatpush.bf16.msra.mxu2 %v9019_v28  ;;  %3931 = vmatpush.bf16.msra.mxu3 %v9020_v24  ;;  %v9304_v24 = vld [vmem:[#allocation317_spill] sm:$0xff]  ;;  %v3612_v28 = vadd.f32 %v7723_v38, %v3599_v6 }
 0x3f1   :  { %3893 = vmatpush.bf16.msra.mxu0 %v9300_v63  ;;  %3906 = vmatpush.bf16.msra.mxu1 %v9301_v56 }
 0x3f3   :  { %3919 = vmatpush.bf16.msra.mxu2 %v9021_v53  ;;  %3932 = vmatpush.bf16.msra.mxu3 %v9022_v4  ;;  %v9305_v53 = vld [vmem:[#allocation318_spill] sm:$0xff]  ;;  %v9306_v4 = vld [vmem:[#allocation319_spill] sm:$0xff] }
 0x3f5   :  { %3894 = vmatpush.bf16.msra.mxu0 %v9302_v41  ;;  %3907 = vmatpush.bf16.msra.mxu1 %v9303_v18 }
 0x3f7   :  { %3920 = vmatpush.bf16.msra.mxu2 %v6890_v15  ;;  %3933 = vmatpush.bf16.msra.mxu3 %v6893_v54  ;;  %v3625_v15 = vadd.f32 %v7727_v51, %v3612_v28  ;;  %v9308_v54 = vld [vmem:[#allocation321_spill] sm:$0xff] }
 0x3f9   :  { %3895 = vmatpush.bf16.msra.mxu0 %v9304_v24  ;;  %3908 = vmatpush.bf16.msra.mxu1 %v9305_v53  ;;  %v3638_v38 = vadd.f32 %v3637_v35, %v3625_v15 }
 0x3fb   :  { %3921 = vmatpush.bf16.msra.mxu2 %v6902_v58  ;;  %3934 = vmatpush.bf16.msra.mxu3 %v6909_v52  ;;  %v3689_v58 = vpop.f32.mrf.mxu0  ;;  %v3651_v52 = vadd.f32 %v3650_v57, %v3638_v38 }
 0x3fc   :  { %3896 = vmatmul.bf16.vlgmr.msra.gmra.mxu0 %v7411_v7  ;;  %3909 = vmatmul.bf16.vlgmr.msra.gmra.mxu1 %v7415_v16  ;;  %v3702_v7 = vpop.f32.mrf.mxu1  ;;  %v3690_v16 = vadd.f32 %v3689_v58, %v3677_v32  ;;  %v3980_v32 = vperm.slane %v7673_v0, 5 }
 0x3fd   :  { %3940 = vmatpush.bf16.msrb.mxu0 %v9306_v4  ;;  %3953 = vmatpush.bf16.msrb.mxu1 %v9307_v25 }
 0x3fe   :  { %3922 = vmatmul.bf16.vlgmr.msra.gmra.mxu2 %v7417_v23  ;;  %3935 = vmatmul.bf16.vlgmr.msra.gmra.mxu3 %v7423_v45  ;;  %v3703_v51 = vadd.f32 %v3702_v7, %v3690_v16  ;;  %v3968_v23 = vadd.f32 %v3651_v52, %v9311_v48  ;;  %v3977_v45 = vperm.slane %v7673_v0, 2 }
 0x401   :  { %3941 = vmatpush.bf16.msrb.mxu0 %v9308_v54  ;;  %3954 = vmatpush.bf16.msrb.mxu1 %v9309_v50  ;;  %v3715_v34 = vpop.f32.mrf.mxu2 }
 0x402   :  { %v3716_v43 = vadd.f32 %v3715_v34, %v3703_v51 }
 0x403   :  { %v3691_v30 = vpop.f32.mrf.mxu0 }
 0x404   :  { %v3704_v42 = vpop.f32.mrf.mxu1 }
 0x405   :  { %3942 = vmatpush.bf16.msrb.mxu0 %v9310_v49  ;;  %3955 = vmatpush.bf16.msrb.mxu1 %v6930_v20  ;;  %v3728_v20 = vpop.f32.mrf.mxu3 }
 0x406   :  { %v3729_v19 = vadd.f32 %v3728_v20, %v3716_v43 }
 0x409   :  { %3943 = vmatpush.bf16.msrb.mxu0 %v6937_v47  ;;  %3956 = vmatpush.bf16.msrb.mxu1 %v6939_v26  ;;  %v3991_v47 = vadd.f32 %v3977_v45, %v3968_v23  ;;  %v3969_v26 = vadd.f32 %v3729_v19, %v7390_v12  ;;  %v3717_v35 = vpop.f32.mrf.mxu2 }
 0x40b   :  { %v3992_v55 = vadd.f32 %v3978_v59, %v3969_v26  ;;  %v4004_v39 = vrot.slane %v3991_v47, 4 }
 0x40d   :  { %3944 = vmatpush.bf16.msrb.mxu0 %v6945_v60  ;;  %3957 = vmatpush.bf16.msrb.mxu1 %v6947_v10  ;;  %v4005_v60 = vrot.slane %v3992_v55, 2  ;;  %v3730_v10 = vpop.f32.mrf.mxu3 }
 0x40f   :  { %v4009_v57 = vsel %vm482_vm1, %v4004_v39, %v4005_v60  ;;  %v3981_v39 = vperm.slane %v7673_v0, 6 }
 0x410   :  { %v4010_v27 = vsel %vm484_vm2, %v7691_v8, %v4009_v57 }
 0x411   :  { %3945 = vmatpush.bf16.msrb.mxu0 %v6953_v22  ;;  %3958 = vmatpush.bf16.msrb.mxu1 %v6955_v37  ;;  %4015 = vst [vmem:[#allocation8] sm:$0xff] %v4010_v27 }
 0x415   :  { %3946 = vmatpush.bf16.msrb.mxu0 %v6963_v29  ;;  %3959 = vmatpush.bf16.msrb.mxu1 %v6965_v36 }
 0x419   :  { %3947 = vmatpush.bf16.msrb.mxu0 %v6971_v33  ;;  %3960 = vmatpush.bf16.msrb.mxu1 %v6973_v44  ;;  %v3741_v22 = vpop.f32.mrf.mxu0  ;;  %v3754_v37 = vpop.f32.mrf.mxu1 }
 0x41a   :  { %v3755_v29 = vadd.f32 %v3754_v37, %v3741_v22 }
 0x41c   :  { %3948 = vmatmul.bf16.vlgmr.msrb.gmra.mxu0 %v7456_v21  ;;  %3961 = vmatmul.bf16.vlgmr.msrb.gmra.mxu1 %v7460_v61 }
 0x421   :  { %v3767_v12 = vpop.f32.mrf.mxu2  ;;  %v3743_v36 = vpop.f32.mrf.mxu0 }
 0x422   :  { %v3768_v5 = vadd.f32 %v3767_v12, %v3755_v29  ;;  %v3756_v40 = vpop.f32.mrf.mxu1  ;;  %v3780_v14 = vpop.f32.mrf.mxu3 }
 0x424   :  { %v3781_v11 = vadd.f32 %v3780_v14, %v3768_v5 }
 0x429   :  { %v3769_v17 = vpop.f32.mrf.mxu2 }
 0x42a   :  { %v3782_v8 = vpop.f32.mrf.mxu3 }
 0x439   :  { %v3793_v13 = vpop.f32.mrf.mxu0  ;;  %v3806_v3 = vpop.f32.mrf.mxu1 }
 0x43a   :  { %v3794_v33 = vadd.f32 %v3793_v13, %v3781_v11 }
 0x43c   :  { %v3807_v1 = vadd.f32 %v3806_v3, %v3794_v33 }
 0x43e   :  { %v3970_v44 = vadd.f32 %v3807_v1, %v7444_v46  ;;  %v3979_v46 = vperm.slane %v7673_v0, 4 }
 0x440   :  { %v3993_v7 = vadd.f32 %v3979_v46, %v3970_v44 }
 0x441   :  { %v3819_v21 = vpop.f32.mrf.mxu2  ;;  %v3795_v63 = vpop.f32.mrf.mxu0 }
 0x442   :  { %v3808_v61 = vpop.f32.mrf.mxu1  ;;  %v3832_v56 = vpop.f32.mrf.mxu3 }
 0x443   :  { %v3833_v41 = vadd.f32 %v3832_v56, %v3819_v21 }
 0x449   :  { %v3821_v31 = vpop.f32.mrf.mxu2 }
 0x44a   :  { %v3834_v6 = vpop.f32.mrf.mxu3 }
 0x459   :  { %v3845_v18 = vpop.f32.mrf.mxu0  ;;  %v3858_v24 = vpop.f32.mrf.mxu1 }
 0x45a   :  { %v3846_v62 = vadd.f32 %v3845_v18, %v3833_v41 }
 0x45c   :  { %v3859_v28 = vadd.f32 %v3858_v24, %v3846_v62 }
 0x461   :  { %v3871_v53 = vpop.f32.mrf.mxu2  ;;  %v3847_v25 = vpop.f32.mrf.mxu0 }
 0x462   :  { %v3872_v4 = vadd.f32 %v3871_v53, %v3859_v28  ;;  %v3884_v15 = vpop.f32.mrf.mxu3  ;;  %v3860_v54 = vpop.f32.mrf.mxu1 }
 0x464   :  { %v3885_v50 = vadd.f32 %v3884_v15, %v3872_v4 }
 0x466   :  { %v3971_v38 = vadd.f32 %v3885_v50, %v7517_v2 }
 0x468   :  { %v3994_v49 = vadd.f32 %v3980_v32, %v3971_v38 }
 0x469   :  { %v3873_v58 = vpop.f32.mrf.mxu2 }
 0x46a   :  { %v4006_v16 = vrot.slane %v3994_v49, 6  ;;  %v3886_v52 = vpop.f32.mrf.mxu3 }
 0x46c   :  { %v4011_v51 = vsel %vm480_vm0, %v3993_v7, %v4006_v16 }
 0x479   :  { %v3897_v34 = vpop.f32.mrf.mxu0  ;;  %v3910_v48 = vpop.f32.mrf.mxu1 }
 0x47a   :  { %v3911_v30 = vadd.f32 %v3910_v48, %v3897_v34 }
 0x481   :  { %v3899_v23 = vpop.f32.mrf.mxu0  ;;  %v3912_v45 = vpop.f32.mrf.mxu1 }
 0x482   :  { %v3923_v43 = vpop.f32.mrf.mxu2  ;;  %v3936_v20 = vpop.f32.mrf.mxu3 }
 0x483   :  { %v3924_v42 = vadd.f32 %v3923_v43, %v3911_v30 }
 0x485   :  { %v3937_v47 = vadd.f32 %v3936_v20, %v3924_v42 }
 0x48a   :  { %v3925_v19 = vpop.f32.mrf.mxu2  ;;  %v3938_v59 = vpop.f32.mrf.mxu3 }
 0x499   :  { %v3949_v26 = vpop.f32.mrf.mxu0  ;;  %v3962_v55 = vpop.f32.mrf.mxu1 }
 0x49a   :  { %v3950_v2 = vadd.f32 %v3949_v26, %v3937_v47 }
 0x49c   :  { %v3963_v35 = vadd.f32 %v3962_v55, %v3950_v2 }
 0x49e   :  { %v3972_v60 = vadd.f32 %v3963_v35, %v7563_v9 }
 0x4a0   :  { %v3995_v10 = vadd.f32 %v3981_v39, %v3972_v60 }
 0x4a1   :  { %v3951_v57 = vpop.f32.mrf.mxu0  ;;  %v3964_v22 = vpop.f32.mrf.mxu1 }
 0x4a2   :  { %v4007_v27 = vrot.slane %v3995_v10, 4 }
 0x4a4   :  { %v4012_v37 = vsel %vm484_vm2, %v4011_v51, %v4007_v27 }
 0x4a5   :  { %4016 = vst [vmem:[#allocation8 + $0x8] sm:$0x3f] %v4012_v37 }
 0x4a6   :  { %4027 = dma.vmem_to_hbm [thread:$0]  %s4023_s2, 224, %s4025_s30, [#allocation4]  }
 0x4a7   :  { %5821 = dma.done.wait [#allocation4], 224  }
 0x4a8   :  { %5822 = vsyncadd [#allocation4], 4294967072 }
 0x4a9   :  { %4032 = vsyncpa [#allocation3], 1 }
 0x4aa   :  { %4033 = vsyncpa [#allocation6], 1 }
 0x4ab   :  { %4034 = vsyncpa [#allocation4], 1 }

</bundles_post_ra>
